<compile_context>
chip_gen: v7x
topology: tpu7x:2x2x1
jax: 0.10.0
libtpu: 0.0.40
codegen_flags: <defaults>
</compile_context>

<pallas_src>
import numpy as np
import jax
import jax.numpy as jnp
from jax.experimental import pallas as pl
from jax.experimental.pallas import tpu as pltpu


def _pick_tile(n, per_point_bytes, cap=2048, vmem_budget=8 * 1024 * 1024):
    """Largest legal point-tile: a multiple of 8 dividing n (or n itself), sized so the
    double-buffered input blocks stay well inside the scoped VMEM limit (budgeted against
    v7x's smaller 64 MiB physical / 32 MiB scoped VMEM)."""
    cap = min(cap, max(8, vmem_budget // max(per_point_bytes, 1)))
    if n <= cap:
        return n
    best = None
    for d in range(8, cap + 1, 8):
        if n % d == 0:
            best = d
    return best if best is not None else n


# ----------------------------------------------------------------------------
# Kernel 1: occnet metric hot path (logit space — no sigmoid needed)
#   max over orientation axis -> per-tile partial counts [tp, sum(pb), sum(gb)]
#   + per-point top-channel value and the label gathered at that channel,
#     emitted as lane-dense (1, TN) rows.
# ----------------------------------------------------------------------------
def _occnet_metrics_kernel(pred_ref, gt_ref, stats_ref, topv_ref, topl_ref):
    # O-reduction in the native dtype (bf16 max is exact), then cast to f32 in-register.
    pred_m = jnp.max(pred_ref[...], axis=0).astype(jnp.float32)        # (TN, C)
    gt_m = jnp.max(gt_ref[...], axis=0).astype(jnp.float32)            # (TN, C)

    pred_bin = (pred_m > 0.0).astype(jnp.float32)      # sigmoid(x) > 0.5  <=>  x > 0
    gt_bin = (gt_m > 0.5).astype(jnp.float32)          # labels are {0, 1}

    tp = jnp.sum(pred_bin * gt_bin)
    pb = jnp.sum(pred_bin)
    gb = jnp.sum(gt_bin)

    # full 128-lane row -> unmasked store; lanes 0/1/2 carry [tp, pb, gb], rest are 0.
    lane = jax.lax.broadcasted_iota(jnp.int32, stats_ref.shape, 1)      # (1, 128)
    stats_ref[...] = (jnp.where(lane == 0, tp, 0.0)
                      + jnp.where(lane == 1, pb, 0.0)
                      + jnp.where(lane == 2, gb, 0.0))

    # Per-point best channel (first-max tie break, same as torch.max(dim=-1)).
    c = pred_m.shape[-1]
    col_max = jnp.max(pred_m, axis=-1, keepdims=True)                   # (TN, 1)
    c_idx = jax.lax.broadcasted_iota(jnp.int32, pred_m.shape, 1)        # (TN, C)
    first_idx = jnp.min(jnp.where(pred_m == col_max, c_idx, c),
                        axis=-1, keepdims=True)                         # (TN, 1)
    onehot = (c_idx == first_idx).astype(jnp.float32)                   # one 1 per row

    # (1, C) @ (TN, C)^T on the otherwise-idle MXU: fuses the argmax gather and the
    # sublane->lane transpose, yielding lane-dense (1, TN) rows for unmasked stores.
    ones_row = jnp.ones((1, c), jnp.float32)
    nt = (((1,), (1,)), ((), ()))
    topv_ref[...] = jax.lax.dot_general(ones_row, onehot * pred_m, nt,
                                        preferred_element_type=jnp.float32)
    topl_ref[...] = jax.lax.dot_general(ones_row, onehot * gt_m, nt,
                                        preferred_element_type=jnp.float32)


def _occnet_metrics_call(grasp_labels, grasp_prediction, tile=None):
    o, n, c = grasp_prediction.shape
    assert grasp_labels.shape == grasp_prediction.shape

    per_point_bytes = 2 * o * c * (grasp_prediction.dtype.itemsize
                                   + grasp_labels.dtype.itemsize)       # 2x: double buffer
    tn = _pick_tile(n, per_point_bytes) if tile is None else tile
    assert n % tn == 0 and (tn == n or tn % 8 == 0), "illegal point tile"
    grid_n = n // tn

    stats, topv, topl = pl.pallas_call(
        _occnet_metrics_kernel,
        out_shape=(
            jax.ShapeDtypeStruct((grid_n, 128), jnp.float32),  # per-tile [tp, pb, gb, 0..]
            jax.ShapeDtypeStruct((grid_n, tn), jnp.float32),   # top logit per point
            jax.ShapeDtypeStruct((grid_n, tn), jnp.float32),   # label at that channel
        ),
        grid=(grid_n,),
        in_specs=[
            pl.BlockSpec((o, tn, c), lambda i: (0, i, 0)),
            pl.BlockSpec((o, tn, c), lambda i: (0, i, 0)),
        ],
        out_specs=(
            pl.BlockSpec((1, 128), lambda i: (i, 0)),
            pl.BlockSpec((1, tn), lambda i: (i, 0)),
            pl.BlockSpec((1, tn), lambda i: (i, 0)),
        ),
        compiler_params=pltpu.CompilerParams(
            dimension_semantics=("parallel",)),                 # no shared accumulator
    )(grasp_prediction, grasp_labels)

    return stats, topv.reshape(-1), topl.reshape(-1)


# ----------------------------------------------------------------------------
# Kernel 2: sym_quat_loss (used by the 'giga' branch; value discarded upstream)
#   lane-dense (4, M) layout: quaternion components on sublanes, grasps on lanes;
#   per-tile partial sums (parallel grid), reduced + normalized in the wrapper.
# ----------------------------------------------------------------------------
def _sym_quat_loss_kernel(x_ref, t_ref, out_ref):
    x = x_ref[...].astype(jnp.float32)                          # (4, TM)
    t = t_ref[...].astype(jnp.float32)                          # (4, TM)
    x0, x1, x2, x3 = x[0:1], x[1:2], x[2:3], x[3:4]
    t0, t1, t2, t3 = t[0:1], t[1:2], t[2:3], t[3:4]

    dot1 = x0 * t0 + x1 * t1 + x2 * t2 + x3 * t3                # (1, TM)
    # rotated target quaternion (t1, -t0, t3, -t2) dotted with x:
    dot2 = x0 * t1 - x1 * t0 + x2 * t3 - x3 * t2                # (1, TM)

    loss = jnp.minimum(1.0 - jnp.abs(dot1), 1.0 - jnp.abs(dot2))
    out_ref[...] = jnp.sum(loss, keepdims=True)                 # (1, 1) per-tile partial


def sym_quat_loss(inputs, targets, tile=2048):
    x = jnp.reshape(inputs, (-1, 4))
    t = jnp.reshape(targets, (-1, 4))
    m = x.shape[0]

    if m <= tile:
        tm, m_pad = m, m
    else:
        tm = tile
        m_pad = ((m + tile - 1) // tile) * tile
    if m_pad > m:
        # pad with identical unit-w quaternions: loss1 = 1 - |1| = 0 -> contributes 0.
        pad_x = jnp.zeros((m_pad - m, 4), x.dtype).at[:, 3].set(1)
        pad_t = jnp.zeros((m_pad - m, 4), t.dtype).at[:, 3].set(1)
        x = jnp.concatenate([x, pad_x], axis=0)
        t = jnp.concatenate([t, pad_t], axis=0)

    x_t = jnp.swapaxes(x, 0, 1)    # (4, m_pad): components on sublanes, grasps on lanes
    t_t = jnp.swapaxes(t, 0, 1)
    grid_m = m_pad // tm

    partial = pl.pallas_call(
        _sym_quat_loss_kernel,
        out_shape=jax.ShapeDtypeStruct((grid_m, 1), jnp.float32),
        grid=(grid_m,),
        in_specs=[pl.BlockSpec((4, tm), lambda i: (0, i)),
                  pl.BlockSpec((4, tm), lambda i: (0, i))],
        out_specs=pl.BlockSpec((1, 1), lambda i: (i, 0)),
        compiler_params=pltpu.CompilerParams(
            dimension_semantics=("parallel",)),                 # independent partial sums
    )(x_t, t_t)
    return jnp.sum(partial) / jnp.float32(m)


# ----------------------------------------------------------------------------
# Module wrapper (state mirrors torchmetrics sufficient statistics)
# ----------------------------------------------------------------------------
class GraspMetrics:
    """JAX/Pallas port of icg_net GraspMetrics. No learnable parameters."""

    def __init__(self, topk=50):
        self.topk = topk
        self.reset()

    def reset(self):
        self._tp = jnp.float32(0.0)
        self._fp = jnp.float32(0.0)
        self._fn = jnp.float32(0.0)
        self._tn = jnp.float32(0.0)
        self._topk_correct = jnp.float32(0.0)
        self._topk_total = jnp.float32(0.0)

    def __call__(self, *args, **kwargs):
        return self.forward(*args, **kwargs)

    def forward(self, grasp_labels, grasp_prediction, decoder_type, grasp_points=None):
        if decoder_type in ("occnet", "occnet_width"):
            if decoder_type == "occnet_width":
                grasp_prediction = grasp_prediction[..., :-1]
                grasp_labels = grasp_labels[..., :-1]
            if grasp_prediction.ndim == 2:
                # the reference only applies max(dim=0) when ndim == 3; a size-1
                # leading axis makes it a no-op and reuses the same kernel.
                grasp_prediction = grasp_prediction[None]
                grasp_labels = grasp_labels[None]
            # NOTE: no upcasting here — inputs go to the kernel in their native dtype
            # (bf16 predictions halve HBM traffic); the kernel casts to f32 in-register.
            stats, top_vals, top_lbls = _occnet_metrics_call(grasp_labels, grasp_prediction)

            o, n, c = grasp_prediction.shape
            tp = jnp.sum(stats[:, 0])
            pb = jnp.sum(stats[:, 1])
            gb = jnp.sum(stats[:, 2])
            self._tp += tp
            self._fp += pb - tp
            self._fn += gb - tp
            self._tn += jnp.float32(n * c) - pb - gb + tp

            k = min(self.topk, n)
            vals_k, idxs = jax.lax.top_k(top_vals, k)     # glue: top-k selection
            lbls_k = top_lbls[idxs]
            # values are raw logits -> threshold at 0.0 (== sigmoid > 0.5)
            correct = jnp.sum(((vals_k > 0.0) == (lbls_k > 0.5)).astype(jnp.float32))
            self._topk_correct += correct
            self._topk_total += jnp.float32(k)

        elif decoder_type == "acronym":
            # TODO(synk): 'acronym' branch (instance matching + boolean scatter) not ported.
            raise NotImplementedError("acronym decoder branch not ported")

        elif decoder_type == "giga":
            # TODO(synk): 'giga' quality metrics not ported (torchmetrics' implicit
            # logit-vs-probability handling is ambiguous); the sym_quat_loss hot path
            # below matches the reference (its value is discarded upstream).
            quat_pred = grasp_prediction[..., :4].reshape(-1, 4)
            quat_gt = grasp_labels[..., :4].reshape(-1, 4)
            sym_quat_loss(quat_pred, quat_gt)

    def get_metrics(self, prefix=""):
        def safe_div(a, b):
            return jnp.where(b > 0, a / jnp.maximum(b, 1.0), 0.0)

        total = self._tp + self._fp + self._fn + self._tn
        return {
            f"{prefix}/acc": safe_div(self._tp + self._tn, total),
            f"{prefix}/f1": safe_div(2.0 * self._tp,
                                     2.0 * self._tp + self._fp + self._fn),
            f"{prefix}/precision": safe_div(self._tp, self._tp + self._fp),
            f"{prefix}/recall": safe_div(self._tp, self._tp + self._fn),
            f"{prefix}/topk_acc": safe_div(self._topk_correct, self._topk_total),
        }


# ----------------------------------------------------------------------------
# Pure-JAX references (for the in-script sanity check; sigmoid path == torch spec)
# ----------------------------------------------------------------------------
def _reference_occnet(labels, preds, topk):
    p = jax.nn.sigmoid(preds).max(axis=0)
    g = labels.max(axis=0)
    pb, gb = p > 0.5, g > 0.5
    tp = jnp.sum((pb & gb).astype(jnp.float32))
    fp = jnp.sum((pb & ~gb).astype(jnp.float32))
    fn = jnp.sum((~pb & gb).astype(jnp.float32))
    tn = jnp.sum((~pb & ~gb).astype(jnp.float32))
    total = jnp.float32(p.size)
    top_vals = p.max(axis=-1)
    top_idx = jnp.argmax(p, axis=-1)
    top_lbls = jnp.take_along_axis(g, top_idx[:, None], axis=-1)[:, 0]
    k = min(topk, top_vals.shape[0])
    vk, idxs = jax.lax.top_k(top_vals, k)
    lk = top_lbls[idxs]
    return {
        "acc": (tp + tn) / total,
        "f1": 2 * tp / (2 * tp + fp + fn),
        "precision": tp / (tp + fp),
        "recall": tp / (tp + fn),
        "topk_acc": jnp.mean(((vk > 0.5) == (lk > 0.5)).astype(jnp.float32)),
        "tp": tp, "pb": jnp.sum(pb.astype(jnp.float32)),
        "gb": jnp.sum(gb.astype(jnp.float32)),
        "top_probs": top_vals, "top_lbls": top_lbls,
    }


def _reference_sym_quat_loss(x, t):
    loss1 = 1.0 - jnp.abs(jnp.sum(x * t, axis=-1))
    t_rot = jnp.stack((t[..., 1], -t[..., 0], t[..., 3], -t[..., 2]), -1)
    loss2 = 1.0 - jnp.abs(jnp.sum(x * t_rot, axis=-1))
    return jnp.minimum(loss1, loss2).mean()


if __name__ == "__main__":
    key = jax.random.PRNGKey(0)
    k1, k2, k3, k4 = jax.random.split(key, 4)

    # occnet-style inputs: [O=2 orientations/scenes, N=256 points, C=16 channels]
    O, N, C = 2, 256, 16
    logits = 2.0 * jax.random.normal(k1, (O, N, C), jnp.float32)
    grasp_prediction = logits.astype(jnp.bfloat16)        # native bf16 logits (BW win)
    grasp_labels = jax.random.bernoulli(k2, 0.3, (O, N, C)).astype(jnp.float32)

    metrics_mod = GraspMetrics(topk=50)
    metrics_mod.forward(grasp_labels, grasp_prediction, decoder_type="occnet")
    metrics = metrics_mod.get_metrics(prefix="val")
    metrics = {name: jax.block_until_ready(v) for name, v in metrics.items()}

    ref = _reference_occnet(grasp_labels, grasp_prediction.astype(jnp.float32), topk=50)
    for name in ("acc", "f1", "precision", "recall", "topk_acc"):
        np.testing.assert_allclose(np.asarray(metrics[f"val/{name}"]),
                                   np.asarray(ref[name]), rtol=1e-5, atol=1e-5)

    # multi-tile / "parallel"-grid path: force a small tile so the grid > 1
    stats, topv, topl = _occnet_metrics_call(grasp_labels, grasp_prediction, tile=64)
    stats = jax.block_until_ready(stats)
    np.testing.assert_allclose(np.asarray(jax.nn.sigmoid(topv)),
                               np.asarray(ref["top_probs"]), rtol=1e-5, atol=1e-6)
    np.testing.assert_allclose(np.asarray(topl), np.asarray(ref["top_lbls"]),
                               rtol=0, atol=1e-6)
    np.testing.assert_allclose(
        np.asarray(jnp.stack([stats[:, 0].sum(), stats[:, 1].sum(), stats[:, 2].sum()])),
        np.asarray(jnp.stack([ref["tp"], ref["pb"], ref["gb"]])), rtol=0, atol=0)

    # exercise the sym_quat_loss kernel (giga-branch hot path)
    M = 200   # deliberately not a multiple of 128: single-block path
    q_pred = jax.random.normal(k3, (M, 4), jnp.float32)
    q_pred = q_pred / jnp.linalg.norm(q_pred, axis=-1, keepdims=True)
    q_gt = jax.random.normal(k4, (M, 4), jnp.float32)
    q_gt = q_gt / jnp.linalg.norm(q_gt, axis=-1, keepdims=True)
    ref_loss = _reference_sym_quat_loss(q_pred, q_gt)

    loss = jax.block_until_ready(sym_quat_loss(q_pred, q_gt))
    np.testing.assert_allclose(np.asarray(loss), np.asarray(ref_loss),
                               rtol=1e-5, atol=1e-5)
    # tiled + padded path (grid > 1, unit-quat padding contributes 0)
    loss_tiled = jax.block_until_ready(sym_quat_loss(q_pred, q_gt, tile=128))
    np.testing.assert_allclose(np.asarray(loss_tiled), np.asarray(ref_loss),
                               rtol=1e-5, atol=1e-5)

    print("KERNEL_OK")
</pallas_src>

<mosaic_0001>
module attributes {stable_mosaic.version = 11 : i64} {
  func.func @_occnet_metrics_kernel(%arg0: i32, %arg1: memref<2x256x16xbf16, #tpu.memory_space<vmem>>, %arg2: memref<2x256x16xf32, #tpu.memory_space<vmem>>, %arg3: memref<1x128xf32, #tpu.memory_space<vmem>>, %arg4: memref<1x256xf32, #tpu.memory_space<vmem>>, %arg5: memref<1x256xf32, #tpu.memory_space<vmem>>) attributes {dimension_semantics = [#tpu.dimension_semantics<parallel>], iteration_bounds = array<i64: 1>, scalar_prefetch = 0 : i64, scratch_operands = 0 : i64, tpu.core_type = #tpu.core_type<tc>, window_params = [{transform_indices = @transform_0, window_bounds = array<i64: 2, 256, 16>}, {transform_indices = @transform_1, window_bounds = array<i64: 2, 256, 16>}, {transform_indices = @transform_2, window_bounds = array<i64: 1, 128>}, {transform_indices = @transform_3, window_bounds = array<i64: 1, 256>}, {transform_indices = @transform_4, window_bounds = array<i64: 1, 256>}]} {
    %c0 = arith.constant 0 : index
    %c0_0 = arith.constant 0 : index
    %c0_1 = arith.constant 0 : index
    %0 = vector.load %arg1[%c0, %c0_0, %c0_1] : memref<2x256x16xbf16, #tpu.memory_space<vmem>>, vector<2x256x16xbf16>
    %cst = arith.constant dense<0xFF80> : vector<256x16xbf16>
    %1 = vector.multi_reduction <maximumf>, %0, %cst [0] : vector<2x256x16xbf16> to vector<256x16xbf16>
    %2 = arith.extf %1 : vector<256x16xbf16> to vector<256x16xf32>
    %c0_2 = arith.constant 0 : index
    %c0_3 = arith.constant 0 : index
    %c0_4 = arith.constant 0 : index
    %3 = vector.load %arg2[%c0_2, %c0_3, %c0_4] : memref<2x256x16xf32, #tpu.memory_space<vmem>>, vector<2x256x16xf32>
    %cst_5 = arith.constant dense<0xFF800000> : vector<256x16xf32>
    %4 = vector.multi_reduction <maximumf>, %3, %cst_5 [0] : vector<2x256x16xf32> to vector<256x16xf32>
    %cst_6 = arith.constant 0.000000e+00 : f32
    %5 = vector.broadcast %cst_6 : f32 to vector<256x16xf32>
    %6 = arith.cmpf ogt, %2, %5 : vector<256x16xf32>
    %7 = arith.extui %6 : vector<256x16xi1> to vector<256x16xi32>
    %8 = arith.sitofp %7 : vector<256x16xi32> to vector<256x16xf32>
    %cst_7 = arith.constant 5.000000e-01 : f32
    %9 = vector.broadcast %cst_7 : f32 to vector<256x16xf32>
    %10 = arith.cmpf ogt, %4, %9 : vector<256x16xf32>
    %11 = arith.extui %10 : vector<256x16xi1> to vector<256x16xi32>
    %12 = arith.sitofp %11 : vector<256x16xi32> to vector<256x16xf32>
    %13 = arith.mulf %8, %12 : vector<256x16xf32>
    %14 = vector.shape_cast %13 : vector<256x16xf32> to vector<1x256x16xf32>
    %cst_8 = arith.constant dense<0.000000e+00> : vector<1xf32>
    %15 = vector.multi_reduction <add>, %14, %cst_8 [1, 2] : vector<1x256x16xf32> to vector<1xf32>
    %16 = vector.shape_cast %15 : vector<1xf32> to vector<1x1x1xf32>
    %17 = vector.extract %16[0, 0, 0] : f32 from vector<1x1x1xf32>
    %18 = vector.shape_cast %8 : vector<256x16xf32> to vector<1x256x16xf32>
    %cst_9 = arith.constant dense<0.000000e+00> : vector<1xf32>
    %19 = vector.multi_reduction <add>, %18, %cst_9 [1, 2] : vector<1x256x16xf32> to vector<1xf32>
    %20 = vector.shape_cast %19 : vector<1xf32> to vector<1x1x1xf32>
    %21 = vector.extract %20[0, 0, 0] : f32 from vector<1x1x1xf32>
    %22 = vector.shape_cast %12 : vector<256x16xf32> to vector<1x256x16xf32>
    %cst_10 = arith.constant dense<0.000000e+00> : vector<1xf32>
    %23 = vector.multi_reduction <add>, %22, %cst_10 [1, 2] : vector<1x256x16xf32> to vector<1xf32>
    %24 = vector.shape_cast %23 : vector<1xf32> to vector<1x1x1xf32>
    %25 = vector.extract %24[0, 0, 0] : f32 from vector<1x1x1xf32>
    %26 = tpu.iota {dimensions = array<i32: 1>} : vector<1x128xi32>
    %c0_i32 = arith.constant 0 : i32
    %27 = vector.broadcast %c0_i32 : i32 to vector<1x128xi32>
    %28 = arith.cmpi eq, %26, %27 : vector<1x128xi32>
    %cst_11 = arith.constant 0.000000e+00 : f32
    %29 = vector.broadcast %17 : f32 to vector<1x128xf32>
    %30 = vector.broadcast %cst_11 : f32 to vector<1x128xf32>
    %31 = arith.select %28, %29, %30 : vector<1x128xi1>, vector<1x128xf32>
    %c1_i32 = arith.constant 1 : i32
    %32 = vector.broadcast %c1_i32 : i32 to vector<1x128xi32>
    %33 = arith.cmpi eq, %26, %32 : vector<1x128xi32>
    %cst_12 = arith.constant 0.000000e+00 : f32
    %34 = vector.broadcast %21 : f32 to vector<1x128xf32>
    %35 = vector.broadcast %cst_12 : f32 to vector<1x128xf32>
    %36 = arith.select %33, %34, %35 : vector<1x128xi1>, vector<1x128xf32>
    %37 = arith.addf %31, %36 : vector<1x128xf32>
    %c2_i32 = arith.constant 2 : i32
    %38 = vector.broadcast %c2_i32 : i32 to vector<1x128xi32>
    %39 = arith.cmpi eq, %26, %38 : vector<1x128xi32>
    %cst_13 = arith.constant 0.000000e+00 : f32
    %40 = vector.broadcast %25 : f32 to vector<1x128xf32>
    %41 = vector.broadcast %cst_13 : f32 to vector<1x128xf32>
    %42 = arith.select %39, %40, %41 : vector<1x128xi1>, vector<1x128xf32>
    %43 = arith.addf %37, %42 : vector<1x128xf32>
    %c0_14 = arith.constant 0 : index
    %c0_15 = arith.constant 0 : index
    %44 = vector.load %arg3[%c0_14, %c0_15] : memref<1x128xf32, #tpu.memory_space<vmem>>, vector<1x128xf32>
    tpu.vector_store %arg3[%c0_14, %c0_15], %43 {strides = array<i32>} : memref<1x128xf32, #tpu.memory_space<vmem>>, vector<1x128xf32>,
    %cst_16 = arith.constant dense<0xFF800000> : vector<256xf32>
    %45 = vector.multi_reduction <maximumf>, %2, %cst_16 [1] : vector<256x16xf32> to vector<256xf32>
    %46 = vector.shape_cast %45 : vector<256xf32> to vector<256x1xf32>
    %47 = tpu.iota {dimensions = array<i32: 1>} : vector<256x16xi32>
    %48 = vector.broadcast %46 : vector<256x1xf32> to vector<256x16xf32>
    %49 = arith.cmpf oeq, %2, %48 : vector<256x16xf32>
    %c16_i32 = arith.constant 16 : i32
    %50 = vector.broadcast %c16_i32 : i32 to vector<256x16xi32>
    %51 = arith.select %49, %47, %50 : vector<256x16xi1>, vector<256x16xi32>
    %cst_17 = arith.constant dense<2147483647> : vector<256xi32>
    %52 = vector.multi_reduction <minsi>, %51, %cst_17 [1] : vector<256x16xi32> to vector<256xi32>
    %53 = vector.shape_cast %52 : vector<256xi32> to vector<256x1xi32>
    %54 = vector.broadcast %53 : vector<256x1xi32> to vector<256x16xi32>
    %55 = arith.cmpi eq, %47, %54 : vector<256x16xi32>
    %56 = arith.extui %55 : vector<256x16xi1> to vector<256x16xi32>
    %57 = arith.sitofp %56 : vector<256x16xi32> to vector<256x16xf32>
    %cst_18 = arith.constant 1.000000e+00 : f32
    %58 = vector.broadcast %cst_18 : f32 to vector<1x16xf32>
    %59 = arith.mulf %57, %2 : vector<256x16xf32>
    %cst_19 = arith.constant dense<0.000000e+00> : vector<1x256xf32>
    %60 = tpu.matmul %58, %59, %cst_19 {dimension_numbers = #tpu.dot_dimension_numbers<[1], [1], [0], [0], [0, 0, 1, 0], [], []>} : vector<1x16xf32>, vector<256x16xf32>, vector<1x256xf32> -> vector<1x256xf32>
    %c0_20 = arith.constant 0 : index
    %c0_21 = arith.constant 0 : index
    %61 = vector.load %arg4[%c0_20, %c0_21] : memref<1x256xf32, #tpu.memory_space<vmem>>, vector<1x256xf32>
    tpu.vector_store %arg4[%c0_20, %c0_21], %60 {strides = array<i32>} : memref<1x256xf32, #tpu.memory_space<vmem>>, vector<1x256xf32>,
    %62 = arith.mulf %57, %4 : vector<256x16xf32>
    %cst_22 = arith.constant dense<0.000000e+00> : vector<1x256xf32>
    %63 = tpu.matmul %58, %62, %cst_22 {dimension_numbers = #tpu.dot_dimension_numbers<[1], [1], [0], [0], [0, 0, 1, 0], [], []>} : vector<1x16xf32>, vector<256x16xf32>, vector<1x256xf32> -> vector<1x256xf32>
    %c0_23 = arith.constant 0 : index
    %c0_24 = arith.constant 0 : index
    %64 = vector.load %arg5[%c0_23, %c0_24] : memref<1x256xf32, #tpu.memory_space<vmem>>, vector<1x256xf32>
    tpu.vector_store %arg5[%c0_23, %c0_24], %63 {strides = array<i32>} : memref<1x256xf32, #tpu.memory_space<vmem>>, vector<1x256xf32>,
    return
  }
  func.func @transform_0(%arg0: i32) -> (i32, i32, i32) {
    %c0_i32 = arith.constant 0 : i32
    %c0_i32_0 = arith.constant 0 : i32
    %c0_i32_1 = arith.constant 0 : i32
    return %c0_i32, %arg0, %c0_i32_0 : i32, i32, i32
  }
  func.func @transform_1(%arg0: i32) -> (i32, i32, i32) {
    %c0_i32 = arith.constant 0 : i32
    %c0_i32_0 = arith.constant 0 : i32
    %c0_i32_1 = arith.constant 0 : i32
    return %c0_i32, %arg0, %c0_i32_0 : i32, i32, i32
  }
  func.func @transform_2(%arg0: i32) -> (i32, i32) {
    %c0_i32 = arith.constant 0 : i32
    %c0_i32_0 = arith.constant 0 : i32
    return %arg0, %c0_i32 : i32, i32
  }
  func.func @transform_3(%arg0: i32) -> (i32, i32) {
    %c0_i32 = arith.constant 0 : i32
    %c0_i32_0 = arith.constant 0 : i32
    return %arg0, %c0_i32 : i32, i32
  }
  func.func @transform_4(%arg0: i32) -> (i32, i32) {
    %c0_i32 = arith.constant 0 : i32
    %c0_i32_0 = arith.constant 0 : i32
    return %arg0, %c0_i32 : i32, i32
  }
}

</mosaic_0001>

<bundles_post_ra>
// kernel: tpu_custom_call.1
= control target key start
LH: loop header
LB: loop body
LE: loop exit
PB: predicated region body
PF: predicated region fallthrough
CT: control target
= control target key end

     0   :  { %10 = vsyncpa [#allocation3], 0  ;;  %vm81_vm0 = vcmask 125952   ;;  %vm403_vm1 = vcmask 130048   ;;  %s4649_s0 = inlined_call_operand.vmem [shape: bf16[2,256,16], index: 0, kind: input, shape index: {}]   ;;  %s4650_s1 = inlined_call_operand.vmem [shape: f32[2,256,16], index: 1, kind: input, shape index: {}]   ;;  %s4651_s2 = inlined_call_operand.hbm [shape: f32[1,128], index: 2, kind: output, shape index: {0}]   ;;  %s4652_s3 = inlined_call_operand.hbm [shape: f32[1,256], index: 3, kind: output, shape index: {1}]   ;;  %s4653_s4 = inlined_call_operand.hbm [shape: f32[1,256], index: 4, kind: output, shape index: {2}]  }
   0x1   :  { %v33_v0 = vld [vmem:[%s4649_s0 + $0x40] sm:$0xf]  ;;  %v34_v4 = vld [vmem:[%s4649_s0 + $0x44] sm:$0xf]  ;;  %v35_v15 = vld [vmem:[%s4649_s0 + $0x48] sm:$0xf] }
   0x2   :  { %v65_v1 = vld [vmem:[%s4649_s0 + $0xc0] sm:$0xf]  ;;  %v196_v2 = vsel %vm81_vm0, %v33_v0, 4286644096  ;;  %v66_v6 = vld [vmem:[%s4649_s0 + $0xc4] sm:$0xf] }
   0x3   :  { %v199_v3 = vsel %vm81_vm0, %v65_v1, 4286644096  ;;  %v203_v7 = vsel %vm81_vm0, %v34_v4, 4286644096  ;;  %v17_v8 = vld [vmem:[%s4649_s0] sm:$0xf] }
   0x4   :  { %v201_v5 = vmax.bf16 %v199_v3, %v196_v2  ;;  %v206_v9 = vsel %vm81_vm0, %v66_v6, 4286644096  ;;  %v49_v10 = vld [vmem:[%s4649_s0 + $0x80] sm:$0xf]  ;;  %v84_v11 = vsel %vm81_vm0, %v17_v8, 4286644096 }
   0x5   :  { %v208_v13 = vmax.bf16 %v206_v9, %v203_v7  ;;  %v87_v14 = vsel %vm81_vm0, %v49_v10, 4286644096  ;;  %v67_v17 = vld [vmem:[%s4649_s0 + $0xc8] sm:$0xf]  ;;  %v210_v18 = vsel %vm81_vm0, %v35_v15, 4286644096 }
   0x6   :  { %v2636_v12 = vunpack.c.l.bf16 %v201_v5  ;;  %v89_v16 = vmax.bf16 %v87_v14, %v84_v11  ;;  %v18_v19 = vld [vmem:[%s4649_s0 + $0x4] sm:$0xf]  ;;  %v213_v22 = vsel %vm81_vm0, %v67_v17, 4286644096  ;;  %v19_v28 = vld [vmem:[%s4649_s0 + $0x8] sm:$0xf] }
   0x7   :  { %v2651_v21 = vunpack.c.l.bf16 %v208_v13  ;;  %v50_v23 = vld [vmem:[%s4649_s0 + $0x84] sm:$0xf]  ;;  %v215_v25 = vmax.bf16 %v213_v22, %v210_v18  ;;  %v91_v26 = vsel %vm81_vm0, %v18_v19, 4286644096  ;;  %v51_v31 = vld [vmem:[%s4649_s0 + $0x88] sm:$0xf] }
   0x8   :  { %4777 = vst [vmem:[#allocation9_spill] sm:$0xff] %v2636_v12  ;;  %v1002_v20 = vsel %vm403_vm1, %v2636_v12, -inf  ;;  %v2657_v24 = vunpack.c.l.bf16 %v89_v16  ;;  %v94_v27 = vsel %vm81_vm0, %v50_v23, 4286644096  ;;  %v98_v32 = vsel %vm81_vm0, %v19_v28, 4286644096 }
   0x9   :  { %4778 = vst [vmem:[#allocation10_spill] sm:$0xff] %v2651_v21  ;;  %1003 = vmax.xlane.f32.xlu0 %v1002_v20  ;;  %v1005_v29 = vsel %vm403_vm1, %v2651_v21, -inf  ;;  %v96_v30 = vmax.bf16 %v94_v27, %v91_v26  ;;  %v2672_v34 = vunpack.c.l.bf16 %v215_v25  ;;  %v101_v35 = vsel %vm81_vm0, %v51_v31, 4286644096  ;;  %v36_v36 = vld [vmem:[%s4649_s0 + $0x4c] sm:$0xf] }
   0xa   :  { %4779 = vst [vmem:[#allocation11_spill] sm:$0xff] %v2657_v24  ;;  %v954_v33 = vsel %vm403_vm1, %v2657_v24, -inf  ;;  %v103_v38 = vmax.bf16 %v101_v35, %v98_v32  ;;  %v68_v39 = vld [vmem:[%s4649_s0 + $0xcc] sm:$0xf]  ;;  %v217_v40 = vsel %vm81_vm0, %v36_v36, 4286644096 }
   0xb   :  { %4780 = vst [vmem:[#allocation12_spill] sm:$0xff] %v2672_v34  ;;  %955 = vmax.xlane.f32.xlu1 %v954_v33  ;;  %v2678_v37 = vunpack.c.l.bf16 %v96_v30  ;;  %v220_v41 = vsel %vm81_vm0, %v68_v39, 4286644096  ;;  %v37_v42 = vld [vmem:[%s4649_s0 + $0x50] sm:$0xf]  ;;  %v1008_v43 = vsel %vm403_vm1, %v2672_v34, -inf }
   0xc   :  { %v2692_v45 = vunpack.c.l.bf16 %v103_v38  ;;  %v222_v46 = vmax.bf16 %v220_v41, %v217_v40  ;;  %v69_v47 = vld [vmem:[%s4649_s0 + $0xd0] sm:$0xf]  ;;  %v20_v48 = vld [vmem:[%s4649_s0 + $0xc] sm:$0xf]  ;;  %v224_v49 = vsel %vm81_vm0, %v37_v42, 4286644096 }
   0xd   :  { %4781 = vst [vmem:[#allocation13_spill] sm:$0xff] %v2678_v37  ;;  %1006 = vmax.xlane.f32.xlu0 %v1005_v29  ;;  %v957_v44 = vsel %vm403_vm1, %v2678_v37, -inf  ;;  %v227_v50 = vsel %vm81_vm0, %v69_v47, 4286644096  ;;  %v52_v54 = vld [vmem:[%s4649_s0 + $0x8c] sm:$0xf] }
   0xe   :  { %4782 = vst [vmem:[#allocation14_spill] sm:$0xff] %v2692_v45  ;;  %v960_v51 = vsel %vm403_vm1, %v2692_v45, -inf  ;;  %v2704_v52 = vunpack.c.l.bf16 %v222_v46  ;;  %v229_v53 = vmax.bf16 %v227_v50, %v224_v49  ;;  %v105_v55 = vsel %vm81_vm0, %v20_v48, 4286644096  ;;  %v21_v57 = vld [vmem:[%s4649_s0 + $0x10] sm:$0xf] }
   0xf   :  { %958 = vmax.xlane.f32.xlu1 %v957_v44  ;;  %v108_v56 = vsel %vm81_vm0, %v52_v54, 4286644096  ;;  %v53_v58 = vld [vmem:[%s4649_s0 + $0x90] sm:$0xf]  ;;  %v112_v62 = vsel %vm81_vm0, %v21_v57, 4286644096 }
  0x10   :  { %4783 = vst [vmem:[#allocation15_spill] sm:$0xff] %v2704_v52  ;;  %v1011_v59 = vsel %vm403_vm1, %v2704_v52, -inf  ;;  %v2719_v60 = vunpack.c.l.bf16 %v229_v53  ;;  %v110_v61 = vmax.bf16 %v108_v56, %v105_v55  ;;  %v38_v63 = vld [vmem:[%s4649_s0 + $0x54] sm:$0xf]  ;;  %v115_v0 = vsel %vm81_vm0, %v53_v58, 4286644096 }
  0x11   :  { %1009 = vmax.xlane.f32.xlu0 %v1008_v43  ;;  %v70_v1 = vld [vmem:[%s4649_s0 + $0xd4] sm:$0xf]  ;;  %v231_v2 = vsel %vm81_vm0, %v38_v63, 4286644096  ;;  %v117_v4 = vmax.bf16 %v115_v0, %v112_v62  ;;  %v39_v6 = vld [vmem:[%s4649_s0 + $0x58] sm:$0xf] }
  0x12   :  { %4784 = vst [vmem:[#allocation16_spill] sm:$0xff] %v2719_v60  ;;  %v2730_v3 = vunpack.c.l.bf16 %v110_v61  ;;  %v234_v5 = vsel %vm81_vm0, %v70_v1, 4286644096  ;;  %v71_v8 = vld [vmem:[%s4649_s0 + $0xd8] sm:$0xf]  ;;  %v1014_v11 = vsel %vm403_vm1, %v2719_v60, -inf }
  0x13   :  { %1012 = vmax.xlane.f32.xlu1 %v1011_v59  ;;  %v236_v7 = vmax.bf16 %v234_v5, %v231_v2  ;;  %v238_v9 = vsel %vm81_vm0, %v39_v6, 4286644096  ;;  %v22_v10 = vld [vmem:[%s4649_s0 + $0x14] sm:$0xf]  ;;  %v2747_v14 = vunpack.c.l.bf16 %v117_v4  ;;  %v241_v15 = vsel %vm81_vm0, %v71_v8, 4286644096 }
  0x14   :  { %4785 = vst [vmem:[#allocation17_spill] sm:$0xff] %v2730_v3  ;;  %v963_v13 = vsel %vm403_vm1, %v2730_v3, -inf  ;;  %v54_v16 = vld [vmem:[%s4649_s0 + $0x94] sm:$0xf]  ;;  %v243_v18 = vmax.bf16 %v241_v15, %v238_v9  ;;  %v119_v19 = vsel %vm81_vm0, %v22_v10, 4286644096 }
  0x15   :  { %961 = vmax.xlane.f32.xlu0 %v960_v51  ;;  %4786 = vst [vmem:[#allocation18_spill] sm:$0xff] %v2747_v14  ;;  %v2753_v17 = vunpack.c.l.bf16 %v236_v7  ;;  %v23_v20 = vld [vmem:[%s4649_s0 + $0x18] sm:$0xf]  ;;  %v122_v22 = vsel %vm81_vm0, %v54_v16, 4286644096  ;;  %v966_v29 = vsel %vm403_vm1, %v2747_v14, -inf }
  0x16   :  { %v55_v23 = vld [vmem:[%s4649_s0 + $0x98] sm:$0xf]  ;;  %v124_v26 = vmax.bf16 %v122_v22, %v119_v19  ;;  %v40_v27 = vld [vmem:[%s4649_s0 + $0x5c] sm:$0xf]  ;;  %v2773_v30 = vunpack.c.l.bf16 %v243_v18  ;;  %v126_v31 = vsel %vm81_vm0, %v23_v20, 4286644096 }
  0x17   :  { %4787 = vst [vmem:[#allocation19_spill] sm:$0xff] %v2753_v17  ;;  %964 = vmax.xlane.f32.xlu1 %v963_v13  ;;  %v1017_v25 = vsel %vm403_vm1, %v2753_v17, -inf  ;;  %v72_v28 = vld [vmem:[%s4649_s0 + $0xdc] sm:$0xf]  ;;  %v129_v32 = vsel %vm81_vm0, %v55_v23, 4286644096 }
  0x18   :  { %4788 = vst [vmem:[#allocation20_spill] sm:$0xff] %v2773_v30  ;;  %v2777_v33 = vunpack.c.l.bf16 %v124_v26  ;;  %v131_v35 = vmax.bf16 %v129_v32, %v126_v31  ;;  %v245_v36 = vsel %vm81_vm0, %v40_v27, 4286644096  ;;  %v41_v38 = vld [vmem:[%s4649_s0 + $0x60] sm:$0xf]  ;;  %v1020_v48 = vsel %vm403_vm1, %v2773_v30, -inf }
  0x19   :  { %1015 = vmax.xlane.f32.xlu0 %v1014_v11  ;;  %v248_v39 = vsel %vm81_vm0, %v72_v28, 4286644096  ;;  %v73_v40 = vld [vmem:[%s4649_s0 + $0xe0] sm:$0xf]  ;;  %v252_v41 = vsel %vm81_vm0, %v41_v38, 4286644096 }
  0x1a   :  { %4789 = vst [vmem:[#allocation21_spill] sm:$0xff] %v2777_v33  ;;  %v969_v42 = vsel %vm403_vm1, %v2777_v33, -inf  ;;  %v2790_v43 = vunpack.c.l.bf16 %v131_v35  ;;  %v250_v44 = vmax.bf16 %v248_v39, %v245_v36  ;;  %v24_v46 = vld [vmem:[%s4649_s0 + $0x1c] sm:$0xf]  ;;  %v255_v49 = vsel %vm81_vm0, %v73_v40, 4286644096 }
  0x1b   :  { %1018 = vmax.xlane.f32.xlu1 %v1017_v25  ;;  %v56_v47 = vld [vmem:[%s4649_s0 + $0x9c] sm:$0xf]  ;;  %v133_v50 = vsel %vm81_vm0, %v24_v46, 4286644096  ;;  %v25_v53 = vld [vmem:[%s4649_s0 + $0x20] sm:$0xf]  ;;  %v257_v54 = vmax.bf16 %v255_v49, %v252_v41 }
  0x1c   :  { %4790 = vst [vmem:[#allocation22_spill] sm:$0xff] %v2790_v43  ;;  %v2802_v51 = vunpack.c.l.bf16 %v250_v44  ;;  %v136_v55 = vsel %vm81_vm0, %v56_v47, 4286644096  ;;  %v57_v56 = vld [vmem:[%s4649_s0 + $0xa0] sm:$0xf]  ;;  %v972_v57 = vsel %vm403_vm1, %v2790_v43, -inf }
  0x1d   :  { %967 = vmax.xlane.f32.xlu0 %v966_v29  ;;  %v138_v59 = vmax.bf16 %v136_v55, %v133_v50  ;;  %v140_v61 = vsel %vm81_vm0, %v25_v53, 4286644096  ;;  %v42_v62 = vld [vmem:[%s4649_s0 + $0x64] sm:$0xf]  ;;  %v2819_v63 = vunpack.c.l.bf16 %v257_v54  ;;  %v143_v0 = vsel %vm81_vm0, %v57_v56, 4286644096 }
  0x1e   :  { %4791 = vst [vmem:[#allocation23_spill] sm:$0xff] %v2802_v51  ;;  %v1023_v58 = vsel %vm403_vm1, %v2802_v51, -inf  ;;  %v74_v1 = vld [vmem:[%s4649_s0 + $0xe4] sm:$0xf]  ;;  %v259_v2 = vsel %vm81_vm0, %v42_v62, 4286644096  ;;  %v145_v5 = vmax.bf16 %v143_v0, %v140_v61 }
  0x1f   :  { %970 = vmax.xlane.f32.xlu1 %v969_v42  ;;  %4792 = vst [vmem:[#allocation24_spill] sm:$0xff] %v2819_v63  ;;  %v2826_v4 = vunpack.c.l.bf16 %v138_v59  ;;  %v262_v6 = vsel %vm81_vm0, %v74_v1, 4286644096  ;;  %v43_v7 = vld [vmem:[%s4649_s0 + $0x68] sm:$0xf]  ;;  %v1026_v13 = vsel %vm403_vm1, %v2819_v63, -inf }
  0x20   :  { %v75_v8 = vld [vmem:[%s4649_s0 + $0xe8] sm:$0xf]  ;;  %v264_v9 = vmax.bf16 %v262_v6, %v259_v2  ;;  %v266_v10 = vsel %vm81_vm0, %v43_v7, 4286644096  ;;  %v2841_v16 = vunpack.c.l.bf16 %v145_v5  ;;  %v26_v18 = vld [vmem:[%s4649_s0 + $0x24] sm:$0xf] }
  0x21   :  { %1021 = vmax.xlane.f32.xlu0 %v1020_v48  ;;  %4793 = vst [vmem:[#allocation25_spill] sm:$0xff] %v2826_v4  ;;  %v269_v11 = vsel %vm81_vm0, %v75_v8, 4286644096  ;;  %v975_v15 = vsel %vm403_vm1, %v2826_v4, -inf  ;;  %v58_v19 = vld [vmem:[%s4649_s0 + $0xa4] sm:$0xf] }
  0x22   :  { %4794 = vst [vmem:[#allocation26_spill] sm:$0xff] %v2841_v16  ;;  %v2849_v20 = vunpack.c.l.bf16 %v264_v9  ;;  %v271_v22 = vmax.bf16 %v269_v11, %v266_v10  ;;  %v147_v23 = vsel %vm81_vm0, %v26_v18, 4286644096  ;;  %v150_v25 = vsel %vm81_vm0, %v58_v19, 4286644096 }
  0x23   :  { %1024 = vmax.xlane.f32.xlu1 %v1023_v58  ;;  %v27_v26 = vld [vmem:[%s4649_s0 + $0x28] sm:$0xf]  ;;  %v152_v27 = vmax.bf16 %v150_v25, %v147_v23  ;;  %v978_v31 = vsel %vm403_vm1, %v2841_v16, -inf  ;;  %v44_v36 = vld [vmem:[%s4649_s0 + $0x6c] sm:$0xf] }
  0x24   :  { %4795 = vst [vmem:[#allocation27_spill] sm:$0xff] %v2849_v20  ;;  %v59_v28 = vld [vmem:[%s4649_s0 + $0xa8] sm:$0xf]  ;;  %v154_v29 = vsel %vm81_vm0, %v27_v26, 4286644096  ;;  %v1029_v32 = vsel %vm403_vm1, %v2849_v20, -inf  ;;  %v2868_v38 = vunpack.c.l.bf16 %v271_v22 }
  0x25   :  { %973 = vmax.xlane.f32.xlu0 %v972_v57  ;;  %v157_v35 = vsel %vm81_vm0, %v59_v28, 4286644096  ;;  %v2870_v39 = vunpack.c.l.bf16 %v152_v27  ;;  %v76_v41 = vld [vmem:[%s4649_s0 + $0xec] sm:$0xf]  ;;  %v273_v42 = vsel %vm81_vm0, %v44_v36, 4286644096 }
  0x26   :  { %4796 = vst [vmem:[#allocation28_spill] sm:$0xff] %v2868_v38  ;;  %v159_v40 = vmax.bf16 %v157_v35, %v154_v29  ;;  %v45_v44 = vld [vmem:[%s4649_s0 + $0x70] sm:$0xf]  ;;  %v276_v46 = vsel %vm81_vm0, %v76_v41, 4286644096  ;;  %v1032_v58 = vsel %vm403_vm1, %v2868_v38, -inf }
  0x27   :  { %976 = vmax.xlane.f32.xlu1 %v975_v15  ;;  %4797 = vst [vmem:[#allocation29_spill] sm:$0xff] %v2870_v39  ;;  %v77_v47 = vld [vmem:[%s4649_s0 + $0xf0] sm:$0xf]  ;;  %v278_v49 = vmax.bf16 %v276_v46, %v273_v42  ;;  %v280_v50 = vsel %vm81_vm0, %v45_v44, 4286644096  ;;  %v981_v55 = vsel %vm403_vm1, %v2870_v39, -inf }
  0x28   :  { %v2883_v48 = vunpack.c.l.bf16 %v159_v40  ;;  %v28_v53 = vld [vmem:[%s4649_s0 + $0x2c] sm:$0xf]  ;;  %v283_v56 = vsel %vm81_vm0, %v77_v47, 4286644096  ;;  %v29_v61 = vld [vmem:[%s4649_s0 + $0x30] sm:$0xf] }
  0x29   :  { %1027 = vmax.xlane.f32.xlu0 %v1026_v13  ;;  %v60_v54 = vld [vmem:[%s4649_s0 + $0xac] sm:$0xf]  ;;  %v161_v57 = vsel %vm81_vm0, %v28_v53, 4286644096  ;;  %v2898_v59 = vunpack.c.l.bf16 %v278_v49  ;;  %v285_v62 = vmax.bf16 %v283_v56, %v280_v50  ;;  %v61_v1 = vld [vmem:[%s4649_s0 + $0xb0] sm:$0xf] }
  0x2a   :  { %4798 = vst [vmem:[#allocation30_spill] sm:$0xff] %v2883_v48  ;;  %v164_v0 = vsel %vm81_vm0, %v60_v54, 4286644096  ;;  %v984_v2 = vsel %vm403_vm1, %v2883_v48, -inf  ;;  %v168_v7 = vsel %vm81_vm0, %v29_v61, 4286644096 }
  0x2b   :  { %1030 = vmax.xlane.f32.xlu1 %v1029_v32  ;;  %4799 = vst [vmem:[#allocation31_spill] sm:$0xff] %v2898_v59  ;;  %v1035_v5 = vsel %vm403_vm1, %v2898_v59, -inf  ;;  %v166_v6 = vmax.bf16 %v164_v0, %v161_v57  ;;  %v46_v8 = vld [vmem:[%s4649_s0 + $0x74] sm:$0xf]  ;;  %v171_v9 = vsel %vm81_vm0, %v61_v1, 4286644096  ;;  %v2920_v13 = vunpack.c.l.bf16 %v285_v62 }
  0x2c   :  { %v78_v10 = vld [vmem:[%s4649_s0 + $0xf4] sm:$0xf]  ;;  %v287_v11 = vsel %vm81_vm0, %v46_v8, 4286644096  ;;  %v173_v18 = vmax.bf16 %v171_v9, %v168_v7  ;;  %v47_v22 = vld [vmem:[%s4649_s0 + $0x78] sm:$0xf] }
  0x2d   :  { %979 = vmax.xlane.f32.xlu0 %v978_v31  ;;  %4800 = vst [vmem:[#allocation32_spill] sm:$0xff] %v2920_v13  ;;  %v2922_v15 = vunpack.c.l.bf16 %v166_v6  ;;  %v290_v19 = vsel %vm81_vm0, %v78_v10, 4286644096  ;;  %v79_v23 = vld [vmem:[%s4649_s0 + $0xf8] sm:$0xf]  ;;  %v1038_v40 = vsel %vm403_vm1, %v2920_v13, -inf }
  0x2e   :  { %v292_v25 = vmax.bf16 %v290_v19, %v287_v11  ;;  %v294_v26 = vsel %vm81_vm0, %v47_v22, 4286644096  ;;  %v297_v27 = vsel %vm81_vm0, %v79_v23, 4286644096  ;;  %v30_v28 = vld [vmem:[%s4649_s0 + $0x34] sm:$0xf]  ;;  %v2947_v41 = vunpack.c.l.bf16 %v173_v18 }
  0x2f   :  { %982 = vmax.xlane.f32.xlu1 %v981_v55  ;;  %4801 = vst [vmem:[#allocation33_spill] sm:$0xff] %v2922_v15  ;;  %v62_v29 = vld [vmem:[%s4649_s0 + $0xb4] sm:$0xf]  ;;  %v987_v31 = vsel %vm403_vm1, %v2922_v15, -inf  ;;  %v175_v35 = vsel %vm81_vm0, %v30_v28, 4286644096  ;;  %v299_v42 = vmax.bf16 %v297_v27, %v294_v26 }
  0x30   :  { %v2941_v32 = vunpack.c.l.bf16 %v292_v25  ;;  %v178_v36 = vsel %vm81_vm0, %v62_v29, 4286644096  ;;  %4803 = vst [vmem:[#allocation35_spill] sm:$0xff] %v2947_v41  ;;  %v31_v44 = vld [vmem:[%s4649_s0 + $0x38] sm:$0xf]  ;;  %v990_v61 = vsel %vm403_vm1, %v2947_v41, -inf }
  0x31   :  { %1033 = vmax.xlane.f32.xlu0 %v1032_v58  ;;  %v180_v46 = vmax.bf16 %v178_v36, %v175_v35  ;;  %v63_v47 = vld [vmem:[%s4649_s0 + $0xb8] sm:$0xf]  ;;  %v182_v49 = vsel %vm81_vm0, %v31_v44, 4286644096  ;;  %v48_v54 = vld [vmem:[%s4649_s0 + $0x7c] sm:$0xf]  ;;  %v2973_v62 = vunpack.c.l.bf16 %v299_v42 }
  0x32   :  { %4802 = vst [vmem:[#allocation34_spill] sm:$0xff] %v2941_v32  ;;  %v1041_v50 = vsel %vm403_vm1, %v2941_v32, -inf  ;;  %v185_v53 = vsel %vm81_vm0, %v63_v47, 4286644096  ;;  %v80_v56 = vld [vmem:[%s4649_s0 + $0xfc] sm:$0xf] }
  0x33   :  { %1036 = vmax.xlane.f32.xlu1 %v1035_v5  ;;  %v2962_v55 = vunpack.c.l.bf16 %v180_v46  ;;  %v301_v57 = vsel %vm81_vm0, %v48_v54, 4286644096  ;;  %v32_v58 = vld [vmem:[%s4649_s0 + $0x3c] sm:$0xf]  ;;  %4805 = vst [vmem:[#allocation37_spill] sm:$0xff] %v2973_v62  ;;  %v187_v0 = vmax.bf16 %v185_v53, %v182_v49 }
  0x34   :  { %v304_v1 = vsel %vm81_vm0, %v80_v56, 4286644096  ;;  %v189_v6 = vsel %vm81_vm0, %v32_v58, 4286644096 }
  0x35   :  { %985 = vmax.xlane.f32.xlu0 %v984_v2  ;;  %4804 = vst [vmem:[#allocation36_spill] sm:$0xff] %v2962_v55  ;;  %v64_v2 = vld [vmem:[%s4649_s0 + $0xbc] sm:$0xf]  ;;  %v306_v5 = vmax.bf16 %v304_v1, %v301_v57 }
  0x37   :  { %988 = vmax.xlane.f32.xlu1 %v987_v31 }
  0x39   :  { %1039 = vmax.xlane.f32.xlu0 %v1038_v40 }
  0x3a   :  { %11 = vsyncpa [#allocation5], 0  ;;  %v192_v7 = vsel %vm81_vm0, %v64_v2, 4286644096  ;;  %v993_v8 = vsel %vm403_vm1, %v2962_v55, -inf  ;;  %v2983_v9 = vunpack.c.l.bf16 %v306_v5  ;;  %v1044_v10 = vsel %vm403_vm1, %v2973_v62, -inf }
  0x3b   :  { %1042 = vmax.xlane.f32.xlu1 %v1041_v50  ;;  %v2987_v11 = vunpack.c.l.bf16 %v187_v0  ;;  %v194_v18 = vmax.bf16 %v192_v7, %v189_v6  ;;  %v4654_v26 = vlaneseq  ;;  %s2584_s8 = smov [#allocation2]  }
  0x3c   :  { %4806 = vst [vmem:[#allocation38_spill] sm:$0xff] %v2983_v9  ;;  %v1047_v19 = vsel %vm403_vm1, %v2983_v9, -inf  ;;  %s2139_s9 = sshll.u32 %s2584_s8, 4  ;;  %s2140_s9 = int_to_ptr.vmem [resolvable:$true] %s2139_s9 }
  0x3d   :  { %991 = vmax.xlane.f32.xlu0 %v990_v61  ;;  %4807 = vst [vmem:[#allocation39_spill] sm:$0xff] %v2987_v11  ;;  %v2991_v22 = vunpack.c.l.bf16 %v194_v18  ;;  %v996_v23 = vsel %vm403_vm1, %v2987_v11, -inf  ;;  %v2998_v27 = vand.u32 127, %v4654_v26  ;;  %s2512_s10 = scalar_lea.vmem %s2140_s9, 16  ;;  %s2516_s11 = scalar_lea.vmem %s2140_s9, 32 }
  0x3e   :  { %p2513_p0 = scmp.ne.s32.totalorder %s2140_s9, %s2512_s10  ;;  %p2517_p1 = scmp.lt.s32.totalorder %s2140_s9, %s2140_s9 }
  0x3f   :  { %994 = vmax.xlane.f32.xlu1 %v993_v8  ;;  %4808 = vst [vmem:[#allocation40_spill] sm:$0xff] %v2991_v22  ;;  %v999_v25 = vsel %vm403_vm1, %v2991_v22, -inf  ;;  %4809 = vst [vmem:[#allocation41_spill] sm:$0xff] %v2998_v27  ;;  %p2518_p2 = scmp.lt.s32.totalorder %s2516_s11, %s2512_s10 }
  0x41   :  { %1045 = vmax.xlane.f32.xlu0 %v1044_v10  ;;  %p2519_p3 = por %p2518_p2, %p2517_p1 }
  0x43   :  { %1048 = vmax.xlane.f32.xlu1 %v1047_v19  ;;  %p2520_p4 = pnand %p2519_p3, %p2513_p0 }
  0x45   :  { %997 = vmax.xlane.f32.xlu0 %v996_v23 }
  0x47   :  { %1000 = vmax.xlane.f32.xlu1 %v999_v25 }
  0x96   :  { %v1004_v28 = vpop.xlane.xlu0 %1003 }
  0x97   :  { %vm1066_vm2 = vcmp.eq.f32.partialorder %v2636_v12, %v1004_v28 }
  0x98   :  { %v1098_v29 = vsel %vm1066_vm2, %v2998_v27, 16  ;;  %v956_v31 = vpop.xlane.xlu1 %955 }
  0x99   :  { %v3003_v35 = vsel %vm403_vm1, %v1098_v29, 2147483647  ;;  %vm1050_vm3 = vcmp.eq.f32.partialorder %v2657_v24, %v956_v31 }
  0x9a   :  { %v1007_v36 = vpop.xlane.xlu0 %1006  ;;  %v1356_v40 = vshra.s32 %v3003_v35, 16  ;;  %v1082_v42 = vsel %vm1050_vm3, %v2998_v27, 16 }
  0x9b   :  { %vm1067_vm4 = vcmp.eq.f32.partialorder %v2651_v21, %v1007_v36  ;;  %v3011_v46 = vsel %vm403_vm1, %v1082_v42, 2147483647 }
  0x9c   :  { %v1099_v44 = vsel %vm1067_vm4, %v2998_v27, 16  ;;  %v3013_v47 = vcvt.s32.f32 %v1356_v40  ;;  %v959_v50 = vpop.xlane.xlu1 %958  ;;  %v1116_v53 = vshra.s32 %v3011_v46, 16 }
  0x9d   :  { %v3016_v49 = vsel %vm403_vm1, %v1099_v44, 2147483647  ;;  %vm1051_vm5 = vcmp.eq.f32.partialorder %v2678_v37, %v959_v50 }
  0x9e   :  { %v1010_v54 = vpop.xlane.xlu0 %1009  ;;  %1359 = vmin.xlane.f32.xlu0 %v3013_v47  ;;  %v1371_v56 = vshra.s32 %v3016_v49, 16  ;;  %v1083_v57 = vsel %vm1051_vm5, %v2998_v27, 16  ;;  %v3024_v58 = vcvt.s32.f32 %v1116_v53 }
  0x9f   :  { %vm1068_vm6 = vcmp.eq.f32.partialorder %v2672_v34, %v1010_v54  ;;  %v3028_v0 = vsel %vm403_vm1, %v1083_v57, 2147483647 }
  0xa0   :  { %v1100_v61 = vsel %vm1068_vm6, %v2998_v27, 16  ;;  %v3030_v1 = vcvt.s32.f32 %v1371_v56  ;;  %v1013_v5 = vpop.xlane.xlu1 %1012  ;;  %v1131_v6 = vshra.s32 %v3028_v0, 16 }
  0xa1   :  { %v3033_v2 = vsel %vm403_vm1, %v1100_v61, 2147483647  ;;  %vm1069_vm7 = vcmp.eq.f32.partialorder %v2704_v52, %v1013_v5 }
  0xa2   :  { %v962_v7 = vpop.xlane.xlu0 %961  ;;  %1374 = vmin.xlane.f32.xlu1 %v3030_v1  ;;  %1119 = vmin.xlane.f32.xlu0 %v3024_v58  ;;  %v1386_v8 = vshra.s32 %v3033_v2, 16  ;;  %v1101_v10 = vsel %vm1069_vm7, %v2998_v27, 16  ;;  %v3042_v18 = vcvt.s32.f32 %v1131_v6 }
  0xa3   :  { %vm1052_vm8 = vcmp.eq.f32.partialorder %v2692_v45, %v962_v7  ;;  %v3046_v23 = vsel %vm403_vm1, %v1101_v10, 2147483647 }
  0xa4   :  { %v1084_v19 = vsel %vm1052_vm8, %v2998_v27, 16  ;;  %v3048_v25 = vcvt.s32.f32 %v1386_v8  ;;  %v965_v29 = vpop.xlane.xlu1 %964  ;;  %v1401_v31 = vshra.s32 %v3046_v23, 16 }
  0xa5   :  { %v3051_v28 = vsel %vm403_vm1, %v1084_v19, 2147483647  ;;  %vm1053_vm9 = vcmp.eq.f32.partialorder %v2730_v3, %v965_v29 }
  0xa6   :  { %v1016_v36 = vpop.xlane.xlu0 %1015  ;;  %1389 = vmin.xlane.f32.xlu0 %v3048_v25  ;;  %1134 = vmin.xlane.f32.xlu1 %v3042_v18  ;;  %v1146_v40 = vshra.s32 %v3051_v28, 16  ;;  %v1085_v42 = vsel %vm1053_vm9, %v2998_v27, 16  ;;  %v3060_v44 = vcvt.s32.f32 %v1401_v31 }
  0xa7   :  { %vm1070_vm10 = vcmp.eq.f32.partialorder %v2719_v60, %v1016_v36  ;;  %v3064_v53 = vsel %vm403_vm1, %v1085_v42, 2147483647 }
  0xa8   :  { %v1102_v50 = vsel %vm1070_vm10, %v2998_v27, 16  ;;  %v3066_v54 = vcvt.s32.f32 %v1146_v40  ;;  %v1019_v57 = vpop.xlane.xlu1 %1018  ;;  %v1161_v61 = vshra.s32 %v3064_v53, 16 }
  0xa9   :  { %v3069_v56 = vsel %vm403_vm1, %v1102_v50, 2147483647  ;;  %vm1071_vm11 = vcmp.eq.f32.partialorder %v2753_v17, %v1019_v57 }
  0xaa   :  { %v968_v5 = vpop.xlane.xlu0 %967  ;;  %1149 = vmin.xlane.f32.xlu0 %v3066_v54  ;;  %1404 = vmin.xlane.f32.xlu1 %v3060_v44  ;;  %v1416_v6 = vshra.s32 %v3069_v56, 16  ;;  %v1103_v7 = vsel %vm1071_vm11, %v2998_v27, 16  ;;  %v3078_v8 = vcvt.s32.f32 %v1161_v61 }
  0xab   :  { %vm1054_vm12 = vcmp.eq.f32.partialorder %v2747_v14, %v968_v5  ;;  %v3082_v19 = vsel %vm403_vm1, %v1103_v7, 2147483647 }
  0xac   :  { %v1086_v10 = vsel %vm1054_vm12, %v2998_v27, 16  ;;  %v3084_v29 = vcvt.s32.f32 %v1416_v6  ;;  %v971_v36 = vpop.xlane.xlu1 %970  ;;  %v1431_v40 = vshra.s32 %v3082_v19, 16 }
  0xad   :  { %v3087_v31 = vsel %vm403_vm1, %v1086_v10, 2147483647  ;;  %vm1055_vm13 = vcmp.eq.f32.partialorder %v2777_v33, %v971_v36 }
  0xae   :  { %v1022_v42 = vpop.xlane.xlu0 %1021  ;;  %1419 = vmin.xlane.f32.xlu0 %v3084_v29  ;;  %1164 = vmin.xlane.f32.xlu1 %v3078_v8  ;;  %v1176_v50 = vshra.s32 %v3087_v31, 16  ;;  %v1087_v57 = vsel %vm1055_vm13, %v2998_v27, 16  ;;  %v3096_v61 = vcvt.s32.f32 %v1431_v40 }
  0xaf   :  { %vm1072_vm14 = vcmp.eq.f32.partialorder %v2773_v30, %v1022_v42  ;;  %v3100_v6 = vsel %vm403_vm1, %v1087_v57, 2147483647 }
  0xb0   :  { %v1104_v5 = vsel %vm1072_vm14, %v2998_v27, 16  ;;  %v3102_v7 = vcvt.s32.f32 %v1176_v50  ;;  %v1025_v26 = vpop.xlane.xlu1 %1024  ;;  %v1191_v36 = vshra.s32 %v3100_v6, 16 }
  0xb1   :  { %v3105_v10 = vsel %vm403_vm1, %v1104_v5, 2147483647  ;;  %vm1073_vm15 = vcmp.eq.f32.partialorder %v2802_v51, %v1025_v26 }
  0xb2   :  { %v974_v17 = vpop.xlane.xlu0 %973  ;;  %1179 = vmin.xlane.f32.xlu0 %v3102_v7  ;;  %1434 = vmin.xlane.f32.xlu1 %v3096_v61  ;;  %v1446_v40 = vshra.s32 %v3105_v10, 16  ;;  %v1105_v42 = vsel %vm1073_vm15, %v2998_v27, 16  ;;  %v3114_v50 = vcvt.s32.f32 %v1191_v36 }
  0xb3   :  { %vm1056_vm0 = vcmp.eq.f32.partialorder %v2790_v43, %v974_v17  ;;  %v3118_v5 = vsel %vm403_vm1, %v1105_v42, 2147483647 }
  0xb4   :  { %4810 = vst [vmem:[#allocation42_spill] sm:$0xff] %v3114_v50  ;;  %v1088_v57 = vsel %vm1056_vm0, %v2998_v27, 16  ;;  %v3120_v30 = vcvt.s32.f32 %v1446_v40  ;;  %v977_v21 = vpop.xlane.xlu1 %976  ;;  %v1461_v26 = vshra.s32 %v3118_v5, 16 }
  0xb5   :  { %v3123_v60 = vsel %vm403_vm1, %v1088_v57, 2147483647  ;;  %vm1057_vm2 = vcmp.eq.f32.partialorder %v2826_v4, %v977_v21 }
  0xb6   :  { %4811 = vst [vmem:[#allocation43_spill] sm:$0xff] %v3120_v30  ;;  %v1028_v51 = vpop.xlane.xlu0 %1027  ;;  %1449 = vmin.xlane.f32.xlu0 %v3120_v30  ;;  %1194 = vmin.xlane.f32.xlu1 %v3114_v50  ;;  %v1206_v17 = vshra.s32 %v3123_v60, 16  ;;  %v1089_v36 = vsel %vm1057_vm2, %v2998_v27, 16  ;;  %v3132_v40 = vcvt.s32.f32 %v1461_v26 }
  0xb7   :  { %vm1074_vm3 = vcmp.eq.f32.partialorder %v2819_v63, %v1028_v51  ;;  %v3136_v57 = vsel %vm403_vm1, %v1089_v36, 2147483647 }
  0xb8   :  { %4812 = vst [vmem:[#allocation44_spill] sm:$0xff] %v3132_v40  ;;  %v1106_v42 = vsel %vm1074_vm3, %v2998_v27, 16  ;;  %v3138_v12 = vcvt.s32.f32 %v1206_v17  ;;  %v1031_v34 = vpop.xlane.xlu1 %1030  ;;  %v1221_v21 = vshra.s32 %v3136_v57, 16 }
  0xb9   :  { %v3141_v52 = vsel %vm403_vm1, %v1106_v42, 2147483647  ;;  %vm1075_vm4 = vcmp.eq.f32.partialorder %v2849_v20, %v1031_v34 }
  0xba   :  { %4813 = vst [vmem:[#allocation45_spill] sm:$0xff] %v3138_v12  ;;  %v980_v45 = vpop.xlane.xlu0 %979  ;;  %1209 = vmin.xlane.f32.xlu0 %v3138_v12  ;;  %1464 = vmin.xlane.f32.xlu1 %v3132_v40  ;;  %v1476_v51 = vshra.s32 %v3141_v52, 16  ;;  %v1107_v26 = vsel %vm1075_vm4, %v2998_v27, 16  ;;  %v3150_v17 = vcvt.s32.f32 %v1221_v21  ;;  %vm500_vm4 = vcmp.gt.f32.partialorder %v2657_v24, 0.0 }
  0xbb   :  { %vm1058_vm5 = vcmp.eq.f32.partialorder %v2841_v16, %v980_v45  ;;  %v3154_v42 = vsel %vm403_vm1, %v1107_v26, 2147483647 }
  0xbc   :  { %4814 = vst [vmem:[#allocation46_spill] sm:$0xff] %v3150_v17  ;;  %v1090_v36 = vsel %vm1058_vm5, %v2998_v27, 16  ;;  %v3156_v63 = vcvt.s32.f32 %v1476_v51  ;;  %v983_v40 = vpop.xlane.xlu1 %982  ;;  %v1491_v34 = vshra.s32 %v3154_v42, 16  ;;  %vm501_vm5 = vcmp.gt.f32.partialorder %v2678_v37, 0.0 }
  0xbd   :  { %v3159_v12 = vsel %vm403_vm1, %v1090_v36, 2147483647  ;;  %vm1059_vm6 = vcmp.eq.f32.partialorder %v2870_v39, %v983_v40 }
  0xbe   :  { %4815 = vst [vmem:[#allocation47_spill] sm:$0xff] %v3156_v63  ;;  %v1034_v20 = vpop.xlane.xlu0 %1033  ;;  %1479 = vmin.xlane.f32.xlu0 %v3156_v63  ;;  %1224 = vmin.xlane.f32.xlu1 %v3150_v17  ;;  %v1236_v45 = vshra.s32 %v3159_v12, 16  ;;  %v1091_v21 = vsel %vm1059_vm6, %v2998_v27, 16  ;;  %v3168_v51 = vcvt.s32.f32 %v1491_v34  ;;  %vm504_vm6 = vcmp.gt.f32.partialorder %v2747_v14, 0.0 }
  0xbf   :  { %vm1076_vm7 = vcmp.eq.f32.partialorder %v2868_v38, %v1034_v20  ;;  %v3172_v36 = vsel %vm403_vm1, %v1091_v21, 2147483647 }
  0xc0   :  { %4816 = vst [vmem:[#allocation48_spill] sm:$0xff] %v3168_v51  ;;  %v1108_v26 = vsel %vm1076_vm7, %v2998_v27, 16  ;;  %v3174_v50 = vcvt.s32.f32 %v1236_v45  ;;  %v1037_v17 = vpop.xlane.xlu1 %1036  ;;  %v1251_v40 = vshra.s32 %v3172_v36, 16  ;;  %vm503_vm7 = vcmp.gt.f32.partialorder %v2730_v3, 0.0 }
  0xc1   :  { %v3177_v63 = vsel %vm403_vm1, %v1108_v26, 2147483647  ;;  %vm1077_vm8 = vcmp.eq.f32.partialorder %v2898_v59, %v1037_v17 }
  0xc2   :  { %4817 = vst [vmem:[#allocation49_spill] sm:$0xff] %v3174_v50  ;;  %v986_v30 = vpop.xlane.xlu0 %985  ;;  %1239 = vmin.xlane.f32.xlu0 %v3174_v50  ;;  %1494 = vmin.xlane.f32.xlu1 %v3168_v51  ;;  %v1506_v20 = vshra.s32 %v3177_v63, 16  ;;  %v1109_v34 = vsel %vm1077_vm8, %v2998_v27, 16  ;;  %v3186_v45 = vcvt.s32.f32 %v1251_v40 }
  0xc3   :  { %vm1060_vm9 = vcmp.eq.f32.partialorder %v2883_v48, %v986_v30  ;;  %v3190_v26 = vsel %vm403_vm1, %v1109_v34, 2147483647 }
  0xc4   :  { %4818 = vst [vmem:[#allocation50_spill] sm:$0xff] %v3186_v45  ;;  %v1092_v21 = vsel %vm1060_vm9, %v2998_v27, 16  ;;  %4819 = vst [vmem:[#allocation51_spill] sm:$0xff] %v3190_v26  ;;  %v3192_v38 = vcvt.s32.f32 %v1506_v20  ;;  %v989_v51 = vpop.xlane.xlu1 %988  ;;  %v1521_v17 = vshra.s32 %v3190_v26, 16  ;;  %vm505_vm9 = vcmp.gt.f32.partialorder %v2777_v33, 0.0 }
  0xc5   :  { %v3195_v50 = vsel %vm403_vm1, %v1092_v21, 2147483647  ;;  %vm1061_vm10 = vcmp.eq.f32.partialorder %v2922_v15, %v989_v51 }
  0xc6   :  { %4820 = vst [vmem:[#allocation52_spill] sm:$0xff] %v3192_v38  ;;  %4821 = vst [vmem:[#allocation53_spill] sm:$0xff] %v3195_v50  ;;  %v1040_v59 = vpop.xlane.xlu0 %1039  ;;  %1509 = vmin.xlane.f32.xlu0 %v3192_v38  ;;  %1254 = vmin.xlane.f32.xlu1 %v3186_v45  ;;  %v1266_v30 = vshra.s32 %v3195_v50, 16  ;;  %v1093_v40 = vsel %vm1061_vm10, %v2998_v27, 16  ;;  %v3204_v20 = vcvt.s32.f32 %v1521_v17  ;;  %vm506_vm10 = vcmp.gt.f32.partialorder %v2790_v43, 0.0 }
  0xc7   :  { %vm1078_vm11 = vcmp.eq.f32.partialorder %v2920_v13, %v1040_v59  ;;  %v3208_v21 = vsel %vm403_vm1, %v1093_v40, 2147483647  ;;  %v4834_v43 = vmov 0.0  }
  0xc8   :  { %4822 = vst [vmem:[#allocation54_spill] sm:$0xff] %v3204_v20  ;;  %v1110_v34 = vsel %vm1078_vm11, %v2998_v27, 16  ;;  %v3210_v26 = vcvt.s32.f32 %v1266_v30  ;;  %v1043_v45 = vpop.xlane.xlu1 %1042  ;;  %v1281_v51 = vshra.s32 %v3208_v21, 16  ;;  %vm507_vm11 = vcmp.gt.f32.partialorder %v2826_v4, 0.0 }
  0xc9   :  { %v3213_v38 = vsel %vm403_vm1, %v1110_v34, 2147483647  ;;  %vm1079_vm12 = vcmp.eq.f32.partialorder %v2941_v32, %v1043_v45  ;;  %v1145_v4 = vand.u32 65535, %v3051_v28 }
  0xca   :  { %4823 = vst [vmem:[#allocation55_spill] sm:$0xff] %v3210_v26  ;;  %v992_v50 = vpop.xlane.xlu0 %991  ;;  %1269 = vmin.xlane.f32.xlu0 %v3210_v26  ;;  %1524 = vmin.xlane.f32.xlu1 %v3204_v20  ;;  %v1536_v59 = vshra.s32 %v3213_v38, 16  ;;  %v1111_v17 = vsel %vm1079_vm12, %v2998_v27, 16  ;;  %v3222_v30 = vcvt.s32.f32 %v1281_v51  ;;  %vm508_vm12 = vcmp.gt.f32.partialorder %v2841_v16, 0.0 }
  0xcb   :  { %vm1062_vm13 = vcmp.eq.f32.partialorder %v2947_v41, %v992_v50  ;;  %v3226_v34 = vsel %vm403_vm1, %v1111_v17, 2147483647 }
  0xcc   :  { %4824 = vst [vmem:[#allocation56_spill] sm:$0xff] %v3222_v30  ;;  %v1094_v40 = vsel %vm1062_vm13, %v2998_v27, 16  ;;  %4825 = vst [vmem:[#allocation57_spill] sm:$0xff] %v3226_v34  ;;  %v3228_v13 = vcvt.s32.f32 %v1536_v59  ;;  %v995_v20 = vpop.xlane.xlu1 %994  ;;  %v1551_v45 = vshra.s32 %v3226_v34, 16 }
  0xcd   :  { %v3231_v26 = vsel %vm403_vm1, %v1094_v40, 2147483647  ;;  %vm1063_vm14 = vcmp.eq.f32.partialorder %v2962_v55, %v995_v20 }
  0xce   :  { %4826 = vst [vmem:[#allocation58_spill] sm:$0xff] %v3228_v13  ;;  %4827 = vst [vmem:[#allocation59_spill] sm:$0xff] %v3231_v26  ;;  %v1046_v32 = vpop.xlane.xlu0 %1045  ;;  %1539 = vmin.xlane.f32.xlu0 %v3228_v13  ;;  %1284 = vmin.xlane.f32.xlu1 %v3222_v30  ;;  %v1296_v50 = vshra.s32 %v3231_v26, 16  ;;  %v1095_v51 = vsel %vm1063_vm14, %v2998_v27, 16  ;;  %v3240_v59 = vcvt.s32.f32 %v1551_v45 }
  0xcf   :  { %vm1080_vm15 = vcmp.eq.f32.partialorder %v2973_v62, %v1046_v32  ;;  %v3244_v40 = vsel %vm403_vm1, %v1095_v51, 2147483647 }
  0xd0   :  { %4828 = vst [vmem:[#allocation60_spill] sm:$0xff] %v3240_v59  ;;  %v1112_v17 = vsel %vm1080_vm15, %v2998_v27, 16  ;;  %v3246_v34 = vcvt.s32.f32 %v1296_v50  ;;  %v1049_v30 = vpop.xlane.xlu1 %1048  ;;  %v1311_v20 = vshra.s32 %v3244_v40, 16  ;;  %vm509_vm15 = vcmp.gt.f32.partialorder %v2870_v39, 0.0 }
  0xd1   :  { %v3249_v13 = vsel %vm403_vm1, %v1112_v17, 2147483647  ;;  %vm1081_vm0 = vcmp.eq.f32.partialorder %v2983_v9, %v1049_v30 }
  0xd2   :  { %4829 = vst [vmem:[#allocation61_spill] sm:$0xff] %v3246_v34  ;;  %v998_v26 = vpop.xlane.xlu0 %997  ;;  %1299 = vmin.xlane.f32.xlu0 %v3246_v34  ;;  %1554 = vmin.xlane.f32.xlu1 %v3240_v59  ;;  %v1566_v32 = vshra.s32 %v3249_v13, 16  ;;  %v1113_v45 = vsel %vm1081_vm0, %v2998_v27, 16  ;;  %v3258_v50 = vcvt.s32.f32 %v1311_v20  ;;  %vm510_vm0 = vcmp.gt.f32.partialorder %v2883_v48, 0.0 }
  0xd3   :  { %vm1064_vm2 = vcmp.eq.f32.partialorder %v2987_v11, %v998_v26  ;;  %v3262_v17 = vsel %vm403_vm1, %v1113_v45, 2147483647 }
  0xd4   :  { %4830 = vst [vmem:[#allocation62_spill] sm:$0xff] %v3258_v50  ;;  %v1096_v51 = vsel %vm1064_vm2, %v2998_v27, 16  ;;  %v3264_v62 = vcvt.s32.f32 %v1566_v32  ;;  %v1001_v59 = vpop.xlane.xlu1 %1000  ;;  %v1581_v30 = vshra.s32 %v3262_v17, 16 }
  0xd5   :  { %v3267_v34 = vsel %vm403_vm1, %v1096_v51, 2147483647  ;;  %vm1065_vm3 = vcmp.eq.f32.partialorder %v2991_v22, %v1001_v59  ;;  %v1355_v59 = vand.u32 65535, %v3003_v35 }
  0xd6   :  { %1569 = vmin.xlane.f32.xlu0 %v3264_v62  ;;  %1314 = vmin.xlane.f32.xlu1 %v3258_v50  ;;  %v1326_v26 = vshra.s32 %v3267_v34, 16  ;;  %v1097_v20 = vsel %vm1065_vm3, %v2998_v27, 16  ;;  %v3275_v45 = vcvt.s32.f32 %v1581_v30  ;;  %v4719_v30 = vmov 0.0  }
  0xd7   :  { %v3278_v32 = vsel %vm403_vm1, %v1097_v20, 2147483647  ;;  %v1115_v27 = vand.u32 65535, %v3011_v46  ;;  %v3305_v37 = vsel %vm501_vm5, 1.0, %v4719_v30  ;;  %v3310_v14 = vsel %vm504_vm6, 1.0, %v4719_v30 }
  0xd8   :  { %v3280_v51 = vcvt.s32.f32 %v1326_v26  ;;  %v1341_v9 = vshra.s32 %v3278_v32, 16  ;;  %v3292_v26 = vsel %vm500_vm4, 1.0, %v4719_v30  ;;  %4833 = vst [vmem:[#allocation65_spill] sm:$0xff] %v3310_v14  ;;  %vm511_vm4 = vcmp.gt.f32.partialorder %v2922_v15, 0.0 }
  0xd9   :  { %4832 = vst [vmem:[#allocation64_spill] sm:$0xff] %v3292_v26  ;;  %v3302_v35 = vsel %vm403_vm1, %v3292_v26, 0.0  ;;  %v1117_v33 = vcvt.s32.f32 %v1115_v27  ;;  %v3330_v26 = vsel %vm505_vm9, 1.0, %v4834_v43  ;;  %vm512_vm5 = vcmp.gt.f32.partialorder %v2947_v41, 0.0 }
  0xda   :  { %1329 = vmin.xlane.f32.xlu0 %v3280_v51  ;;  %1584 = vmin.xlane.f32.xlu1 %v3275_v45  ;;  %v3285_v50 = vcvt.s32.f32 %v1341_v9  ;;  %v1357_v9 = vcvt.s32.f32 %v1355_v59  ;;  %v3319_v59 = vsel %vm403_vm1, %v3310_v14, 0.0  ;;  %4835 = vst [vmem:[#allocation66_spill] sm:$0xff] %v3330_v26  ;;  %v3333_v14 = vsel %vm506_vm10, 1.0, %v4834_v43 }
  0xdb   :  { %4836 = vst [vmem:[#allocation67_spill] sm:$0xff] %v3333_v14  ;;  %v3341_v27 = vsel %vm403_vm1, %v3330_v26, 0.0  ;;  %v1400_v26 = vand.u32 65535, %v3046_v23  ;;  %vm513_vm6 = vcmp.gt.f32.partialorder %v2962_v55, 0.0  ;;  %vm514_vm9 = vcmp.gt.f32.partialorder %v2987_v11, 0.0 }
  0xdc   :  { %4831 = vst [vmem:[#allocation63_spill] sm:$0xff] %v3285_v50  ;;  %v3423_v55 = vsel %vm513_vm6, 1.0, %v4834_v43  ;;  %v1490_v11 = vand.u32 65535, %v3154_v42 }
  0xdd   :  { %4843 = vst [vmem:[#allocation74_spill] sm:$0xff] %v3423_v55 }
  0xde   :  { %1344 = vmin.xlane.f32.xlu1 %v3285_v50  ;;  %v1370_v50 = vand.u32 65535, %v3016_v49  ;;  %v3315_v49 = vsel %vm503_vm7, 1.0, %v4719_v30  ;;  %v1130_v30 = vand.u32 65535, %v3028_v0 }
  0xe0   :  { %v1372_v24 = vcvt.s32.f32 %v1370_v50 }
 0x12b   :  { %v3296_v20 = vpop.xlane.xlu0 %1359 }
 0x12c   :  { %vm1361_vm8 = vcmp.eq.f32.partialorder %v3013_v47, %v3296_v20 }
 0x12d   :  { %v1362_v46 = vsel %vm1361_vm8, %v1357_v9, inf  ;;  %v1385_v9 = vand.u32 65535, %v3033_v2  ;;  %v3345_v2 = vsel %vm403_vm1, %v3333_v14, 0.0  ;;  %v1132_v14 = vcvt.s32.f32 %v1130_v30 }
 0x12e   :  { %1363 = vmin.xlane.f32.xlu0 %v1362_v46  ;;  %v3350_v46 = vsel %vm507_vm11, 1.0, %v4834_v43  ;;  %v3378_v30 = vsel %vm509_vm15, 1.0, %v4834_v43 }
 0x12f   :  { %v3323_v47 = vpop.xlane.xlu0 %1119  ;;  %v3325_v3 = vpop.xlane.xlu1 %1374  ;;  %4837 = vst [vmem:[#allocation68_spill] sm:$0xff] %v3350_v46  ;;  %v3367_v16 = vsel %vm403_vm1, %v3350_v46, 0.0  ;;  %4839 = vst [vmem:[#allocation70_spill] sm:$0xff] %v3378_v30 }
 0x130   :  { %vm1121_vm13 = vcmp.eq.f32.partialorder %v3024_v58, %v3323_v47  ;;  %vm1376_vm14 = vcmp.eq.f32.partialorder %v3030_v1, %v3325_v3  ;;  %v3355_v58 = vsel %vm508_vm12, 1.0, %v4834_v43 }
 0x131   :  { %v1122_v0 = vsel %vm1121_vm13, %v1117_v33, inf  ;;  %v1377_v50 = vsel %vm1376_vm14, %v1372_v24, inf  ;;  %4838 = vst [vmem:[#allocation69_spill] sm:$0xff] %v3355_v58  ;;  %v1387_v24 = vcvt.s32.f32 %v1385_v9  ;;  %v3371_v39 = vsel %vm403_vm1, %v3355_v58, 0.0 }
 0x132   :  { %1123 = vmin.xlane.f32.xlu0 %v1122_v0  ;;  %1378 = vmin.xlane.f32.xlu1 %v1377_v50  ;;  %v3383_v9 = vsel %vm403_vm1, %v3378_v30, 0.0  ;;  %v3388_v0 = vsel %vm510_vm0, 1.0, %v4834_v43  ;;  %v1147_v50 = vcvt.s32.f32 %v1145_v4  ;;  %v1415_v30 = vand.u32 65535, %v3069_v56 }
 0x133   :  { %v3359_v1 = vpop.xlane.xlu0 %1389  ;;  %v3361_v33 = vpop.xlane.xlu1 %1134  ;;  %4840 = vst [vmem:[#allocation71_spill] sm:$0xff] %v3388_v0  ;;  %v3400_v48 = vsel %vm403_vm1, %v3388_v0, 0.0  ;;  %v1565_v58 = vand.u32 65535, %v3249_v13  ;;  %v4851_v13 = vld [vmem:[#allocation44_spill] sm:$0xff] }
 0x134   :  { %vm1391_vm2 = vcmp.eq.f32.partialorder %v3048_v25, %v3359_v1  ;;  %vm1136_vm3 = vcmp.eq.f32.partialorder %v3042_v18, %v3361_v33  ;;  %v1160_v18 = vand.u32 65535, %v3064_v53  ;;  %v3416_v53 = vsel %vm512_vm5, 1.0, %v4834_v43 }
 0x135   :  { %v1392_v23 = vsel %vm1391_vm2, %v1387_v24, inf  ;;  %v1137_v28 = vsel %vm1136_vm3, %v1132_v14, inf  ;;  %v1402_v24 = vcvt.s32.f32 %v1400_v26  ;;  %4842 = vst [vmem:[#allocation73_spill] sm:$0xff] %v3416_v53  ;;  %v1417_v15 = vcvt.s32.f32 %v1415_v30 }
 0x136   :  { %1393 = vmin.xlane.f32.xlu0 %v1392_v23  ;;  %1138 = vmin.xlane.f32.xlu1 %v1137_v28  ;;  %v3405_v23 = vsel %vm511_vm4, 1.0, %v4834_v43  ;;  %v3420_v28 = vsel %vm403_vm1, %v3416_v53, 0.0  ;;  %v1190_v53 = vand.u32 65535, %v3100_v6  ;;  %v3443_v30 = vsel %vm514_vm9, 1.0, %v4834_v43 }
 0x137   :  { %v3393_v25 = vpop.xlane.xlu0 %1149  ;;  %v3395_v14 = vpop.xlane.xlu1 %1404  ;;  %4841 = vst [vmem:[#allocation72_spill] sm:$0xff] %v3405_v23  ;;  %v3413_v4 = vsel %vm403_vm1, %v3405_v23, 0.0  ;;  %v3435_v23 = vsel %vm403_vm1, %v3423_v55, 0.0  ;;  %v1205_v6 = vand.u32 65535, %v3123_v60  ;;  %v1250_v60 = vand.u32 65535, %v3172_v36 }
 0x138   :  { %vm1151_vm7 = vcmp.eq.f32.partialorder %v3066_v54, %v3393_v25  ;;  %vm1406_vm8 = vcmp.eq.f32.partialorder %v3060_v44, %v3395_v14  ;;  %v1162_v44 = vcvt.s32.f32 %v1160_v18  ;;  %v1445_v18 = vand.u32 65535, %v3105_v10 }
 0x139   :  { %v1152_v56 = vsel %vm1151_vm7, %v1147_v50, inf  ;;  %v1407_v26 = vsel %vm1406_vm8, %v1402_v24, inf  ;;  %v1175_v50 = vand.u32 65535, %v3087_v31  ;;  %v1430_v24 = vand.u32 65535, %v3082_v19 }
 0x13a   :  { %1153 = vmin.xlane.f32.xlu0 %v1152_v56  ;;  %1408 = vmin.xlane.f32.xlu1 %v1407_v26  ;;  %v1460_v19 = vand.u32 65535, %v3118_v5  ;;  %v1475_v26 = vand.u32 65535, %v3141_v52  ;;  %v1447_v52 = vcvt.s32.f32 %v1445_v18  ;;  %v4844_v18 = vld [vmem:[#allocation53_spill] sm:$0xff] }
 0x13b   :  { %v3426_v54 = vpop.xlane.xlu0 %1419  ;;  %v3428_v41 = vpop.xlane.xlu1 %1164  ;;  %v1177_v55 = vcvt.s32.f32 %v1175_v50  ;;  %v1432_v0 = vcvt.s32.f32 %v1430_v24  ;;  %v1207_v50 = vcvt.s32.f32 %v1205_v6  ;;  %v1265_v36 = vand.u32 65535, %v4844_v18  ;;  %v4847_v6 = vld [vmem:[#allocation42_spill] sm:$0xff] }
 0x13c   :  { %vm1421_vm10 = vcmp.eq.f32.partialorder %v3084_v29, %v3426_v54  ;;  %vm1166_vm11 = vcmp.eq.f32.partialorder %v3078_v8, %v3428_v41  ;;  %v1220_v29 = vand.u32 65535, %v3136_v57  ;;  %v1462_v42 = vcvt.s32.f32 %v1460_v19 }
 0x13d   :  { %v1422_v31 = vsel %vm1421_vm10, %v1417_v15, inf  ;;  %v1167_v56 = vsel %vm1166_vm11, %v1162_v44, inf  ;;  %v1192_v15 = vcvt.s32.f32 %v1190_v53  ;;  %v1235_v44 = vand.u32 65535, %v3159_v12 }
 0x13e   :  { %1423 = vmin.xlane.f32.xlu0 %v1422_v31  ;;  %1168 = vmin.xlane.f32.xlu1 %v1167_v56  ;;  %v1505_v31 = vand.u32 65535, %v3177_v63  ;;  %v1477_v53 = vcvt.s32.f32 %v1475_v26  ;;  %v1222_v24 = vcvt.s32.f32 %v1220_v29  ;;  %v3461_v12 = vcvt.s32.f32 %v1490_v11  ;;  %v4846_v63 = vld [vmem:[#allocation43_spill] sm:$0xff] }
 0x13f   :  { %v3450_v8 = vpop.xlane.xlu0 %1179  ;;  %v3452_v10 = vpop.xlane.xlu1 %1434  ;;  %v1280_v19 = vand.u32 65535, %v3208_v21  ;;  %v3476_v11 = vcvt.s32.f32 %v1250_v60  ;;  %v1535_v26 = vand.u32 65535, %v3213_v38  ;;  %v3490_v38 = vcvt.s32.f32 %v1265_v36 }
 0x140   :  { %vm1181_vm12 = vcmp.eq.f32.partialorder %v3102_v7, %v3450_v8  ;;  %vm1436_vm13 = vcmp.eq.f32.partialorder %v3096_v61, %v3452_v10  ;;  %v3467_v61 = vcvt.s32.f32 %v1235_v44  ;;  %v3479_v44 = vcvt.s32.f32 %v1505_v31 }
 0x141   :  { %v1182_v5 = vsel %vm1181_vm12, %v1177_v55, inf  ;;  %v1437_v57 = vsel %vm1436_vm13, %v1432_v0, inf  ;;  %v4845_v55 = vld [vmem:[#allocation51_spill] sm:$0xff]  ;;  %v1325_v31 = vand.u32 65535, %v3267_v34  ;;  %v3509_v34 = vcvt.s32.f32 %v1565_v58 }
 0x142   :  { %1183 = vmin.xlane.f32.xlu0 %v1182_v5  ;;  %1438 = vmin.xlane.f32.xlu1 %v1437_v57  ;;  %v1520_v0 = vand.u32 65535, %v4845_v55  ;;  %v4848_v57 = vld [vmem:[#allocation57_spill] sm:$0xff]  ;;  %v4849_v55 = vld [vmem:[#allocation59_spill] sm:$0xff] }
 0x143   :  { %v3463_v56 = vpop.xlane.xlu0 %1449  ;;  %v3465_v7 = vpop.xlane.xlu1 %1194  ;;  %v1550_v18 = vand.u32 65535, %v4848_v57  ;;  %v1295_v21 = vand.u32 65535, %v4849_v55  ;;  %v4853_v58 = vld [vmem:[#allocation47_spill] sm:$0xff] }
 0x144   :  { %vm1451_vm14 = vcmp.eq.f32.partialorder %v4846_v63, %v3463_v56  ;;  %vm1196_vm15 = vcmp.eq.f32.partialorder %v4847_v6, %v3465_v7  ;;  %v1310_v63 = vand.u32 65535, %v3244_v40  ;;  %v1580_v6 = vand.u32 65535, %v3262_v17 }
 0x145   :  { %v1452_v29 = vsel %vm1451_vm14, %v1447_v52, inf  ;;  %v1197_v5 = vsel %vm1196_vm15, %v1192_v15, inf  ;;  %v3492_v15 = vcvt.s32.f32 %v1520_v0  ;;  %v3494_v52 = vcvt.s32.f32 %v1280_v19 }
 0x146   :  { %1453 = vmin.xlane.f32.xlu0 %v1452_v29  ;;  %1198 = vmin.xlane.f32.xlu1 %v1197_v5  ;;  %v4850_v29 = vld [vmem:[#allocation45_spill] sm:$0xff]  ;;  %v3501_v40 = vcvt.s32.f32 %v1535_v26  ;;  %v1340_v17 = vand.u32 65535, %v3278_v32  ;;  %v1366_v5 = vcvt.f32.s32 %v3296_v20  ;;  %v3505_v0 = vcvt.s32.f32 %v1550_v18 }
 0x147   :  { %v3486_v60 = vpop.xlane.xlu0 %1209  ;;  %v3488_v46 = vpop.xlane.xlu1 %1464  ;;  %v3507_v19 = vcvt.s32.f32 %v1295_v21  ;;  %v3511_v55 = vcvt.s32.f32 %v1310_v63  ;;  %v1126_v26 = vcvt.f32.s32 %v3323_v47  ;;  %v1381_v32 = vcvt.f32.s32 %v3325_v3  ;;  %v4854_v21 = vld [vmem:[#allocation46_spill] sm:$0xff] }
 0x148   :  { %vm1211_vm0 = vcmp.eq.f32.partialorder %v4850_v29, %v3486_v60  ;;  %vm1466_vm2 = vcmp.eq.f32.partialorder %v4851_v13, %v3488_v46  ;;  %v3513_v29 = vcvt.s32.f32 %v1580_v6  ;;  %v1396_v18 = vcvt.f32.s32 %v3359_v1 }
 0x149   :  { %v1212_v36 = vsel %vm1211_vm0, %v1207_v50, inf  ;;  %v1467_v57 = vsel %vm1466_vm2, %v1462_v42, inf  ;;  %v3521_v42 = vcvt.s32.f32 %v1325_v31  ;;  %v4852_v50 = vld [vmem:[#allocation14_spill] sm:$0xff]  ;;  %v3529_v63 = vcvt.s32.f32 %v1340_v17 }
 0x14a   :  { %1213 = vmin.xlane.f32.xlu0 %v1212_v36  ;;  %1468 = vmin.xlane.f32.xlu1 %v1467_v57  ;;  %vm502_vm3 = vcmp.gt.f32.partialorder %v4852_v50, 0.0  ;;  %v3531_v47 = vshll.u32 %v1366_v5, 16  ;;  %v1141_v3 = vcvt.f32.s32 %v3361_v33  ;;  %v1156_v31 = vcvt.f32.s32 %v3393_v25 }
 0x14b   :  { %v3517_v13 = vpop.xlane.xlu0 %1479  ;;  %v3519_v20 = vpop.xlane.xlu1 %1224  ;;  %v1411_v57 = vcvt.f32.s32 %v3395_v14  ;;  %v3537_v1 = vsel %vm502_vm3, 1.0, %v4834_v43  ;;  %v3541_v17 = vshll.u32 %v1126_v26, 16  ;;  %v3543_v5 = vshll.u32 %v1381_v32, 16  ;;  %v357_v26 = vld [vmem:[%s4650_s1 + $0x90] sm:$0xff] }
 0x14c   :  { %vm1481_vm4 = vcmp.eq.f32.partialorder %v4853_v58, %v3517_v13  ;;  %vm1226_vm5 = vcmp.eq.f32.partialorder %v4854_v21, %v3519_v20  ;;  %v797_v58 = vsel %vm403_vm1, %v3305_v37, 0.0  ;;  %v799_v25 = vsel %vm403_vm1, %v3537_v1, 0.0 }
 0x14d   :  { %v1482_v6 = vsel %vm1481_vm4, %v1477_v53, inf  ;;  %v1227_v36 = vsel %vm1226_vm5, %v1222_v24, inf  ;;  %4855 = vst [vmem:[#allocation53_spill] sm:$0xff] %v3541_v17  ;;  %4856 = vst [vmem:[#allocation51_spill] sm:$0xff] %v3543_v5  ;;  %v798_v14 = vadd.f32 %v797_v58, %v3302_v35  ;;  %v3552_v53 = vshll.u32 %v1396_v18, 16  ;;  %v4858_v24 = vld [vmem:[#allocation49_spill] sm:$0xff] }
 0x14e   :  { %1483 = vmin.xlane.f32.xlu0 %v1482_v6  ;;  %1228 = vmin.xlane.f32.xlu1 %v1227_v36  ;;  %v4859_v6 = vld [vmem:[#allocation48_spill] sm:$0xff]  ;;  %v801_v32 = vsel %vm403_vm1, %v3315_v49, 0.0  ;;  %v3563_v36 = vshll.u32 %v1141_v3, 16  ;;  %v389_v18 = vld [vmem:[%s4650_s1 + $0x190] sm:$0xff]  ;;  %v1426_v3 = vcvt.f32.s32 %v3426_v54  ;;  %v1441_v5 = vcvt.f32.s32 %v3452_v10 }
 0x14f   :  { %v3545_v21 = vpop.xlane.xlu0 %1239  ;;  %v3547_v33 = vpop.xlane.xlu1 %1494  ;;  %4857 = vst [vmem:[#allocation43_spill] sm:$0xff] %v3552_v53  ;;  %v341_v58 = vld [vmem:[%s4650_s1 + $0x10] sm:$0xff]  ;;  %v3575_v53 = vshll.u32 %v1411_v57, 16  ;;  %v458_v57 = vsel %vm403_vm1, %v357_v26, -inf  ;;  %v387_v54 = vld [vmem:[%s4650_s1 + $0x180] sm:$0xff]  ;;  %v459_v10 = vsel %vm403_vm1, %v389_v18, -inf }
 0x150   :  { %vm1241_vm6 = vcmp.eq.f32.partialorder %v4858_v24, %v3545_v21  ;;  %vm1496_vm7 = vcmp.eq.f32.partialorder %v4859_v6, %v3547_v33  ;;  %4860 = vst [vmem:[#allocation42_spill] sm:$0xff] %v3563_v36  ;;  %v800_v24 = vadd.f32 %v799_v25, %v798_v14  ;;  %v3573_v6 = vshll.u32 %v1156_v31, 16 }
 0x151   :  { %v1242_v50 = vsel %vm1241_vm6, %v3467_v61, inf  ;;  %v1497_v35 = vsel %vm1496_vm7, %v3461_v12, inf  ;;  %4862 = vst [vmem:[#allocation59_spill] sm:$0xff] %v3575_v53  ;;  %v1171_v36 = vcvt.f32.s32 %v3428_v41  ;;  %v373_v12 = vld [vmem:[%s4650_s1 + $0x110] sm:$0xff]  ;;  %v1186_v61 = vcvt.f32.s32 %v3450_v8  ;;  %v355_v41 = vld [vmem:[%s4650_s1 + $0x80] sm:$0xff] }
 0x152   :  { %4861 = vst [vmem:[#allocation57_spill] sm:$0xff] %v3573_v6  ;;  %1243 = vmin.xlane.f32.xlu0 %v1242_v50  ;;  %1498 = vmin.xlane.f32.xlu1 %v1497_v35  ;;  %v802_v25 = vadd.f32 %v801_v32, %v800_v24  ;;  %v4863_v50 = vld [vmem:[#allocation52_spill] sm:$0xff]  ;;  %v4864_v8 = vld [vmem:[#allocation50_spill] sm:$0xff]  ;;  %v410_v14 = vsel %vm403_vm1, %v341_v58, -inf  ;;  %v411_v35 = vsel %vm403_vm1, %v373_v12, -inf  ;;  %v3605_v53 = vshll.u32 %v1426_v3, 16 }
 0x153   :  { %v3584_v17 = vpop.xlane.xlu0 %1509  ;;  %v3586_v31 = vpop.xlane.xlu1 %1254  ;;  %v3607_v6 = vshll.u32 %v1171_v36, 16  ;;  %v453_v18 = vsel %vm403_vm1, %v387_v54, -inf  ;;  %v3613_v58 = vshll.u32 %v1441_v5, 16  ;;  %v356_v36 = vld [vmem:[%s4650_s1 + $0x88] sm:$0xff]  ;;  %v4866_v3 = vld [vmem:[#allocation55_spill] sm:$0xff]  ;;  %v3628_v5 = vmax.f32 %v458_v57, %v459_v10  ;;  %v4868_v54 = vld [vmem:[#allocation12_spill] sm:$0xff] }
 0x154   :  { %vm1511_vm8 = vcmp.eq.f32.partialorder %v4863_v50, %v3584_v17  ;;  %vm1256_vm9 = vcmp.eq.f32.partialorder %v4864_v8, %v3586_v31  ;;  %v804_v24 = vadd.f32 %v3319_v59, %v802_v25  ;;  %v452_v50 = vsel %vm403_vm1, %v355_v41, -inf }
 0x155   :  { %v1512_v26 = vsel %vm1511_vm8, %v3479_v44, inf  ;;  %v1257_v32 = vsel %vm1256_vm9, %v3476_v11, inf  ;;  %v3611_v8 = vshll.u32 %v1186_v61, 16  ;;  %4865 = vst [vmem:[#allocation45_spill] sm:$0xff] %v3613_v58  ;;  %v1456_v11 = vcvt.f32.s32 %v3463_v56  ;;  %v4867_v61 = vld [vmem:[#allocation54_spill] sm:$0xff] }
 0x156   :  { %1513 = vmin.xlane.f32.xlu0 %v1512_v26  ;;  %1258 = vmin.xlane.f32.xlu1 %v1257_v32  ;;  %v806_v59 = vadd.f32 %v3341_v27, %v804_v24  ;;  %v3630_v25 = vmax.f32 %v410_v14, %v411_v35  ;;  %vm518_vm12 = vcmp.gt.f32.partialorder %v4868_v54, 0.0  ;;  %v1201_v26 = vcvt.f32.s32 %v3465_v7  ;;  %v388_v35 = vld [vmem:[%s4650_s1 + $0x188] sm:$0xff]  ;;  %v339_v24 = vld [vmem:[%s4650_s1] sm:$0xff] }
 0x157   :  { %v3616_v44 = vpop.xlane.xlu0 %1269  ;;  %v3618_v12 = vpop.xlane.xlu1 %1524  ;;  %vm614_vm13 = vcmp.gt.f32.partialorder %v3628_v5, 0.5  ;;  %v3638_v32 = vmax.f32 %v452_v50, %v453_v18  ;;  %v3641_v57 = vsel %vm403_vm1, %v356_v36, -inf  ;;  %v3643_v10 = vshll.u32 %v1456_v11, 16  ;;  %v4872_v50 = vld [vmem:[#allocation58_spill] sm:$0xff] }
 0x158   :  { %vm1271_vm10 = vcmp.eq.f32.partialorder %v4866_v3, %v3616_v44  ;;  %vm1526_vm11 = vcmp.eq.f32.partialorder %v4867_v61, %v3618_v12  ;;  %v808_v27 = vadd.f32 %v3345_v2, %v806_v59  ;;  %vm598_vm0 = vcmp.gt.f32.partialorder %v3630_v25, 0.5 }
 0x159   :  { %v1272_v56 = vsel %vm1271_vm10, %v3490_v38, inf  ;;  %v1527_v41 = vsel %vm1526_vm11, %v3492_v15, inf  ;;  %4869 = vst [vmem:[#allocation44_spill] sm:$0xff] %v3643_v10  ;;  %v1216_v38 = vcvt.f32.s32 %v3486_v60  ;;  %v1471_v15 = vcvt.f32.s32 %v3488_v46  ;;  %v4873_v60 = vld [vmem:[#allocation56_spill] sm:$0xff] }
 0x15a   :  { %1273 = vmin.xlane.f32.xlu0 %v1272_v56  ;;  %1528 = vmin.xlane.f32.xlu1 %v1527_v41  ;;  %v810_v7 = vadd.f32 %v3367_v16, %v808_v27  ;;  %v2192_v46 = vsel %vm518_vm12, 1.0, %v4834_v43  ;;  %v2224_v11 = vsel %vm614_vm13, 1.0, %v4834_v43  ;;  %v3672_v36 = vshll.u32 %v1201_v26, 16  ;;  %v358_v26 = vld [vmem:[%s4650_s1 + $0x98] sm:$0xff] }
 0x15b   :  { %v3647_v14 = vpop.xlane.xlu0 %1539  ;;  %v3649_v2 = vpop.xlane.xlu1 %1284  ;;  %v3675_v3 = vsel %vm403_vm1, %v2192_v46, 0.0  ;;  %v456_v61 = vsel %vm403_vm1, %v388_v35, -inf  ;;  %v3679_v56 = vsel %vm403_vm1, %v339_v24, -inf  ;;  %vm515_vm2 = vcmp.gt.f32.partialorder %v2991_v22, 0.0 }
 0x15c   :  { %4870 = vst [vmem:[#allocation47_spill] sm:$0xff] %v3647_v14  ;;  %4871 = vst [vmem:[#allocation46_spill] sm:$0xff] %v3649_v2  ;;  %vm1541_vm14 = vcmp.eq.f32.partialorder %v4872_v50, %v3647_v14  ;;  %vm1286_vm15 = vcmp.eq.f32.partialorder %v4873_v60, %v3649_v2  ;;  %v812_v59 = vadd.f32 %v3371_v39, %v810_v7  ;;  %v2208_v39 = vsel %vm598_vm0, 1.0, %v4834_v43  ;;  %v390_v50 = vld [vmem:[%s4650_s1 + $0x198] sm:$0xff] }
 0x15d   :  { %v1542_v16 = vsel %vm1541_vm14, %v3501_v40, inf  ;;  %v1287_v18 = vsel %vm1286_vm15, %v3494_v52, inf  ;;  %4874 = vst [vmem:[#allocation49_spill] sm:$0xff] %v3672_v36  ;;  %v3681_v40 = vshll.u32 %v1216_v38, 16  ;;  %v3683_v52 = vshll.u32 %v1471_v15, 16  ;;  %v4879_v38 = vld [vmem:[#allocation61_spill] sm:$0xff] }
 0x15e   :  { %1543 = vmin.xlane.f32.xlu0 %v1542_v16  ;;  %1288 = vmin.xlane.f32.xlu1 %v1287_v18  ;;  %v814_v7 = vadd.f32 %v3383_v9, %v812_v59  ;;  %v1486_v35 = vcvt.f32.s32 %v3517_v13  ;;  %v4880_v15 = vld [vmem:[#allocation60_spill] sm:$0xff]  ;;  %v710_v24 = vmul.f32 %v2224_v11, %v2192_v46  ;;  %v1231_v60 = vcvt.f32.s32 %v3519_v20 }
 0x15f   :  { %4875 = vst [vmem:[#allocation48_spill] sm:$0xff] %v3681_v40  ;;  %4876 = vst [vmem:[#allocation52_spill] sm:$0xff] %v3683_v52  ;;  %v3685_v41 = vpop.xlane.xlu0 %1299  ;;  %v3687_v27 = vpop.xlane.xlu1 %1554  ;;  %v3707_v18 = vsel %vm403_vm1, %v2224_v11, 0.0  ;;  %v1246_v13 = vcvt.f32.s32 %v3545_v21  ;;  %v1501_v59 = vcvt.f32.s32 %v3547_v33  ;;  %v694_v46 = vmul.f32 %v2208_v39, %v3537_v1  ;;  %v4884_v1 = vld [vmem:[#allocation62_spill] sm:$0xff] }
 0x160   :  { %4877 = vst [vmem:[#allocation50_spill] sm:$0xff] %v3685_v41  ;;  %4878 = vst [vmem:[#allocation55_spill] sm:$0xff] %v3687_v27  ;;  %vm1301_vm3 = vcmp.eq.f32.partialorder %v4879_v38, %v3685_v41  ;;  %vm1556_vm4 = vcmp.eq.f32.partialorder %v4880_v15, %v3687_v27  ;;  %v461_v38 = vsel %vm403_vm1, %v358_v26, -inf  ;;  %v1516_v15 = vcvt.f32.s32 %v3584_v17  ;;  %v4907_v41 = vld [vmem:[#allocation19_spill] sm:$0xff] }
 0x161   :  { %v1302_v16 = vsel %vm1301_vm3, %v3507_v19, inf  ;;  %v1557_v9 = vsel %vm1556_vm4, %v3505_v0, inf  ;;  %v1261_v20 = vcvt.f32.s32 %v3586_v31  ;;  %v462_v11 = vsel %vm403_vm1, %v390_v50, -inf  ;;  %v4886_v50 = vld [vmem:[#allocation15_spill] sm:$0xff] }
 0x162   :  { %1303 = vmin.xlane.f32.xlu0 %v1302_v16  ;;  %1558 = vmin.xlane.f32.xlu1 %v1557_v9  ;;  %v816_v21 = vadd.f32 %v3400_v48, %v814_v7  ;;  %v3721_v27 = vshll.u32 %v1486_v35, 16  ;;  %v3728_v17 = vsel %vm403_vm1, %v710_v24, 0.0  ;;  %v3730_v33 = vshll.u32 %v1231_v60, 16 }
 0x163   :  { %v3715_v19 = vpop.xlane.xlu0 %1569  ;;  %v3717_v0 = vpop.xlane.xlu1 %1314  ;;  %vm519_vm7 = vcmp.gt.f32.partialorder %v4886_v50, 0.0  ;;  %v3735_v48 = vshll.u32 %v1246_v13, 16  ;;  %v3737_v7 = vshll.u32 %v1501_v59, 16  ;;  %v3742_v24 = vshll.u32 %v1516_v15, 16 }
 0x164   :  { %4881 = vst [vmem:[#allocation54_spill] sm:$0xff] %v3715_v19  ;;  %4882 = vst [vmem:[#allocation12_spill] sm:$0xff] %v3717_v0  ;;  %vm1571_vm5 = vcmp.eq.f32.partialorder %v3264_v62, %v3715_v19  ;;  %vm1316_vm6 = vcmp.eq.f32.partialorder %v4884_v1, %v3717_v0  ;;  %v3739_v62 = vmax.f32 %v461_v38, %v462_v11  ;;  %v3744_v60 = vshll.u32 %v1261_v20, 16  ;;  %v340_v20 = vld [vmem:[%s4650_s1 + $0x8] sm:$0xff]  ;;  %v371_v11 = vld [vmem:[%s4650_s1 + $0x100] sm:$0xff] }
 0x165   :  { %4883 = vst [vmem:[#allocation58_spill] sm:$0xff] %v3721_v27  ;;  %4885 = vst [vmem:[#allocation56_spill] sm:$0xff] %v3730_v33  ;;  %v1572_v31 = vsel %vm1571_vm5, %v3509_v34, inf  ;;  %v1317_v26 = vsel %vm1316_vm6, %v3511_v55, inf  ;;  %v818_v35 = vadd.f32 %v3413_v4, %v816_v21  ;;  %v3751_v55 = vsel %vm403_vm1, %v694_v46, 0.0  ;;  %v4895_v21 = vld [vmem:[#allocation63_spill] sm:$0xff] }
 0x166   :  { %4887 = vst [vmem:[#allocation61_spill] sm:$0xff] %v3735_v48  ;;  %4888 = vst [vmem:[#allocation60_spill] sm:$0xff] %v3737_v7  ;;  %1573 = vmin.xlane.f32.xlu0 %v1572_v31  ;;  %1318 = vmin.xlane.f32.xlu1 %v1317_v26  ;;  %v3754_v9 = vsel %vm403_vm1, %v2208_v39, 0.0  ;;  %v2193_v4 = vsel %vm519_vm7, 1.0, %v4834_v43  ;;  %vm615_vm10 = vcmp.gt.f32.partialorder %v3739_v62, 0.5  ;;  %v1276_v38 = vcvt.f32.s32 %v3616_v44  ;;  %v4896_v1 = vld [vmem:[#allocation10_spill] sm:$0xff] }
 0x167   :  { %4889 = vst [vmem:[#allocation62_spill] sm:$0xff] %v3742_v24  ;;  %4890 = vst [vmem:[#allocation15_spill] sm:$0xff] %v3744_v60  ;;  %v3746_v16 = vpop.xlane.xlu0 %1329  ;;  %v3748_v34 = vpop.xlane.xlu1 %1584  ;;  %v3765_v46 = vsel %vm403_vm1, %v2193_v4, 0.0  ;;  %v820_v39 = vadd.f32 %v3420_v28, %v818_v35  ;;  %v823_v15 = vsel %vm403_vm1, %v3443_v30, 0.0  ;;  %v374_v28 = vld [vmem:[%s4650_s1 + $0x118] sm:$0xff]  ;;  %v2225_v44 = vsel %vm615_vm10, 1.0, %v4834_v43 }
 0x168   :  { %4891 = vst [vmem:[#allocation75_spill] sm:$0xff] %v3746_v16  ;;  %4892 = vst [vmem:[#allocation76_spill] sm:$0xff] %v3748_v34  ;;  %vm1331_vm8 = vcmp.eq.f32.partialorder %v3280_v51, %v3746_v16  ;;  %vm1586_vm9 = vcmp.eq.f32.partialorder %v3275_v45, %v3748_v34  ;;  %v3770_v51 = vmax.f32 %v3641_v57, %v456_v61  ;;  %v4893_v45 = vld [vmem:[#allocation9_spill] sm:$0xff]  ;;  %v3787_v57 = vsel %vm515_vm2, 1.0, %v4834_v43  ;;  %v393_v33 = vld [vmem:[%s4650_s1 + $0x1b0] sm:$0xff] }
 0x169   :  { %v1332_v13 = vsel %vm1331_vm8, %v3521_v42, inf  ;;  %v1587_v59 = vsel %vm1586_vm9, %v3513_v29, inf  ;;  %vm516_vm11 = vcmp.gt.f32.partialorder %v4893_v45, 0.0  ;;  %v342_v29 = vld [vmem:[%s4650_s1 + $0x18] sm:$0xff]  ;;  %vm612_vm12 = vcmp.gt.f32.partialorder %v3638_v32, 0.5 }
 0x16a   :  { %1333 = vmin.xlane.f32.xlu0 %v1332_v13  ;;  %1588 = vmin.xlane.f32.xlu1 %v1587_v59  ;;  %v822_v61 = vadd.f32 %v3435_v23, %v820_v39  ;;  %vm517_vm14 = vcmp.gt.f32.partialorder %v4896_v1, 0.0  ;;  %vm613_vm15 = vcmp.gt.f32.partialorder %v3770_v51, 0.5  ;;  %v825_v31 = vsel %vm403_vm1, %v3787_v57, 0.0  ;;  %v372_v59 = vld [vmem:[%s4650_s1 + $0x108] sm:$0xff] }
 0x16b   :  { %v3781_v42 = vpop.xlane.xlu1 %1344  ;;  %v413_v35 = vsel %vm403_vm1, %v342_v29, -inf  ;;  %v414_v13 = vsel %vm403_vm1, %v374_v28, -inf  ;;  %v2190_v39 = vsel %vm516_vm11, 1.0, %v4834_v43  ;;  %v405_v22 = vsel %vm403_vm1, %v371_v11, -inf }
 0x16c   :  { %4894 = vst [vmem:[#allocation9_spill] sm:$0xff] %v3781_v42  ;;  %vm1346_vm13 = vcmp.eq.f32.partialorder %v4895_v21, %v3781_v42  ;;  %v824_v26 = vadd.f32 %v823_v15, %v822_v61  ;;  %v2222_v21 = vsel %vm612_vm12, 1.0, %v4834_v43  ;;  %v1531_v15 = vcvt.f32.s32 %v3618_v12  ;;  %v375_v42 = vld [vmem:[%s4650_s1 + $0x120] sm:$0xff] }
 0x16d   :  { %v1347_v23 = vsel %vm1346_vm13, %v3529_v63, inf  ;;  %v407_v63 = vsel %vm403_vm1, %v340_v20, -inf  ;;  %v2191_v29 = vsel %vm517_vm14, 1.0, %v4834_v43  ;;  %v2223_v28 = vsel %vm613_vm15, 1.0, %v4834_v43  ;;  %v359_v12 = vld [vmem:[%s4650_s1 + $0xa0] sm:$0xff] }
 0x16e   :  { %1348 = vmin.xlane.f32.xlu1 %v1347_v23  ;;  %v3819_v61 = vmax.f32 %v3679_v56, %v405_v22  ;;  %v343_v23 = vld [vmem:[%s4650_s1 + $0x20] sm:$0xff]  ;;  %v711_v11 = vmul.f32 %v2225_v44, %v2193_v4  ;;  %v826_v34 = vadd.f32 %v825_v31, %v824_v26  ;;  %v3833_v22 = vmax.f32 %v413_v35, %v414_v13 }
 0x16f   :  { %v391_v20 = vld [vmem:[%s4650_s1 + $0x1a0] sm:$0xff]  ;;  %v408_v56 = vsel %vm403_vm1, %v372_v59, -inf  ;;  %v708_v16 = vmul.f32 %v2222_v21, %v2190_v39  ;;  %v827_v0 = vsel %vm403_vm1, %v2190_v39, 0.0  ;;  %v709_v4 = vmul.f32 %v2223_v28, %v2191_v29 }
 0x170   :  { %4897 = vst [vmem:[#allocation63_spill] sm:$0xff] %v3833_v22  ;;  %v3837_v60 = vmax.f32 %v407_v63, %v408_v56  ;;  %vm596_vm0 = vcmp.gt.f32.partialorder %v3819_v61, 0.5  ;;  %v416_v26 = vsel %vm403_vm1, %v343_v23, -inf  ;;  %v417_v24 = vsel %vm403_vm1, %v375_v42, -inf  ;;  %v4898_v13 = vld [vmem:[#allocation64_spill] sm:$0xff] }
 0x171   :  { %v2206_v31 = vsel %vm596_vm0, 1.0, %v4834_v43  ;;  %v464_v19 = vsel %vm403_vm1, %v359_v12, -inf  ;;  %v465_v35 = vsel %vm403_vm1, %v391_v20, -inf  ;;  %v828_v39 = vadd.f32 %v827_v0, %v826_v34 }
 0x172   :  { %vm597_vm2 = vcmp.gt.f32.partialorder %v3837_v60, 0.5  ;;  %v692_v59 = vmul.f32 %v2206_v31, %v4898_v13  ;;  %v829_v63 = vsel %vm403_vm1, %v2191_v29, 0.0  ;;  %vm599_vm3 = vcmp.gt.f32.partialorder %v3833_v22, 0.5 }
 0x173   :  { %v2207_v56 = vsel %vm597_vm2, 1.0, %v4834_v43  ;;  %v868_v23 = vsel %vm403_vm1, %v2206_v31, 0.0  ;;  %v3853_v12 = vmax.f32 %v416_v26, %v417_v24  ;;  %v3855_v20 = vshll.u32 %v1276_v38, 16  ;;  %v360_v24 = vld [vmem:[%s4650_s1 + $0xa8] sm:$0xff] }
 0x174   :  { %v693_v7 = vmul.f32 %v2207_v56, %v3305_v37  ;;  %v869_v42 = vsel %vm403_vm1, %v2207_v56, 0.0  ;;  %v3857_v48 = vshll.u32 %v1531_v15, 16  ;;  %v3860_v0 = vsel %vm403_vm1, %v2225_v44, 0.0  ;;  %v392_v38 = vld [vmem:[%s4650_s1 + $0x1a8] sm:$0xff] }
 0x175   :  { %4899 = vst [vmem:[#allocation10_spill] sm:$0xff] %v3853_v12  ;;  %4900 = vst [vmem:[#allocation64_spill] sm:$0xff] %v3855_v20  ;;  %v3862_v34 = vmax.f32 %v464_v19, %v465_v35  ;;  %v3865_v29 = vsel %vm403_vm1, %v711_v11, 0.0  ;;  %v2209_v37 = vsel %vm599_vm3, 1.0, %v4834_v43  ;;  %v724_v31 = vsel %vm403_vm1, %v692_v59, 0.0  ;;  %v4903_v19 = vld [vmem:[#allocation16_spill] sm:$0xff] }
 0x176   :  { %4901 = vst [vmem:[#allocation77_spill] sm:$0xff] %v3857_v48  ;;  %v725_v13 = vsel %vm403_vm1, %v693_v7, 0.0  ;;  %v830_v44 = vadd.f32 %v829_v63, %v828_v39  ;;  %vm520_vm4 = vcmp.gt.f32.partialorder %v4903_v19, 0.0  ;;  %v870_v15 = vadd.f32 %v869_v42, %v868_v23  ;;  %v344_v11 = vld [vmem:[%s4650_s1 + $0x28] sm:$0xff]  ;;  %v361_v20 = vld [vmem:[%s4650_s1 + $0xb0] sm:$0xff] }
 0x177   :  { %4902 = vst [vmem:[#allocation78_spill] sm:$0xff] %v3862_v34  ;;  %vm616_vm5 = vcmp.gt.f32.partialorder %v3862_v34, 0.5  ;;  %v3882_v7 = vsel %vm403_vm1, %v708_v16, 0.0  ;;  %v3885_v26 = vsel %vm403_vm1, %v709_v4, 0.0  ;;  %v3888_v35 = vsel %vm403_vm1, %v2222_v21, 0.0  ;;  %v376_v16 = vld [vmem:[%s4650_s1 + $0x128] sm:$0xff] }
 0x178   :  { %vm600_vm6 = vcmp.gt.f32.partialorder %v3853_v12, 0.5  ;;  %v695_v59 = vmul.f32 %v2209_v37, %v3315_v49  ;;  %v726_v39 = vadd.f32 %v725_v13, %v724_v31  ;;  %v467_v63 = vsel %vm403_vm1, %v360_v24, -inf  ;;  %v345_v4 = vld [vmem:[%s4650_s1 + $0x30] sm:$0xff] }
 0x179   :  { %v468_v56 = vsel %vm403_vm1, %v392_v38, -inf  ;;  %v377_v21 = vld [vmem:[%s4650_s1 + $0x130] sm:$0xff]  ;;  %v3904_v23 = vsel %vm403_vm1, %v2223_v28, 0.0  ;;  %v2194_v49 = vsel %vm520_vm4, 1.0, %v4834_v43  ;;  %v2226_v42 = vsel %vm616_vm5, 1.0, %v4834_v43 }
 0x17a   :  { %v419_v31 = vsel %vm403_vm1, %v344_v11, -inf  ;;  %v832_v13 = vadd.f32 %v3675_v3, %v830_v44  ;;  %v873_v24 = vsel %vm403_vm1, %v2209_v37, 0.0  ;;  %v872_v38 = vadd.f32 %v3754_v9, %v870_v15 }
 0x17b   :  { %v2210_v48 = vsel %vm600_vm6, 1.0, %v4834_v43  ;;  %v3917_v28 = vmax.f32 %v467_v63, %v468_v56  ;;  %v420_v11 = vsel %vm403_vm1, %v376_v16, -inf  ;;  %v422_v3 = vsel %vm403_vm1, %v345_v4, -inf  ;;  %v4906_v56 = vld [vmem:[#allocation65_spill] sm:$0xff] }
 0x17c   :  { %v423_v37 = vsel %vm403_vm1, %v377_v21, -inf  ;;  %v712_v44 = vmul.f32 %v2226_v42, %v2194_v49  ;;  %v729_v9 = vsel %vm403_vm1, %v695_v59, 0.0  ;;  %v728_v15 = vadd.f32 %v3751_v55, %v726_v39 }
 0x17d   :  { %4904 = vst [vmem:[#allocation79_spill] sm:$0xff] %v3917_v28  ;;  %v3930_v63 = vmax.f32 %v419_v31, %v420_v11  ;;  %v696_v27 = vmul.f32 %v2210_v48, %v4906_v56  ;;  %vm521_vm7 = vcmp.gt.f32.partialorder %v4907_v41, 0.0  ;;  %vm617_vm8 = vcmp.gt.f32.partialorder %v3917_v28, 0.5 }
 0x17e   :  { %v3935_v12 = vmax.f32 %v422_v3, %v423_v37  ;;  %v874_v16 = vadd.f32 %v873_v24, %v872_v38  ;;  %v470_v4 = vsel %vm403_vm1, %v361_v20, -inf  ;;  %v471_v21 = vsel %vm403_vm1, %v393_v33, -inf }
 0x17f   :  { %4905 = vst [vmem:[#allocation80_spill] sm:$0xff] %v3930_v63  ;;  %vm601_vm9 = vcmp.gt.f32.partialorder %v3930_v63, 0.5  ;;  %v834_v59 = vadd.f32 %v3765_v46, %v832_v13  ;;  %v875_v55 = vsel %vm403_vm1, %v2210_v48, 0.0  ;;  %v835_v31 = vsel %vm403_vm1, %v2194_v49, 0.0  ;;  %v4910_v46 = vld [vmem:[#allocation66_spill] sm:$0xff]  ;;  %v362_v13 = vld [vmem:[%s4650_s1 + $0xb8] sm:$0xff] }
 0x180   :  { %4908 = vst [vmem:[#allocation65_spill] sm:$0xff] %v3935_v12  ;;  %v2211_v39 = vsel %vm601_vm9, 1.0, %v4834_v43  ;;  %vm602_vm10 = vcmp.gt.f32.partialorder %v3935_v12, 0.5  ;;  %v3946_v11 = vsel %vm403_vm1, %v2226_v42, 0.0  ;;  %v730_v24 = vadd.f32 %v729_v9, %v728_v15  ;;  %v394_v49 = vld [vmem:[%s4650_s1 + $0x1b8] sm:$0xff] }
 0x181   :  { %v2195_v20 = vsel %vm521_vm7, 1.0, %v4834_v43  ;;  %v731_v33 = vsel %vm403_vm1, %v696_v27, 0.0  ;;  %v2227_v38 = vsel %vm617_vm8, 1.0, %v4834_v43  ;;  %v3951_v3 = vmax.f32 %v470_v4, %v471_v21  ;;  %v4911_v9 = vld [vmem:[#allocation20_spill] sm:$0xff] }
 0x182   :  { %v697_v48 = vmul.f32 %v2211_v39, %v4910_v46  ;;  %v3961_v42 = vsel %vm403_vm1, %v712_v44, 0.0  ;;  %v876_v37 = vadd.f32 %v875_v55, %v874_v16  ;;  %vm522_vm11 = vcmp.gt.f32.partialorder %v4911_v9, 0.0  ;;  %v346_v15 = vld [vmem:[%s4650_s1 + $0x38] sm:$0xff]  ;;  %v347_v16 = vld [vmem:[%s4650_s1 + $0x40] sm:$0xff] }
 0x183   :  { %4909 = vst [vmem:[#allocation81_spill] sm:$0xff] %v3951_v3  ;;  %v2212_v27 = vsel %vm602_vm10, 1.0, %v4834_v43  ;;  %v836_v56 = vadd.f32 %v835_v31, %v834_v59  ;;  %v837_v4 = vsel %vm403_vm1, %v2195_v20, 0.0  ;;  %vm618_vm12 = vcmp.gt.f32.partialorder %v3951_v3, 0.5  ;;  %v378_v44 = vld [vmem:[%s4650_s1 + $0x138] sm:$0xff]  ;;  %v379_v31 = vld [vmem:[%s4650_s1 + $0x140] sm:$0xff] }
 0x184   :  { %v877_v21 = vsel %vm403_vm1, %v2211_v39, 0.0  ;;  %v732_v55 = vadd.f32 %v731_v33, %v730_v24  ;;  %v713_v46 = vmul.f32 %v2227_v38, %v2195_v20  ;;  %v473_v12 = vsel %vm403_vm1, %v362_v13, -inf  ;;  %v4912_v9 = vld [vmem:[#allocation67_spill] sm:$0xff] }
 0x185   :  { %v474_v59 = vsel %vm403_vm1, %v394_v49, -inf  ;;  %v2196_v39 = vsel %vm522_vm11, 1.0, %v4834_v43  ;;  %v733_v3 = vsel %vm403_vm1, %v697_v48, 0.0  ;;  %v698_v63 = vmul.f32 %v2212_v27, %v4912_v9 }
 0x186   :  { %v425_v52 = vsel %vm403_vm1, %v346_v15, -inf  ;;  %v2228_v40 = vsel %vm618_vm12, 1.0, %v4834_v43  ;;  %v878_v24 = vadd.f32 %v877_v21, %v876_v37  ;;  %v426_v20 = vsel %vm403_vm1, %v378_v44, -inf  ;;  %v4916_v21 = vld [vmem:[#allocation23_spill] sm:$0xff] }
 0x187   :  { %v428_v33 = vsel %vm403_vm1, %v347_v16, -inf  ;;  %v879_v13 = vsel %vm403_vm1, %v2212_v27, 0.0  ;;  %v3990_v49 = vmax.f32 %v473_v12, %v474_v59  ;;  %v3992_v2 = vmax.f32 %v425_v52, %v426_v20 }
 0x188   :  { %v429_v36 = vsel %vm403_vm1, %v379_v31, -inf  ;;  %v838_v48 = vadd.f32 %v837_v4, %v836_v56  ;;  %v839_v9 = vsel %vm403_vm1, %v2196_v39, 0.0  ;;  %v734_v10 = vadd.f32 %v733_v3, %v732_v55  ;;  %v4917_v3 = vld [vmem:[#allocation68_spill] sm:$0xff] }
 0x189   :  { %4913 = vst [vmem:[#allocation66_spill] sm:$0xff] %v3990_v49  ;;  %4914 = vst [vmem:[#allocation67_spill] sm:$0xff] %v3992_v2  ;;  %v3996_v15 = vmax.f32 %v428_v33, %v429_v36  ;;  %v735_v37 = vsel %vm403_vm1, %v698_v63, 0.0  ;;  %vm523_vm13 = vcmp.gt.f32.partialorder %v4916_v21, 0.0  ;;  %vm619_vm14 = vcmp.gt.f32.partialorder %v3990_v49, 0.5  ;;  %v363_v36 = vld [vmem:[%s4650_s1 + $0xc0] sm:$0xff] }
 0x18a   :  { %vm603_vm15 = vcmp.gt.f32.partialorder %v3992_v2, 0.5  ;;  %v714_v12 = vmul.f32 %v2228_v40, %v2196_v39  ;;  %v880_v27 = vadd.f32 %v879_v13, %v878_v24  ;;  %v4005_v56 = vsel %vm403_vm1, %v2227_v38, 0.0  ;;  %v395_v63 = vld [vmem:[%s4650_s1 + $0x1c0] sm:$0xff] }
 0x18b   :  { %4915 = vst [vmem:[#allocation82_spill] sm:$0xff] %v3996_v15  ;;  %v2213_v52 = vsel %vm603_vm15, 1.0, %v4834_v43  ;;  %vm604_vm0 = vcmp.gt.f32.partialorder %v3996_v15, 0.5  ;;  %v4017_v55 = vsel %vm403_vm1, %v713_v46, 0.0  ;;  %v736_v59 = vadd.f32 %v735_v37, %v734_v10  ;;  %v4918_v33 = vld [vmem:[#allocation69_spill] sm:$0xff]  ;;  %v349_v46 = vld [vmem:[%s4650_s1 + $0x50] sm:$0xff] }
 0x18c   :  { %v699_v4 = vmul.f32 %v2213_v52, %v4917_v3  ;;  %v881_v44 = vsel %vm403_vm1, %v2213_v52, 0.0  ;;  %v2214_v16 = vsel %vm604_vm0, 1.0, %v4834_v43  ;;  %v2197_v38 = vsel %vm523_vm13, 1.0, %v4834_v43  ;;  %v348_v52 = vld [vmem:[%s4650_s1 + $0x48] sm:$0xff]  ;;  %v381_v3 = vld [vmem:[%s4650_s1 + $0x150] sm:$0xff]  ;;  %v4921_v21 = vld [vmem:[#allocation24_spill] sm:$0xff] }
 0x18d   :  { %v2229_v31 = vsel %vm619_vm14, 1.0, %v4834_v43  ;;  %v4022_v39 = vsel %vm403_vm1, %v2228_v40, 0.0  ;;  %v840_v24 = vadd.f32 %v839_v9, %v838_v48  ;;  %v700_v13 = vmul.f32 %v2214_v16, %v4918_v33  ;;  %v380_v10 = vld [vmem:[%s4650_s1 + $0x148] sm:$0xff] }
 0x18e   :  { %v737_v20 = vsel %vm403_vm1, %v699_v4, 0.0  ;;  %v4036_v40 = vsel %vm403_vm1, %v714_v12, 0.0  ;;  %v476_v48 = vsel %vm403_vm1, %v363_v36, -inf  ;;  %v477_v9 = vsel %vm403_vm1, %v395_v63, -inf  ;;  %v364_v12 = vld [vmem:[%s4650_s1 + $0xc8] sm:$0xff] }
 0x18f   :  { %v882_v37 = vadd.f32 %v881_v44, %v880_v27  ;;  %v715_v4 = vmul.f32 %v2229_v31, %v2197_v38  ;;  %v841_v33 = vsel %vm403_vm1, %v2197_v38, 0.0  ;;  %v4045_v15 = vsel %vm403_vm1, %v2229_v31, 0.0  ;;  %v396_v31 = vld [vmem:[%s4650_s1 + $0x1c8] sm:$0xff] }
 0x190   :  { %v883_v2 = vsel %vm403_vm1, %v2214_v16, 0.0  ;;  %v738_v49 = vadd.f32 %v737_v20, %v736_v59  ;;  %v431_v36 = vsel %vm403_vm1, %v348_v52, -inf  ;;  %v432_v27 = vsel %vm403_vm1, %v380_v10, -inf }
 0x191   :  { %v434_v63 = vsel %vm403_vm1, %v349_v46, -inf  ;;  %v4054_v44 = vmax.f32 %v476_v48, %v477_v9  ;;  %v739_v38 = vsel %vm403_vm1, %v700_v13, 0.0  ;;  %v4060_v16 = vmax.f32 %v431_v36, %v432_v27  ;;  %v350_v46 = vld [vmem:[%s4650_s1 + $0x58] sm:$0xff] }
 0x192   :  { %v435_v59 = vsel %vm403_vm1, %v381_v3, -inf  ;;  %v4063_v20 = vadd.f32 %v841_v33, %v840_v24  ;;  %vm524_vm2 = vcmp.gt.f32.partialorder %v4921_v21, 0.0  ;;  %v884_v52 = vadd.f32 %v883_v2, %v882_v37  ;;  %v382_v37 = vld [vmem:[%s4650_s1 + $0x158] sm:$0xff]  ;;  %v365_v3 = vld [vmem:[%s4650_s1 + $0xd0] sm:$0xff] }
 0x193   :  { %4919 = vst [vmem:[#allocation68_spill] sm:$0xff] %v4054_v44  ;;  %4920 = vst [vmem:[#allocation69_spill] sm:$0xff] %v4060_v16  ;;  %v4066_v10 = vmax.f32 %v434_v63, %v435_v59  ;;  %v4072_v13 = vsel %vm403_vm1, %v715_v4, 0.0  ;;  %vm620_vm3 = vcmp.gt.f32.partialorder %v4054_v44, 0.5  ;;  %v479_v48 = vsel %vm403_vm1, %v364_v12, -inf  ;;  %v4923_v4 = vld [vmem:[#allocation70_spill] sm:$0xff] }
 0x194   :  { %vm605_vm4 = vcmp.gt.f32.partialorder %v4060_v16, 0.5  ;;  %v740_v24 = vadd.f32 %v739_v38, %v738_v49  ;;  %v480_v9 = vsel %vm403_vm1, %v396_v31, -inf  ;;  %v437_v36 = vsel %vm403_vm1, %v350_v46, -inf  ;;  %v397_v63 = vld [vmem:[%s4650_s1 + $0x1d0] sm:$0xff]  ;;  %v383_v46 = vld [vmem:[%s4650_s1 + $0x160] sm:$0xff] }
 0x195   :  { %4922 = vst [vmem:[#allocation83_spill] sm:$0xff] %v4066_v10  ;;  %v2215_v2 = vsel %vm605_vm4, 1.0, %v4834_v43  ;;  %vm606_vm5 = vcmp.gt.f32.partialorder %v4066_v10, 0.5  ;;  %v4093_v27 = vsel %vm524_vm2, 1.0, %v4834_v43  ;;  %v4924_v31 = vld [vmem:[#allocation71_spill] sm:$0xff]  ;;  %v4109_v10 = vsel %vm620_vm3, 1.0, %v4834_v43 }
 0x196   :  { %v701_v33 = vmul.f32 %v2215_v2, %v4923_v4  ;;  %v885_v12 = vsel %vm403_vm1, %v2215_v2, 0.0  ;;  %v2216_v49 = vsel %vm606_vm5, 1.0, %v4834_v43  ;;  %v351_v2 = vld [vmem:[%s4650_s1 + $0x60] sm:$0xff]  ;;  %v4111_v16 = vmax.f32 %v479_v48, %v480_v9  ;;  %v4927_v9 = vld [vmem:[#allocation27_spill] sm:$0xff] }
 0x197   :  { %v886_v38 = vadd.f32 %v885_v12, %v884_v52  ;;  %v702_v59 = vmul.f32 %v2216_v49, %v4924_v31  ;;  %v887_v4 = vsel %vm403_vm1, %v2216_v49, 0.0  ;;  %v438_v12 = vsel %vm403_vm1, %v382_v37, -inf  ;;  %v352_v37 = vld [vmem:[%s4650_s1 + $0x68] sm:$0xff] }
 0x198   :  { %4925 = vst [vmem:[#allocation70_spill] sm:$0xff] %v4111_v16  ;;  %v741_v52 = vsel %vm403_vm1, %v701_v33, 0.0  ;;  %v482_v49 = vsel %vm403_vm1, %v365_v3, -inf  ;;  %v4117_v28 = vmax.f32 %v437_v36, %v438_v12  ;;  %v483_v41 = vsel %vm403_vm1, %v397_v63, -inf  ;;  %v384_v3 = vld [vmem:[%s4650_s1 + $0x168] sm:$0xff]  ;;  %v4929_v33 = vld [vmem:[#allocation28_spill] sm:$0xff] }
 0x199   :  { %v742_v31 = vadd.f32 %v741_v52, %v740_v24  ;;  %v743_v21 = vsel %vm403_vm1, %v702_v59, 0.0  ;;  %v888_v34 = vadd.f32 %v887_v4, %v886_v38  ;;  %v440_v44 = vsel %vm403_vm1, %v351_v2, -inf  ;;  %v4931_v59 = vld [vmem:[#allocation72_spill] sm:$0xff]  ;;  %v353_v4 = vld [vmem:[%s4650_s1 + $0x70] sm:$0xff] }
 0x19a   :  { %4926 = vst [vmem:[#allocation71_spill] sm:$0xff] %v4117_v28  ;;  %v441_v19 = vsel %vm403_vm1, %v383_v46, -inf  ;;  %v4124_v48 = vmul.f32 %v4109_v10, %v4093_v27  ;;  %vm525_vm6 = vcmp.gt.f32.partialorder %v4927_v9, 0.0  ;;  %vm607_vm7 = vcmp.gt.f32.partialorder %v4117_v28, 0.5  ;;  %v385_v2 = vld [vmem:[%s4650_s1 + $0x170] sm:$0xff]  ;;  %v366_v12 = vld [vmem:[%s4650_s1 + $0xd8] sm:$0xff] }
 0x19b   :  { %v4128_v24 = vmax.f32 %v440_v44, %v441_v19  ;;  %vm621_vm8 = vcmp.gt.f32.partialorder %v4111_v16, 0.5  ;;  %vm526_vm9 = vcmp.gt.f32.partialorder %v4929_v33, 0.0  ;;  %v744_v36 = vadd.f32 %v743_v21, %v742_v31  ;;  %v4932_v31 = vld [vmem:[#allocation73_spill] sm:$0xff] }
 0x19c   :  { %v2217_v63 = vsel %vm607_vm7, 1.0, %v4834_v43  ;;  %v4139_v38 = vmax.f32 %v482_v49, %v483_v41  ;;  %v443_v41 = vsel %vm403_vm1, %v352_v37, -inf  ;;  %v444_v52 = vsel %vm403_vm1, %v384_v3, -inf  ;;  %v398_v37 = vld [vmem:[%s4650_s1 + $0x1d8] sm:$0xff] }
 0x19d   :  { %4928 = vst [vmem:[#allocation84_spill] sm:$0xff] %v4128_v24  ;;  %v703_v19 = vmul.f32 %v2217_v63, %v4931_v59  ;;  %v889_v44 = vsel %vm403_vm1, %v2217_v63, 0.0  ;;  %vm608_vm10 = vcmp.gt.f32.partialorder %v4128_v24, 0.5  ;;  %v4159_v24 = vmax.f32 %v443_v41, %v444_v52  ;;  %v386_v52 = vld [vmem:[%s4650_s1 + $0x178] sm:$0xff] }
 0x19e   :  { %4930 = vst [vmem:[#allocation85_spill] sm:$0xff] %v4139_v38  ;;  %v890_v46 = vadd.f32 %v889_v44, %v888_v34  ;;  %v2218_v21 = vsel %vm608_vm10, 1.0, %v4834_v43  ;;  %v354_v34 = vld [vmem:[%s4650_s1 + $0x78] sm:$0xff]  ;;  %v446_v28 = vsel %vm403_vm1, %v353_v4, -inf  ;;  %vm622_vm11 = vcmp.gt.f32.partialorder %v4139_v38, 0.5 }
 0x19f   :  { %v745_v49 = vsel %vm403_vm1, %v703_v19, 0.0  ;;  %v704_v63 = vmul.f32 %v2218_v21, %v4932_v31  ;;  %v891_v59 = vsel %vm403_vm1, %v2218_v21, 0.0  ;;  %4933 = vst [vmem:[#allocation72_spill] sm:$0xff] %v4159_v24  ;;  %v447_v19 = vsel %vm403_vm1, %v385_v2, -inf }
 0x1a0   :  { %v746_v3 = vadd.f32 %v745_v49, %v744_v36  ;;  %v892_v44 = vadd.f32 %v891_v59, %v890_v46  ;;  %vm609_vm12 = vcmp.gt.f32.partialorder %v4159_v24, 0.5  ;;  %v4172_v41 = vmax.f32 %v446_v28, %v447_v19  ;;  %v4935_v49 = vld [vmem:[#allocation74_spill] sm:$0xff] }
 0x1a1   :  { %v747_v21 = vsel %vm403_vm1, %v704_v63, 0.0  ;;  %v485_v31 = vsel %vm403_vm1, %v366_v12, -inf  ;;  %v2219_v46 = vsel %vm609_vm12, 1.0, %v4834_v43  ;;  %v449_v4 = vsel %vm403_vm1, %v354_v34, -inf }
 0x1a2   :  { %4934 = vst [vmem:[#allocation73_spill] sm:$0xff] %v4172_v41  ;;  %v748_v36 = vadd.f32 %v747_v21, %v746_v3  ;;  %v486_v2 = vsel %vm403_vm1, %v398_v37, -inf  ;;  %v705_v59 = vmul.f32 %v2219_v46, %v4935_v49  ;;  %v893_v63 = vsel %vm403_vm1, %v2219_v46, 0.0  ;;  %v367_v49 = vld [vmem:[%s4650_s1 + $0xe0] sm:$0xff] }
 0x1a3   :  { %vm610_vm13 = vcmp.gt.f32.partialorder %v4172_v41, 0.5  ;;  %v894_v28 = vadd.f32 %v893_v63, %v892_v44  ;;  %v450_v24 = vsel %vm403_vm1, %v386_v52, -inf  ;;  %v4767_v37 = vmov 1.0  }
 0x1a4   :  { %v2220_v19 = vsel %vm610_vm13, 1.0, %v4834_v43  ;;  %v749_v12 = vsel %vm403_vm1, %v705_v59, 0.0  ;;  %v4189_v34 = vmax.f32 %v449_v4, %v450_v24  ;;  %2368 = vmatprep.mubr.msk.f32.mxu0 %vm403_vm1, %v4767_v37  ;;  %2402 = vmatprep.mubr.msk.f32.mxu1 %vm403_vm1, %v4767_v37  ;;  %v843_v44 = vsel %vm403_vm1, %v4093_v27, 0.0  ;;  %v399_v27 = vld [vmem:[%s4650_s1 + $0x1e0] sm:$0xff]  ;;  %v401_v37 = vld [vmem:[%s4650_s1 + $0x1f0] sm:$0xff] }
 0x1a5   :  { %v706_v3 = vmul.f32 %v2220_v19, %v3443_v30  ;;  %v895_v21 = vsel %vm403_vm1, %v2220_v19, 0.0  ;;  %v2199_v52 = vsel %vm525_vm6, 1.0, %v4834_v43  ;;  %v750_v46 = vadd.f32 %v749_v12, %v748_v36 }
 0x1a6   :  { %4936 = vst [vmem:[#allocation74_spill] sm:$0xff] %v4189_v34  ;;  %v896_v30 = vadd.f32 %v895_v21, %v894_v28  ;;  %v2231_v24 = vsel %vm621_vm8, 1.0, %v4834_v43  ;;  %v2200_v4 = vsel %vm526_vm9, 1.0, %v4834_v43  ;;  %vm611_vm14 = vcmp.gt.f32.partialorder %v4189_v34, 0.5 }
 0x1a7   :  { %v751_v59 = vsel %vm403_vm1, %v706_v3, 0.0  ;;  %v2232_v36 = vsel %vm622_vm11, 1.0, %v4834_v43  ;;  %v4217_v63 = vmax.f32 %v485_v31, %v486_v2  ;;  %v2221_v19 = vsel %vm611_vm14, 1.0, %v4834_v43  ;;  %v368_v3 = vld [vmem:[%s4650_s1 + $0xe8] sm:$0xff] }
 0x1a8   :  { %v752_v28 = vadd.f32 %v751_v59, %v750_v46  ;;  %v4222_v12 = vsel %vm403_vm1, %v4124_v48, 0.0  ;;  %v4226_v21 = vsel %vm403_vm1, %v4109_v10, 0.0  ;;  %v400_v31 = vld [vmem:[%s4650_s1 + $0x1e8] sm:$0xff]  ;;  %v707_v2 = vmul.f32 %v2221_v19, %v3787_v57  ;;  %v369_v10 = vld [vmem:[%s4650_s1 + $0xf0] sm:$0xff] }
 0x1a9   :  { %v897_v46 = vsel %vm403_vm1, %v2221_v19, 0.0  ;;  %vm623_vm15 = vcmp.gt.f32.partialorder %v4217_v63, 0.5  ;;  %v488_v48 = vsel %vm403_vm1, %v367_v49, -inf  ;;  %v489_v59 = vsel %vm403_vm1, %v399_v27, -inf  ;;  %v370_v49 = vld [vmem:[%s4650_s1 + $0xf8] sm:$0xff] }
 0x1aa   :  { %v898_v34 = vadd.f32 %v897_v46, %v896_v30  ;;  %v4245_v41 = vmul.f32 %v2231_v24, %v2199_v52  ;;  %v4248_v57 = vsel %vm403_vm1, %v2231_v24, 0.0  ;;  %v4250_v19 = vmul.f32 %v2232_v36, %v2200_v4  ;;  %v402_v27 = vld [vmem:[%s4650_s1 + $0x1f8] sm:$0xff] }
 0x1ab   :  { %v753_v38 = vsel %vm403_vm1, %v707_v2, 0.0  ;;  %v491_v33 = vsel %vm403_vm1, %v368_v3, -inf  ;;  %v492_v30 = vsel %vm403_vm1, %v400_v31, -inf  ;;  %v2233_v16 = vsel %vm623_vm15, 1.0, %v4834_v43  ;;  %vm4376_vm15 = vmpackc.low %vm403_vm1, %vm403_vm1 }
 0x1ac   :  { %v900_v46 = vadd.f32 %v3888_v35, %v898_v34  ;;  %v754_v24 = vadd.f32 %v753_v38, %v752_v28  ;;  %v4265_v9 = vmax.f32 %v488_v48, %v489_v59  ;;  %v494_v14 = vsel %vm403_vm1, %v369_v10, -inf  ;;  %v4937_v59 = vld [vmem:[#allocation31_spill] sm:$0xff] }
 0x1ad   :  { %v495_v22 = vsel %vm403_vm1, %v401_v37, -inf  ;;  %v497_v58 = vsel %vm403_vm1, %v370_v49, -inf  ;;  %v498_v2 = vsel %vm403_vm1, %v402_v27, -inf  ;;  %v4274_v35 = vsel %vm403_vm1, %v2232_v36, 0.0 }
 0x1ae   :  { %v902_v3 = vadd.f32 %v3904_v23, %v900_v46  ;;  %v756_v31 = vadd.f32 %v3882_v7, %v754_v24  ;;  %v4277_v38 = vsel %vm403_vm1, %v2233_v16, 0.0  ;;  %vm624_vm0 = vcmp.gt.f32.partialorder %v4265_v9, 0.5  ;;  %v4938_v7 = vld [vmem:[#allocation32_spill] sm:$0xff] }
 0x1af   :  { %v4280_v34 = vmax.f32 %v491_v33, %v492_v30  ;;  %v4282_v28 = vmax.f32 %v494_v14, %v495_v22  ;;  %vm527_vm2 = vcmp.gt.f32.partialorder %v4937_v59, 0.0  ;;  %v4287_v23 = vmax.f32 %v497_v58, %v498_v2  ;;  %v4939_v14 = vld [vmem:[#allocation34_spill] sm:$0xff]  ;;  %v4940_v22 = vld [vmem:[#allocation37_spill] sm:$0xff] }
 0x1b0   :  { %v904_v37 = vadd.f32 %v3707_v18, %v902_v3  ;;  %v758_v48 = vadd.f32 %v3885_v26, %v756_v31  ;;  %vm528_vm3 = vcmp.gt.f32.partialorder %v4938_v7, 0.0  ;;  %v844_v36 = vadd.f32 %v843_v44, %v4063_v20  ;;  %v4941_v26 = vld [vmem:[#allocation38_spill] sm:$0xff] }
 0x1b1   :  { %v845_v10 = vsel %vm403_vm1, %v2199_v52, 0.0  ;;  %vm529_vm4 = vcmp.gt.f32.partialorder %v4939_v14, 0.0  ;;  %v847_v18 = vsel %vm403_vm1, %v2200_v4, 0.0  ;;  %vm530_vm5 = vcmp.gt.f32.partialorder %v4940_v22, 0.0 }
 0x1b2   :  { %v906_v49 = vadd.f32 %v3860_v0, %v904_v37  ;;  %v760_v33 = vadd.f32 %v3728_v17, %v758_v48  ;;  %vm531_vm6 = vcmp.gt.f32.partialorder %v4941_v26, 0.0  ;;  %v2201_v58 = vsel %vm527_vm2, 1.0, %v4834_v43 }
 0x1b3   :  { %v846_v27 = vadd.f32 %v845_v10, %v844_v36  ;;  %vm625_vm7 = vcmp.gt.f32.partialorder %v4280_v34, 0.5  ;;  %v849_v0 = vsel %vm403_vm1, %v2201_v58, 0.0  ;;  %v2202_v17 = vsel %vm528_vm3, 1.0, %v4834_v43 }
 0x1b4   :  { %v908_v30 = vadd.f32 %v3946_v11, %v906_v49  ;;  %v762_v20 = vadd.f32 %v3865_v29, %v760_v33  ;;  %v2203_v44 = vsel %vm529_vm4, 1.0, %v4834_v43  ;;  %vm626_vm8 = vcmp.gt.f32.partialorder %v4282_v28, 0.5 }
 0x1b5   :  { %v848_v52 = vadd.f32 %v847_v18, %v846_v27  ;;  %vm627_vm9 = vcmp.gt.f32.partialorder %v4287_v23, 0.5  ;;  %v851_v46 = vsel %vm403_vm1, %v2202_v17, 0.0  ;;  %v2204_v29 = vsel %vm530_vm5, 1.0, %v4834_v43 }
 0x1b6   :  { %v764_v4 = vadd.f32 %v3961_v42, %v762_v20  ;;  %v910_v11 = vadd.f32 %v4005_v56, %v908_v30  ;;  %v2234_v24 = vsel %vm624_vm0, 1.0, %v4834_v43  ;;  %v2235_v2 = vsel %vm625_vm7, 1.0, %v4834_v43 }
 0x1b7   :  { %v850_v3 = vadd.f32 %v849_v0, %v848_v52  ;;  %v4318_v31 = vsel %vm626_vm8, 1.0, %v4834_v43  ;;  %v853_v37 = vsel %vm403_vm1, %v2203_v44, 0.0  ;;  %v2205_v48 = vsel %vm531_vm6, 1.0, %v4834_v43 }
 0x1b8   :  { %v766_v42 = vadd.f32 %v4017_v55, %v764_v4  ;;  %v912_v56 = vadd.f32 %v4022_v39, %v910_v11  ;;  %v4327_v36 = vsel %vm627_vm9, 1.0, %v4834_v43  ;;  %v719_v10 = vmul.f32 %v2233_v16, %v2201_v58 }
 0x1b9   :  { %v852_v49 = vadd.f32 %v851_v46, %v850_v3  ;;  %v720_v18 = vmul.f32 %v2234_v24, %v2202_v17  ;;  %v855_v30 = vsel %vm403_vm1, %v2204_v29, 0.0  ;;  %v721_v0 = vmul.f32 %v2235_v2, %v2203_v44 }
 0x1ba   :  { %v768_v27 = vadd.f32 %v4036_v40, %v766_v42  ;;  %v914_v55 = vadd.f32 %v4045_v15, %v912_v56  ;;  %v722_v39 = vmul.f32 %v4318_v31, %v2204_v29  ;;  %v723_v4 = vmul.f32 %v4327_v36, %v2205_v48 }
 0x1bb   :  { %v1364_v33 = vpop.xlane.xlu0 %1363  ;;  %v854_v52 = vadd.f32 %v853_v37, %v852_v49  ;;  %v857_v16 = vsel %vm403_vm1, %v2205_v48, 0.0  ;;  %v773_v40 = vsel %vm403_vm1, %v4245_v41, 0.0  ;;  %v775_v15 = vsel %vm403_vm1, %v4250_v19, 0.0 }
 0x1bc   :  { %v1365_v20 = vcvt.f32.s32 %v1364_v33  ;;  %v770_v11 = vadd.f32 %v4072_v13, %v768_v27  ;;  %v916_v58 = vadd.f32 %v4226_v21, %v914_v55  ;;  %v777_v42 = vsel %vm403_vm1, %v719_v10, 0.0  ;;  %v4942_v21 = vld [vmem:[#allocation41_spill] sm:$0xff]  ;;  %v4944_v10 = vld [vmem:[#allocation51_spill] sm:$0xff] }
 0x1bd   :  { %v856_v44 = vadd.f32 %v855_v30, %v854_v52  ;;  %v779_v13 = vsel %vm403_vm1, %v720_v18, 0.0  ;;  %v781_v49 = vsel %vm403_vm1, %v721_v0, 0.0  ;;  %v4349_v19 = vsel %vm403_vm1, %v722_v39, 0.0 }
 0x1be   :  { %v1368_v17 = vadd.s32 %v3531_v47, %v1365_v20  ;;  %v772_v3 = vadd.f32 %v4222_v12, %v770_v11  ;;  %v918_v37 = vadd.f32 %v4248_v57, %v916_v58  ;;  %v4943_v12 = vld [vmem:[#allocation53_spill] sm:$0xff]  ;;  %v4355_v18 = vsel %vm403_vm1, %v723_v4, 0.0 }
 0x1bf   :  { %v1124_v46 = vpop.xlane.xlu0 %1123  ;;  %v1379_v29 = vpop.xlane.xlu1 %1378  ;;  %v858_v48 = vadd.f32 %v857_v16, %v856_v44  ;;  %v923_v57 = vsel %vm403_vm1, %v2234_v24, 0.0  ;;  %v925_v11 = vsel %vm403_vm1, %v2235_v2, 0.0 }
 0x1c0   :  { %vm1610_vm10 = vcmp.eq.s32.totalorder %v4942_v21, %v1368_v17  ;;  %v1125_v47 = vcvt.f32.s32 %v1124_v46  ;;  %v1380_v56 = vcvt.f32.s32 %v1379_v29  ;;  %v774_v41 = vadd.f32 %v773_v40, %v772_v3  ;;  %v4945_v40 = vld [vmem:[#allocation43_spill] sm:$0xff]  ;;  %v4946_v46 = vld [vmem:[#allocation42_spill] sm:$0xff] }
 0x1c1   :  { %v920_v33 = vadd.f32 %v4274_v35, %v918_v37  ;;  %859 = vadd.xlane.f32.xlu1 %v858_v48  ;;  %v2254_v52 = vsel %vm1610_vm10, 1.0, %v4834_v43 }
 0x1c2   :  { %v1128_v27 = vadd.s32 %v4943_v12, %v1125_v47  ;;  %v1383_v30 = vadd.s32 %v4944_v10, %v1380_v56  ;;  %v776_v0 = vadd.f32 %v775_v15, %v774_v41  ;;  %v1706_v37 = vmul.f32 %v2254_v52, %v4893_v45  ;;  %v4947_v56 = vld [vmem:[#allocation11_spill] sm:$0xff] }
 0x1c3   :  { %v1394_v55 = vpop.xlane.xlu0 %1393  ;;  %v1139_v20 = vpop.xlane.xlu1 %1138  ;;  %v922_v39 = vadd.f32 %v4277_v38, %v920_v33  ;;  %v1931_v47 = vmul.f32 %v2254_v52, %v3638_v32 }
 0x1c4   :  { %vm1594_vm11 = vcmp.eq.s32.totalorder %v4942_v21, %v1128_v27  ;;  %vm1611_vm12 = vcmp.eq.s32.totalorder %v4942_v21, %v1383_v30  ;;  %v1395_v35 = vcvt.f32.s32 %v1394_v55  ;;  %v1140_v16 = vcvt.f32.s32 %v1139_v20  ;;  %v4950_v27 = vld [vmem:[#allocation57_spill] sm:$0xff]  ;;  %v4951_v30 = vld [vmem:[#allocation59_spill] sm:$0xff] }
 0x1c5   :  { %v2238_v4 = vsel %vm1594_vm11, 1.0, %v4834_v43  ;;  %v2255_v58 = vsel %vm1611_vm12, 1.0, %v4834_v43  ;;  %v778_v24 = vadd.f32 %v777_v42, %v776_v0  ;;  %v924_v17 = vadd.f32 %v923_v57, %v922_v39  ;;  %v4952_v0 = vld [vmem:[#allocation13_spill] sm:$0xff] }
 0x1c6   :  { %v1398_v44 = vadd.s32 %v4945_v40, %v1395_v35  ;;  %v1143_v15 = vadd.s32 %v4946_v46, %v1140_v16  ;;  %v1707_v38 = vmul.f32 %v2255_v58, %v4896_v1  ;;  %v1932_v2 = vmul.f32 %v2255_v58, %v3770_v51 }
 0x1c7   :  { %v1154_v29 = vpop.xlane.xlu0 %1153  ;;  %v1409_v3 = vpop.xlane.xlu1 %1408  ;;  %v1690_v48 = vmul.f32 %v2238_v4, %v4947_v56  ;;  %v780_v41 = vadd.f32 %v779_v13, %v778_v24  ;;  %v1915_v32 = vmul.f32 %v2238_v4, %v3819_v61  ;;  %v926_v55 = vadd.f32 %v925_v11, %v924_v17 }
 0x1c8   :  { %vm1612_vm13 = vcmp.eq.s32.totalorder %v4942_v21, %v1398_v44  ;;  %vm1595_vm14 = vcmp.eq.s32.totalorder %v4942_v21, %v1143_v15  ;;  %v1155_v42 = vcvt.f32.s32 %v1154_v29  ;;  %v1410_v33 = vcvt.f32.s32 %v1409_v3 }
 0x1c9   :  { %v2239_v51 = vsel %vm1595_vm14, 1.0, %v4834_v43  ;;  %v2404_v45 = vpack.c.bf16 %v1707_v38, %v1706_v37  ;;  %v2452_v12 = vpack.c.bf16 %v1932_v2, %v1931_v47  ;;  %v2256_v13 = vsel %vm1612_vm13, 1.0, %v4834_v43 }
 0x1ca   :  { %v1158_v10 = vadd.s32 %v4950_v27, %v1155_v42  ;;  %v1413_v57 = vadd.s32 %v4951_v30, %v1410_v33  ;;  %v1691_v39 = vmul.f32 %v2239_v51, %v4952_v0  ;;  %v1916_v35 = vmul.f32 %v2239_v51, %v3837_v60  ;;  %v4955_v42 = vld [vmem:[#allocation17_spill] sm:$0xff]  ;;  %v4956_v51 = vld [vmem:[#allocation63_spill] sm:$0xff]  ;;  %v4959_v0 = vld [vmem:[#allocation78_spill] sm:$0xff] }
 0x1cb   :  { %2406 = vmatprep.subr.msk.bf16.mxu0 %vm4376_vm15, %v2404_v45  ;;  %2454 = vmatprep.subr.msk.bf16.mxu1 %vm4376_vm15, %v2452_v12  ;;  %v1424_v20 = vpop.xlane.xlu0 %1423  ;;  %v1169_v52 = vpop.xlane.xlu1 %1168  ;;  %v782_v61 = vadd.f32 %v781_v49, %v780_v41  ;;  %v927_v16 = vsel %vm403_vm1, %v4318_v31, 0.0  ;;  %v1708_v58 = vmul.f32 %v2256_v13, %v4868_v54  ;;  %v1933_v44 = vmul.f32 %v2256_v13, %v3628_v5  ;;  %v4957_v13 = vld [vmem:[#allocation47_spill] sm:$0xff] }
 0x1cc   :  { %vm1596_vm0 = vcmp.eq.s32.totalorder %v4942_v21, %v1158_v10  ;;  %vm1613_vm2 = vcmp.eq.s32.totalorder %v4942_v21, %v1413_v57  ;;  %v1425_v11 = vcvt.f32.s32 %v1424_v20  ;;  %v1170_v4 = vcvt.f32.s32 %v1169_v52  ;;  %v4958_v20 = vld [vmem:[#allocation16_spill] sm:$0xff] }
 0x1cd   :  { %v2257_v24 = vsel %vm1613_vm2, 1.0, %v4834_v43  ;;  %v2407_v17 = vpack.c.bf16 %v1691_v39, %v1690_v48  ;;  %v2455_v40 = vpack.c.bf16 %v1916_v35, %v1915_v32  ;;  %v2240_v60 = vsel %vm1596_vm0, 1.0, %v4834_v43  ;;  %v4954_v48 = vld [vmem:[#allocation45_spill] sm:$0xff]  ;;  %v4960_v35 = vld [vmem:[#allocation19_spill] sm:$0xff] }
 0x1ce   :  { %v1709_v49 = vmul.f32 %v2257_v24, %v4886_v50  ;;  %v1934_v31 = vmul.f32 %v2257_v24, %v3739_v62  ;;  %v1428_v46 = vadd.s32 %v3605_v53, %v1425_v11  ;;  %v1173_v15 = vadd.s32 %v3607_v6, %v1170_v4  ;;  %v4953_v53 = vld [vmem:[#allocation14_spill] sm:$0xff]  ;;  %v4961_v11 = vld [vmem:[#allocation79_spill] sm:$0xff]  ;;  %v4962_v4 = vld [vmem:[#allocation44_spill] sm:$0xff] }
 0x1cf   :  { %2409 = vmatpush3.bf16.xpose.msk.msra.mxu0 %vm4376_vm15, %v2407_v17  ;;  %2457 = vmatpush3.bf16.xpose.msk.msra.mxu1 %vm4376_vm15, %v2455_v40  ;;  %v1184_v54 = vpop.xlane.xlu0 %1183  ;;  %v1439_v38 = vpop.xlane.xlu1 %1438  ;;  %v784_v5 = vadd.f32 %v4349_v19, %v782_v61  ;;  %v929_v2 = vsel %vm403_vm1, %v4327_v36, 0.0  ;;  %v1692_v37 = vmul.f32 %v2240_v60, %v4953_v53  ;;  %v1917_v47 = vmul.f32 %v2240_v60, %v3630_v25  ;;  %v4963_v24 = vld [vmem:[#allocation49_spill] sm:$0xff] }
 0x1d0   :  { %v1185_v50 = vcvt.f32.s32 %v1184_v54  ;;  %v1440_v29 = vcvt.f32.s32 %v1439_v38  ;;  %v2410_v62 = vpack.c.bf16 %v1709_v49, %v1708_v58  ;;  %v2458_v3 = vpack.c.bf16 %v1934_v31, %v1933_v44  ;;  %v4964_v38 = vld [vmem:[#allocation46_spill] sm:$0xff] }
 0x1d1   :  { %vm1614_vm3 = vcmp.eq.s32.totalorder %v4942_v21, %v1428_v46  ;;  %vm1597_vm4 = vcmp.eq.s32.totalorder %v4942_v21, %v1173_v15  ;;  %v786_v6 = vadd.f32 %v4355_v18, %v784_v5  ;;  %v928_v12 = vadd.f32 %v927_v16, %v926_v55 }
 0x1d2   :  { %v2241_v56 = vsel %vm1597_vm4, 1.0, %v4834_v43  ;;  %v1188_v19 = vadd.s32 %v3611_v8, %v1185_v50  ;;  %v1443_v36 = vadd.s32 %v4954_v48, %v1440_v29  ;;  %2412 = vmatprep.subr.msk.bf16.mxu0 %vm4376_vm15, %v2410_v62  ;;  %2460 = vmatprep.subr.msk.bf16.mxu1 %vm4376_vm15, %v2458_v3  ;;  %v2258_v41 = vsel %vm1614_vm3, 1.0, %v4834_v43  ;;  %v4965_v50 = vld [vmem:[#allocation18_spill] sm:$0xff]  ;;  %v4966_v3 = vld [vmem:[#allocation48_spill] sm:$0xff] }
 0x1d3   :  { %v1693_v33 = vmul.f32 %v2241_v56, %v4955_v42  ;;  %v1918_v18 = vmul.f32 %v2241_v56, %v4956_v51  ;;  %v1454_v45 = vpop.xlane.xlu0 %1453  ;;  %v1199_v25 = vpop.xlane.xlu1 %1198  ;;  %787 = vadd.xlane.f32.xlu0 %v786_v6  ;;  %v1546_v27 = vcvt.f32.s32 %v4957_v13  ;;  %v1710_v52 = vmul.f32 %v2258_v41, %v4958_v20  ;;  %v4968_v6 = vld [vmem:[#allocation10_spill] sm:$0xff]  ;;  %v4972_v13 = vld [vmem:[#allocation20_spill] sm:$0xff] }
 0x1d4   :  { %vm1598_vm5 = vcmp.eq.s32.totalorder %v4942_v21, %v1188_v19  ;;  %vm1615_vm6 = vcmp.eq.s32.totalorder %v4942_v21, %v1443_v36  ;;  %v1455_v8 = vcvt.f32.s32 %v1454_v45  ;;  %v1200_v32 = vcvt.f32.s32 %v1199_v25  ;;  %v4969_v19 = vld [vmem:[#allocation21_spill] sm:$0xff]  ;;  %v4970_v36 = vld [vmem:[#allocation80_spill] sm:$0xff]  ;;  %v4971_v45 = vld [vmem:[#allocation50_spill] sm:$0xff] }
 0x1d5   :  { %v2259_v10 = vsel %vm1615_vm6, 1.0, %v4834_v43  ;;  %v2413_v30 = vpack.c.bf16 %v1693_v33, %v1692_v37  ;;  %v2461_v57 = vpack.c.bf16 %v1918_v18, %v1917_v47  ;;  %v1935_v39 = vmul.f32 %v2258_v41, %v4959_v0 }
 0x1d6   :  { %v1711_v61 = vmul.f32 %v2259_v10, %v4960_v35  ;;  %v1936_v55 = vmul.f32 %v2259_v10, %v4961_v11  ;;  %v2242_v16 = vsel %vm1598_vm5, 1.0, %v4834_v43  ;;  %v1458_v58 = vadd.s32 %v4962_v4, %v1455_v8  ;;  %v4973_v10 = vld [vmem:[#allocation81_spill] sm:$0xff] }
 0x1d7   :  { %v1203_v17 = vadd.s32 %v4963_v24, %v1200_v32  ;;  %2415 = vmatpush3.bf16.xpose.msk.msra.mxu0 %vm4376_vm15, %v2413_v30  ;;  %2463 = vmatpush3.bf16.xpose.msk.msra.mxu1 %vm4376_vm15, %v2461_v57  ;;  %v1214_v40 = vpop.xlane.xlu0 %1213  ;;  %v1469_v44 = vpop.xlane.xlu1 %1468  ;;  %v930_v60 = vadd.f32 %v929_v2, %v928_v12  ;;  %v4440_v54 = vshll.u32 %v1546_v27, 16  ;;  %v1291_v5 = vcvt.f32.s32 %v4964_v38  ;;  %v4967_v2 = vld [vmem:[#allocation52_spill] sm:$0xff]  ;;  %v4974_v57 = vld [vmem:[#allocation23_spill] sm:$0xff] }
 0x1d8   :  { %v1215_v49 = vcvt.f32.s32 %v1214_v40  ;;  %v1470_v31 = vcvt.f32.s32 %v1469_v44  ;;  %v2416_v46 = vpack.c.bf16 %v1711_v61, %v1710_v52  ;;  %v2464_v15 = vpack.c.bf16 %v1936_v55, %v1935_v39  ;;  %v4975_v52 = vld [vmem:[#allocation66_spill] sm:$0xff]  ;;  %v4977_v55 = vld [vmem:[#allocation56_spill] sm:$0xff] }
 0x1d9   :  { %vm1616_vm7 = vcmp.eq.s32.totalorder %v4942_v21, %v1458_v58  ;;  %vm1599_vm8 = vcmp.eq.s32.totalorder %v4942_v21, %v1203_v17  ;;  %931 = vadd.xlane.f32.xlu0 %v930_v60  ;;  %v1694_v29 = vmul.f32 %v2242_v16, %v4965_v50  ;;  %v1919_v47 = vmul.f32 %v2242_v16, %v4968_v6  ;;  %v4976_v61 = vld [vmem:[#allocation58_spill] sm:$0xff] }
 0x1da   :  { %v2243_v62 = vsel %vm1599_vm8, 1.0, %v4834_v43  ;;  %v1218_v53 = vadd.s32 %v4966_v3, %v1215_v49  ;;  %v1473_v37 = vadd.s32 %v4967_v2, %v1470_v31  ;;  %2418 = vmatprep.subr.msk.bf16.mxu0 %vm4376_vm15, %v2416_v46  ;;  %2466 = vmatprep.subr.msk.bf16.mxu1 %vm4376_vm15, %v2464_v15  ;;  %v2260_v56 = vsel %vm1616_vm7, 1.0, %v4834_v43  ;;  %v4978_v49 = vld [vmem:[#allocation55_spill] sm:$0xff]  ;;  %v4979_v46 = vld [vmem:[#allocation22_spill] sm:$0xff]  ;;  %v4982_v3 = vld [vmem:[#allocation65_spill] sm:$0xff] }
 0x1db   :  { %v1695_v48 = vmul.f32 %v2243_v62, %v4969_v19  ;;  %v1920_v41 = vmul.f32 %v2243_v62, %v4970_v36  ;;  %v1484_v42 = vpop.xlane.xlu0 %1483  ;;  %v1229_v33 = vpop.xlane.xlu1 %1228  ;;  %v1306_v25 = vcvt.f32.s32 %v4971_v45  ;;  %v1712_v27 = vmul.f32 %v2260_v56, %v4972_v13  ;;  %v4988_v13 = vld [vmem:[#allocation27_spill] sm:$0xff] }
 0x1dc   :  { %vm1600_vm9 = vcmp.eq.s32.totalorder %v4942_v21, %v1218_v53  ;;  %vm1617_vm10 = vcmp.eq.s32.totalorder %v4942_v21, %v1473_v37  ;;  %v1485_v51 = vcvt.f32.s32 %v1484_v42  ;;  %v1230_v18 = vcvt.f32.s32 %v1229_v33  ;;  %v4983_v37 = vld [vmem:[#allocation25_spill] sm:$0xff]  ;;  %v4985_v42 = vld [vmem:[#allocation54_spill] sm:$0xff] }
 0x1dd   :  { %v2261_v12 = vsel %vm1617_vm10, 1.0, %v4834_v43  ;;  %v2419_v8 = vpack.c.bf16 %v1695_v48, %v1694_v29  ;;  %v2467_v32 = vpack.c.bf16 %v1920_v41, %v1919_v47  ;;  %v1937_v30 = vmul.f32 %v2260_v56, %v4973_v10  ;;  %v4981_v29 = vld [vmem:[#allocation60_spill] sm:$0xff]  ;;  %v4984_v47 = vld [vmem:[#allocation67_spill] sm:$0xff]  ;;  %v4989_v10 = vld [vmem:[#allocation70_spill] sm:$0xff] }
 0x1de   :  { %v1713_v20 = vmul.f32 %v2261_v12, %v4974_v57  ;;  %v1938_v0 = vmul.f32 %v2261_v12, %v4975_v52  ;;  %v4465_v39 = vshll.u32 %v1291_v5, 16  ;;  %v2244_v35 = vsel %vm1600_vm9, 1.0, %v4834_v43  ;;  %v4980_v5 = vld [vmem:[#allocation61_spill] sm:$0xff]  ;;  %v4990_v52 = vld [vmem:[#allocation62_spill] sm:$0xff] }
 0x1df   :  { %v1488_v11 = vadd.s32 %v4976_v61, %v1485_v51  ;;  %v1233_v16 = vadd.s32 %v4977_v55, %v1230_v18  ;;  %2421 = vmatpush3.bf16.xpose.msk.msra.mxu0 %vm4376_vm15, %v2419_v8  ;;  %2469 = vmatpush3.bf16.xpose.msk.msra.mxu1 %vm4376_vm15, %v2467_v32  ;;  %v1244_v4 = vpop.xlane.xlu0 %1243  ;;  %v1499_v58 = vpop.xlane.xlu1 %1498  ;;  %v4474_v60 = vshll.u32 %v1306_v25, 16  ;;  %v1561_v31 = vcvt.f32.s32 %v4978_v49  ;;  %v4986_v25 = vld [vmem:[#allocation24_spill] sm:$0xff]  ;;  %v4993_v49 = vld [vmem:[#allocation26_spill] sm:$0xff] }
 0x1e0   :  { %v1245_v24 = vcvt.f32.s32 %v1244_v4  ;;  %v1500_v17 = vcvt.f32.s32 %v1499_v58  ;;  %v2422_v40 = vpack.c.bf16 %v1713_v20, %v1712_v27  ;;  %v2470_v44 = vpack.c.bf16 %v1938_v0, %v1937_v30  ;;  %v4987_v8 = vld [vmem:[#allocation68_spill] sm:$0xff] }
 0x1e1   :  { %vm1618_vm11 = vcmp.eq.s32.totalorder %v4942_v21, %v1488_v11  ;;  %vm1601_vm12 = vcmp.eq.s32.totalorder %v4942_v21, %v1233_v16  ;;  %v1696_v15 = vmul.f32 %v2244_v35, %v4979_v46  ;;  %v1921_v53 = vmul.f32 %v2244_v35, %v4982_v3  ;;  %v4991_v35 = vld [vmem:[#allocation15_spill] sm:$0xff] }
 0x1e2   :  { %v2245_v38 = vsel %vm1601_vm12, 1.0, %v4834_v43  ;;  %v1248_v50 = vadd.s32 %v4980_v5, %v1245_v24  ;;  %v1503_v62 = vadd.s32 %v4981_v29, %v1500_v17  ;;  %2424 = vmatprep.subr.msk.bf16.mxu0 %vm4376_vm15, %v2422_v40  ;;  %2472 = vmatprep.subr.msk.bf16.mxu1 %vm4376_vm15, %v2470_v44  ;;  %v2262_v2 = vsel %vm1618_vm11, 1.0, %v4834_v43  ;;  %v4992_v40 = vld [vmem:[#allocation12_spill] sm:$0xff]  ;;  %v4995_v5 = vld [vmem:[#allocation77_spill] sm:$0xff]  ;;  %v4996_v29 = vld [vmem:[#allocation82_spill] sm:$0xff] }
 0x1e3   :  { %v1697_v6 = vmul.f32 %v2245_v38, %v4983_v37  ;;  %v1922_v56 = vmul.f32 %v2245_v38, %v4984_v47  ;;  %v1514_v19 = vpop.xlane.xlu0 %1513  ;;  %v1259_v48 = vpop.xlane.xlu1 %1258  ;;  %v1576_v33 = vcvt.f32.s32 %v4985_v42  ;;  %v1714_v12 = vmul.f32 %v2262_v2, %v4986_v25  ;;  %v4998_v37 = vld [vmem:[#allocation69_spill] sm:$0xff] }
 0x1e4   :  { %vm1602_vm13 = vcmp.eq.s32.totalorder %v4942_v21, %v1248_v50  ;;  %vm1619_vm14 = vcmp.eq.s32.totalorder %v4942_v21, %v1503_v62  ;;  %v1515_v36 = vcvt.f32.s32 %v1514_v19  ;;  %v1260_v41 = vcvt.f32.s32 %v1259_v48  ;;  %v5001_v25 = vld [vmem:[#allocation85_spill] sm:$0xff] }
 0x1e5   :  { %v2263_v51 = vsel %vm1619_vm14, 1.0, %v4834_v43  ;;  %v2425_v18 = vpack.c.bf16 %v1697_v6, %v1696_v15  ;;  %v2473_v45 = vpack.c.bf16 %v1922_v56, %v1921_v53  ;;  %v1939_v32 = vmul.f32 %v2262_v2, %v4987_v8  ;;  %v4994_v15 = vld [vmem:[#allocation64_spill] sm:$0xff]  ;;  %v4997_v53 = vld [vmem:[#allocation29_spill] sm:$0xff] }
 0x1e6   :  { %v1715_v27 = vmul.f32 %v2263_v51, %v4988_v13  ;;  %v1940_v30 = vmul.f32 %v2263_v51, %v4989_v10  ;;  %v1562_v57 = vshll.u32 %v1561_v31, 16  ;;  %v2246_v20 = vsel %vm1602_vm13, 1.0, %v4834_v43 }
 0x1e7   :  { %v1518_v0 = vadd.s32 %v4990_v52, %v1515_v36  ;;  %v1263_v61 = vadd.s32 %v4991_v35, %v1260_v41  ;;  %2427 = vmatpush3.bf16.xpose.msk.msra.mxu0 %vm4376_vm15, %v2425_v18  ;;  %2475 = vmatpush3.bf16.xpose.msk.msra.mxu1 %vm4376_vm15, %v2473_v45  ;;  %v1274_v11 = vpop.xlane.xlu0 %1273  ;;  %v1529_v55 = vpop.xlane.xlu1 %1528  ;;  %v4506_v17 = vshll.u32 %v1576_v33, 16  ;;  %v1321_v44 = vcvt.f32.s32 %v4992_v40  ;;  %v4999_v36 = vld [vmem:[#allocation75_spill] sm:$0xff]  ;;  %v5000_v18 = vld [vmem:[#allocation28_spill] sm:$0xff] }
 0x1e8   :  { %v1275_v16 = vcvt.f32.s32 %v1274_v11  ;;  %v1530_v4 = vcvt.f32.s32 %v1529_v55  ;;  %v2428_v58 = vpack.c.bf16 %v1715_v27, %v1714_v12  ;;  %v2476_v24 = vpack.c.bf16 %v1940_v30, %v1939_v32  ;;  %v5002_v11 = vld [vmem:[#allocation76_spill] sm:$0xff] }
 0x1e9   :  { %vm1620_vm0 = vcmp.eq.s32.totalorder %v4942_v21, %v1518_v0  ;;  %vm1603_vm2 = vcmp.eq.s32.totalorder %v4942_v21, %v1263_v61  ;;  %v1698_v31 = vmul.f32 %v2246_v20, %v4993_v49  ;;  %v1923_v62 = vmul.f32 %v2246_v20, %v4996_v29  ;;  %v5005_v49 = vld [vmem:[#allocation33_spill] sm:$0xff] }
 0x1ea   :  { %v2247_v46 = vsel %vm1603_vm2, 1.0, %v4834_v43  ;;  %v1278_v38 = vadd.s32 %v4994_v15, %v1275_v16  ;;  %v1533_v50 = vadd.s32 %v4995_v5, %v1530_v4  ;;  %2430 = vmatprep.subr.msk.bf16.mxu0 %vm4376_vm15, %v2428_v58  ;;  %2478 = vmatprep.subr.msk.bf16.mxu1 %vm4376_vm15, %v2476_v24  ;;  %v2264_v3 = vsel %vm1620_vm0, 1.0, %v4834_v43  ;;  %v5004_v24 = vld [vmem:[#allocation83_spill] sm:$0xff] }
 0x1eb   :  { %v1699_v2 = vmul.f32 %v2247_v46, %v4997_v53  ;;  %v1924_v6 = vmul.f32 %v2247_v46, %v4998_v37  ;;  %v1544_v47 = vpop.xlane.xlu0 %1543  ;;  %v1289_v56 = vpop.xlane.xlu1 %1288  ;;  %v1336_v41 = vcvt.f32.s32 %v4999_v36  ;;  %v1716_v45 = vmul.f32 %v2264_v3, %v5000_v18  ;;  %v5006_v46 = vld [vmem:[#allocation71_spill] sm:$0xff] }
 0x1ec   :  { %vm1604_vm3 = vcmp.eq.s32.totalorder %v4942_v21, %v1278_v38  ;;  %vm1621_vm4 = vcmp.eq.s32.totalorder %v4942_v21, %v1533_v50  ;;  %v1545_v19 = vcvt.f32.s32 %v1544_v47  ;;  %v1290_v48 = vcvt.f32.s32 %v1289_v56  ;;  %v5007_v47 = vld [vmem:[#allocation9_spill] sm:$0xff] }
 0x1ed   :  { %v2265_v42 = vsel %vm1621_vm4, 1.0, %v4834_v43  ;;  %v2431_v33 = vpack.c.bf16 %v1699_v2, %v1698_v31  ;;  %v2479_v51 = vpack.c.bf16 %v1924_v6, %v1923_v62  ;;  %v1941_v12 = vmul.f32 %v2264_v3, %v5001_v25  ;;  %v5009_v25 = vld [vmem:[#allocation84_spill] sm:$0xff] }
 0x1ee   :  { %v1717_v8 = vmul.f32 %v2265_v42, %v4937_v59  ;;  %v1942_v32 = vmul.f32 %v2265_v42, %v4217_v63  ;;  %v1322_v13 = vshll.u32 %v1321_v44, 16  ;;  %v2248_v27 = vsel %vm1604_vm3, 1.0, %v4834_v43 }
 0x1ef   :  { %v1548_v10 = vadd.s32 %v4440_v54, %v1545_v19  ;;  %v1293_v30 = vadd.s32 %v4465_v39, %v1290_v48  ;;  %2433 = vmatpush3.bf16.xpose.msk.msra.mxu0 %vm4376_vm15, %v2431_v33  ;;  %2481 = vmatpush3.bf16.xpose.msk.msra.mxu1 %vm4376_vm15, %v2479_v51  ;;  %v1304_v20 = vpop.xlane.xlu0 %1303  ;;  %v1559_v52 = vpop.xlane.xlu1 %1558  ;;  %v1337_v63 = vshll.u32 %v1336_v41, 16  ;;  %v1591_v55 = vcvt.f32.s32 %v5002_v11  ;;  %v5003_v54 = vld [vmem:[#allocation30_spill] sm:$0xff] }
 0x1f0   :  { %v1305_v0 = vcvt.f32.s32 %v1304_v20  ;;  %v1560_v35 = vcvt.f32.s32 %v1559_v52  ;;  %v2434_v59 = vpack.c.bf16 %v1717_v8, %v1716_v45  ;;  %v2482_v61 = vpack.c.bf16 %v1942_v32, %v1941_v12  ;;  %v5010_v32 = vld [vmem:[#allocation36_spill] sm:$0xff] }
 0x1f1   :  { %vm1622_vm5 = vcmp.eq.s32.totalorder %v4942_v21, %v1548_v10  ;;  %vm1605_vm6 = vcmp.eq.s32.totalorder %v4942_v21, %v1293_v30  ;;  %v1700_v39 = vmul.f32 %v2248_v27, %v5003_v54  ;;  %v1925_v40 = vmul.f32 %v2248_v27, %v5004_v24  ;;  %v5011_v27 = vld [vmem:[#allocation72_spill] sm:$0xff] }
 0x1f2   :  { %v2249_v16 = vsel %vm1605_vm6, 1.0, %v4834_v43  ;;  %v1308_v4 = vadd.s32 %v4474_v60, %v1305_v0  ;;  %v1563_v58 = vadd.s32 %v1562_v57, %v1560_v35  ;;  %2436 = vmatprep.subr.msk.bf16.mxu0 %vm4376_vm15, %v2434_v59  ;;  %2484 = vmatprep.subr.msk.bf16.mxu1 %vm4376_vm15, %v2482_v61  ;;  %v2266_v44 = vsel %vm1622_vm5, 1.0, %v4834_v43  ;;  %v5014_v24 = vld [vmem:[#allocation40_spill] sm:$0xff] }
 0x1f3   :  { %v1701_v31 = vmul.f32 %v2249_v16, %v5005_v49  ;;  %v1926_v15 = vmul.f32 %v2249_v16, %v5006_v46  ;;  %v1574_v38 = vpop.xlane.xlu0 %1573  ;;  %v1319_v5 = vpop.xlane.xlu1 %1318  ;;  %v1592_v50 = vshll.u32 %v1591_v55, 16  ;;  %v1718_v53 = vmul.f32 %v2266_v44, %v4938_v7 }
 0x1f4   :  { %vm1606_vm7 = vcmp.eq.s32.totalorder %v4942_v21, %v1308_v4  ;;  %vm1623_vm8 = vcmp.eq.s32.totalorder %v4942_v21, %v1563_v58  ;;  %v1575_v60 = vcvt.f32.s32 %v1574_v38  ;;  %v1320_v57 = vcvt.f32.s32 %v1319_v5 }
 0x1f5   :  { %v2267_v29 = vsel %vm1623_vm8, 1.0, %v4834_v43  ;;  %v2437_v62 = vpack.c.bf16 %v1701_v31, %v1700_v39  ;;  %v2485_v3 = vpack.c.bf16 %v1926_v15, %v1925_v40  ;;  %v1943_v2 = vmul.f32 %v2266_v44, %v4265_v9  ;;  %v5015_v44 = vld [vmem:[#allocation74_spill] sm:$0xff] }
 0x1f6   :  { %v1719_v37 = vmul.f32 %v2267_v29, %v4939_v14  ;;  %v1944_v6 = vmul.f32 %v2267_v29, %v4280_v34  ;;  %v1351_v56 = vcvt.f32.s32 %v5007_v47  ;;  %v2250_v19 = vsel %vm1606_vm7, 1.0, %v4834_v43  ;;  %v5008_v34 = vld [vmem:[#allocation35_spill] sm:$0xff] }
 0x1f7   :  { %v1578_v48 = vadd.s32 %v4506_v17, %v1575_v60  ;;  %v1323_v36 = vadd.s32 %v1322_v13, %v1320_v57  ;;  %2439 = vmatpush3.bf16.xpose.msk.msra.mxu0 %vm4376_vm15, %v2437_v62  ;;  %2487 = vmatpush3.bf16.xpose.msk.msra.mxu1 %vm4376_vm15, %v2485_v3  ;;  %v1334_v7 = vpop.xlane.xlu0 %1333  ;;  %v1589_v41 = vpop.xlane.xlu1 %1588  ;;  %v1702_v51 = vmul.f32 %v2250_v19, %v5008_v34  ;;  %vm949_vm14 = vcmp.eq.s32.totalorder %v4942_v21, 2 }
 0x1f8   :  { %v1335_v9 = vcvt.f32.s32 %v1334_v7  ;;  %v1590_v42 = vcvt.f32.s32 %v1589_v41  ;;  %v2440_v14 = vpack.c.bf16 %v1719_v37, %v1718_v53  ;;  %v2488_v33 = vpack.c.bf16 %v1944_v6, %v1943_v2 }
 0x1f9   :  { %vm1624_vm9 = vcmp.eq.s32.totalorder %v4942_v21, %v1578_v48  ;;  %vm1607_vm10 = vcmp.eq.s32.totalorder %v4942_v21, %v1323_v36  ;;  %v1927_v12 = vmul.f32 %v2250_v19, %v5009_v25  ;;  %v1352_v20 = vshll.u32 %v1351_v56, 16 }
 0x1fa   :  { %v2251_v17 = vsel %vm1607_vm10, 1.0, %v4834_v43  ;;  %v1338_v18 = vadd.s32 %v1337_v63, %v1335_v9  ;;  %v1593_v45 = vadd.s32 %v1592_v50, %v1590_v42  ;;  %2442 = vmatprep.subr.msk.bf16.mxu0 %vm4376_vm15, %v2440_v14  ;;  %2490 = vmatprep.subr.msk.bf16.mxu1 %vm4376_vm15, %v2488_v33  ;;  %v2268_v8 = vsel %vm1624_vm9, 1.0, %v4834_v43 }
 0x1fb   :  { %v1703_v13 = vmul.f32 %v2251_v17, %v5010_v32  ;;  %v1928_v10 = vmul.f32 %v2251_v17, %v5011_v27  ;;  %v1349_v30 = vpop.xlane.xlu1 %1348  ;;  %v1720_v61 = vmul.f32 %v2268_v8, %v4940_v22  ;;  %v1945_v63 = vmul.f32 %v2268_v8, %v4282_v28  ;;  %v5012_v28 = vld [vmem:[#allocation39_spill] sm:$0xff] }
 0x1fc   :  { %vm1625_vm11 = vcmp.eq.s32.totalorder %v4942_v21, %v1593_v45  ;;  %v1350_v52 = vcvt.f32.s32 %v1349_v30  ;;  %vm1608_vm12 = vcmp.eq.s32.totalorder %v4942_v21, %v1338_v18 }
 0x1fd   :  { %v2269_v0 = vsel %vm1625_vm11, 1.0, %v4834_v43  ;;  %v2443_v35 = vpack.c.bf16 %v1703_v13, %v1702_v51  ;;  %v2491_v59 = vpack.c.bf16 %v1928_v10, %v1927_v12  ;;  %v2252_v39 = vsel %vm1608_vm12, 1.0, %v4834_v43 }
 0x1fe   :  { %v1721_v11 = vmul.f32 %v2269_v0, %v4941_v26  ;;  %v1946_v55 = vmul.f32 %v2269_v0, %v4287_v23  ;;  %v1353_v54 = vadd.s32 %v1352_v20, %v1350_v52  ;;  %v1704_v23 = vmul.f32 %v2252_v39, %v5012_v28  ;;  %v5013_v26 = vld [vmem:[#allocation73_spill] sm:$0xff] }
 0x1ff   :  { %2445 = vmatpush3.bf16.xpose.msk.msra.mxu0 %vm4376_vm15, %v2443_v35  ;;  %2493 = vmatpush3.bf16.xpose.msk.msra.mxu1 %vm4376_vm15, %v2491_v59  ;;  %v1929_v58 = vmul.f32 %v2252_v39, %v5013_v26 }
 0x200   :  { %v2446_v16 = vpack.c.bf16 %v1721_v11, %v1720_v61  ;;  %v2494_v4 = vpack.c.bf16 %v1946_v55, %v1945_v63  ;;  %vm1609_vm13 = vcmp.eq.s32.totalorder %v4942_v21, %v1353_v54 }
 0x201   :  { %v2253_v22 = vsel %vm1609_vm13, 1.0, %v4834_v43  ;;  %v5016_v43 = vmov 1.0  }
 0x202   :  { %2448 = vmatprep.subr.msk.bf16.mxu0 %vm4376_vm15, %v2446_v16  ;;  %2496 = vmatprep.subr.msk.bf16.mxu1 %vm4376_vm15, %v2494_v4  ;;  %v1705_v40 = vmul.f32 %v2253_v22, %v5014_v24  ;;  %v1930_v49 = vmul.f32 %v2253_v22, %v5015_v44 }
 0x204   :  { %v2449_v31 = vpack.c.bf16 %v1705_v40, %v1704_v23  ;;  %v2497_v46 = vpack.c.bf16 %v1930_v49, %v1929_v58 }
 0x207   :  { %2451 = vmatpush3.bf16.xpose.msk.msra.mxu0 %vm4376_vm15, %v2449_v31  ;;  %2499 = vmatpush3.bf16.xpose.msk.msra.mxu1 %vm4376_vm15, %v2497_v46  ;;  %vm945_vm15 = vcmp.eq.s32.totalorder %v4942_v21, 1 }
 0x20e   :  { %2369 = vmatmul.mubr.msk.f32.vlgmr.msra.gmra.mrb[0].mxu0 %vm403_vm1, %v5016_v43  ;;  %2403 = vmatmul.mubr.msk.f32.vlgmr.msra.gmra.mrb[0].mxu1 %vm403_vm1, %v5016_v43  ;;  %vm942_vm1 = vcmp.eq.s32.totalorder %v4942_v21, 0 }
 0x24e   :  { %v860_v15 = vpop.xlane.xlu1 %859 }
 0x24f   :  { %v861_v38 = vrot.slane %v860_v15, 4 }
 0x251   :  { %v862_v5 = vadd.f32 %v861_v38, %v860_v15 }
 0x253   :  { %v863_v60 = vrot.slane %v862_v5, 2 }
 0x255   :  { %v864_v29 = vadd.f32 %v863_v60, %v862_v5 }
 0x257   :  { %v865_v2 = vrot.slane %v864_v29, 1 }
 0x259   :  { %v866_v56 = vadd.f32 %v865_v2, %v864_v29 }
 0x260   :  { %v788_v57 = vpop.xlane.xlu0 %787 }
 0x261   :  { %v789_v50 = vrot.slane %v788_v57, 4 }
 0x263   :  { %v790_v62 = vadd.f32 %v789_v50, %v788_v57 }
 0x265   :  { %v791_v3 = vrot.slane %v790_v62, 2 }
 0x266   :  { %v932_v53 = vpop.xlane.xlu0 %931 }
 0x267   :  { %v933_v37 = vrot.slane %v932_v53, 4  ;;  %v792_v1 = vadd.f32 %v791_v3, %v790_v62 }
 0x269   :  { %v934_v6 = vadd.f32 %v933_v37, %v932_v53  ;;  %v793_v47 = vrot.slane %v792_v1, 1 }
 0x26b   :  { %v935_v19 = vrot.slane %v934_v6, 2  ;;  %v794_v48 = vadd.f32 %v793_v47, %v792_v1 }
 0x26d   :  { %v936_v36 = vadd.f32 %v935_v19, %v934_v6  ;;  %2500 = vpush %v794_v48 }
 0x26e   :  { %2502 = vpush %v866_v56 }
 0x26f   :  { %v937_v7 = vrot.slane %v936_v36, 1 }
 0x271   :  { %v938_v41 = vadd.f32 %v937_v7, %v936_v36 }
 0x273   :  { %2504 = vpush %v938_v41 }
 0x29e   :  { %s2501_s1 = spop %2500 }
 0x29f   :  { %v943_v9 = vstv %s2501_s1  ;;  %s2503_s6 = spop %2502 }
 0x2a0   :  { %v944_v42 = vsel %vm942_vm1, %v943_v9, 0.0  ;;  %v946_v14 = vstv %s2503_s6 }
 0x2a1   :  { %v947_v33 = vsel %vm945_vm15, %v946_v14, 0.0 }
 0x2a2   :  { %v948_v34 = vadd.f32 %v947_v33, %v944_v42 }
 0x2a4   :  { %s2505_s7 = spop %2504 }
 0x2a5   :  { %v950_v51 = vstv %s2505_s7 }
 0x2a6   :  { %v951_v17 = vsel %vm949_vm14, %v950_v51, 0.0 }
 0x2a7   :  { %v952_v18 = vadd.f32 %v951_v17, %v948_v34 }
 0x2a9   :  { %953 = vst [vmem:[#allocation2] sm:$0x1] %v952_v18 }
 0x2aa   :  { %2523 = shalt.err (!%p2520_p4)
}
 0x2ab   :  { %s2524_s13 = scalar_lea.hbm %s4651_s2, 16 }
 0x2ac   :  { %p2525_p5 = scmp.ne.s32.totalorder %s4651_s2, %s2524_s13  ;;  %p2528_p6 = scmp.lt.u32.totalorder %s2524_s13, %s4651_s2 }
 0x2ae   :  { %p2530_p7 = pnand %p2528_p6, %p2525_p5 }
 0x2b0   :  { %2533 = shalt.err (!%p2530_p7)
}
 0x2b1   :  { %2142 = dma.vmem_to_hbm [thread:$0]  %s2140_s9, 16, %s4651_s2, [#allocation3]   ;;  %v2585_v21 = vmov 1966171168   ;;  %v5017_v12 = vlaneseq }
 0x2b2   :  { %v1896_v45 = vunpack.c.l.s4 %v2585_v21  ;;  %s2586_s20 = smov [#allocation4]   ;;  %s2587_s22 = smov [#allocation6]  }
 0x2b3   :  { %v1899_v8 = vshrl.u32 %v5017_v12, 7  ;;  %s2149_s21 = sshll.u32 %s2586_s20, 4  ;;  %s2159_s23 = sshll.u32 %s2587_s22, 4  ;;  %vm1912_vm0 = vcmp.lt.s32.totalorder %v5017_v12, 256  ;;  %s2150_s21 = int_to_ptr.vmem [resolvable:$true] %s2149_s21  ;;  %s2160_s23 = int_to_ptr.vmem [resolvable:$true] %s2159_s23 }
 0x2b4   :  { %v1897_v25 = vunpack.c.0.s8 %v1896_v45  ;;  %s2534_s2 = scalar_lea.vmem %s2150_s21, 32  ;;  %p2539_p9 = scmp.lt.s32.totalorder %s2150_s21, %s2150_s21 }
 0x2b5   :  { %p2535_p8 = scmp.ne.s32.totalorder %s2150_s21, %s2534_s2  ;;  %p2540_p10 = scmp.lt.s32.totalorder %s2534_s2, %s2534_s2 }
 0x2b6   :  { %v1900_v27 = vsub.s32 %v1897_v25, %v1899_v8 }
 0x2b7   :  { %p2541_p11 = por %p2540_p10, %p2539_p9 }
 0x2b9   :  { %p2542_p12 = pnand %p2541_p11, %p2535_p8 }
 0x2e1   :  { %v1887_v32 = vpop.f32.mrb[0].mxu0  ;;  %v2109_v13 = vpop.f32.mrb[0].mxu1 }
 0x2e2   :  { %v1889_v10 = vpop.f32.mrb[1].mxu0  ;;  %v2111_v30 = vpop.f32.mrb[1].mxu1 }
 0x2e3   :  { %v1894_v20 = vcombine.low %v1887_v32, %v1889_v10  ;;  %v2116_v52 = vcombine.low %v2109_v13, %v2111_v30 }
 0x2e5   :  { %v1901_v0 = vrot.slane %v1894_v20, %v1900_v27  ;;  %v2123_v35 = vrot.slane %v2116_v52, %v1900_v27 }
 0x2e7   :  { %v1908_v59 = vrot.slane %v1901_v0, %v1900_v27  ;;  %v2130_v61 = vrot.slane %v2123_v35, %v1900_v27 }
 0x2e9   :  { %1914 = vst.msk [vmem:[#allocation4] sm:$0x3] %vm1912_vm0, %v1908_v59  ;;  %2132 = vst.msk [vmem:[#allocation6] sm:$0x3] %vm1912_vm0, %v2130_v61 }
 0x2ea   :  { %2545 = shalt.err (!%p2542_p12)
}
 0x2eb   :  { %s2546_s26 = scalar_lea.hbm %s4652_s3, 32 }
 0x2ec   :  { %p2547_p13 = scmp.ne.s32.totalorder %s4652_s3, %s2546_s26  ;;  %p2550_p0 = scmp.lt.u32.totalorder %s2546_s26, %s4652_s3 }
 0x2ee   :  { %p2552_p1 = pnand %p2550_p0, %p2547_p13 }
 0x2f0   :  { %2555 = shalt.err (!%p2552_p1)
}
 0x2f1   :  { %2152 = dma.vmem_to_hbm [thread:$0]  %s2150_s21, 32, %s4652_s3, [#allocation5]  }
 0x2f2   :  { %s2556_s6 = scalar_lea.vmem %s2160_s23, 32  ;;  %p2561_p3 = scmp.lt.s32.totalorder %s2160_s23, %s2160_s23 }
 0x2f3   :  { %p2557_p2 = scmp.ne.s32.totalorder %s2160_s23, %s2556_s6  ;;  %p2562_p4 = scmp.lt.s32.totalorder %s2556_s6, %s2556_s6 }
 0x2f5   :  { %p2563_p5 = por %p2562_p4, %p2561_p3 }
 0x2f7   :  { %p2564_p6 = pnand %p2563_p5, %p2557_p2 }
 0x2f9   :  { %2567 = shalt.err (!%p2564_p6)
}
 0x2fa   :  { %s2568_s9 = scalar_lea.hbm %s4653_s4, 32 }
 0x2fb   :  { %p2569_p7 = scmp.ne.s32.totalorder %s4653_s4, %s2568_s9  ;;  %p2572_p8 = scmp.lt.u32.totalorder %s2568_s9, %s4653_s4 }
 0x2fd   :  { %p2574_p9 = pnand %p2572_p8, %p2569_p7 }
 0x2ff   :  { %2577 = shalt.err (!%p2574_p9)
}
 0x300   :  { %2162 = dma.vmem_to_hbm [thread:$0]  %s2160_s23, 32, %s4653_s4, [#allocation5]  }
 0x301   :  { %2578 = dma.done.wait [#allocation3], 16  }
 0x302   :  { %2579 = vsyncadd [#allocation3], 4294967280 }
 0x303   :  { %2580 = dma.done.wait [#allocation5], 64  }
 0x304   :  { %2581 = vsyncadd [#allocation5], 4294967232 }
 0x305   :  { %2172 = vsyncpa [#allocation3], 1 }
 0x306   :  { %2173 = vsyncpa [#allocation5], 1 }

</bundles_post_ra>
